<compile_context>
chip_gen: v7x
topology: tpu7x:2x2x1
jax: 0.10.0
libtpu: 0.0.40
codegen_flags: <defaults>
</compile_context>

<pallas_src>
import functools

import jax
import jax.numpy as jnp
from jax.experimental import pallas as pl
from jax.experimental.pallas import tpu as pltpu

# ------------------------- config (small, consistent with the module) -----------------
D_MODEL = 32
NUM_HEADS = 4
FF_DIM = 64
ATTN_LAYERS = 2
MAX_POS = 16
LN_EPS = 1e-5          # torch.nn.LayerNorm default


# ------------------------------- in-kernel math helpers -------------------------------
def _erf_f32(x):
    # Eigen/XLA float32 rational erf approximation (mul/add/div only, TPU-safe).
    x = jnp.clip(x, -4.0, 4.0)
    x2 = x * x
    p = x2 * (-2.72614225801306e-10) + 2.77068142495902e-08
    p = x2 * p + (-2.10102402082508e-06)
    p = x2 * p + (-5.69250639462346e-05)
    p = x2 * p + (-7.34990630326855e-04)
    p = x2 * p + (-2.95459980854025e-03)
    p = x2 * p + (-1.60960333262415e-02)
    p = x * p
    q = x2 * (-1.45660718464996e-05) + (-2.13374055278905e-04)
    q = x2 * q + (-1.68282697438203e-03)
    q = x2 * q + (-7.37332916720468e-03)
    q = x2 * q + (-1.42647390514189e-02)
    return p / q


def _gelu_exact(x):
    # matches torch.nn.GELU() (erf-based) to float32 precision
    return 0.5 * x * (1.0 + _erf_f32(x * 0.7071067811865476))


# ---------------------------------- fused Pallas kernel --------------------------------
def _fused_forward_kernel(x_ref, y_ref, self_pos_ref, causal_pos_ref,
                          ln_g_ref, ln_b_ref,
                          wqkv_ref, bqkv_ref, wo_ref, bo_ref,
                          w1_ref, b1_ref, w2_ref, b2_ref,
                          o_ref, *, num_heads, num_layers):
    """Full SeparativeCoordinateAttention forward for one batch element.

    Packed-weight index conventions (L = num_layers):
      attention blocks : [self 0..L-1 | causal 0..L-1 | merge 0..L-1]
      ffn blocks       : [self 0..L-1 | merge 0..L-1]
      layernorm blocks : [first_self, first_causal,
                          self_l ln1/ln2 (2+2l, 3+2l),
                          causal_l ln1 (2+2L+l),
                          merge_l ln1/ln2 (2+3L+2l, 2+3L+2l+1)]
    """
    d = x_ref.shape[-1]
    dh = d // num_heads

    def layernorm(h, idx):
        mu = jnp.mean(h, axis=-1, keepdims=True)
        var = jnp.mean(jnp.square(h - mu), axis=-1, keepdims=True)
        yn = (h - mu) * jax.lax.rsqrt(var + LN_EPS)
        return yn * ln_g_ref[idx] + ln_b_ref[idx]

    def attention(xq, xkv, idx, shared_kv, mask):
        """MHA with packed QKV (scale pre-folded into wq/bq) and output projection
        accumulated as a sum over head-slices of wo (no concat along lanes)."""
        wqkv = wqkv_ref[idx]          # [D, 3D]
        bqkv = bqkv_ref[idx]          # [1, 3D]
        if shared_kv:
            qkv = jnp.dot(xq, wqkv, preferred_element_type=jnp.float32) + bqkv
            q, k, v = qkv[:, :d], qkv[:, d:2 * d], qkv[:, 2 * d:]
        else:
            q = jnp.dot(xq, wqkv[:, :d], preferred_element_type=jnp.float32) + bqkv[:, :d]
            kv = jnp.dot(xkv, wqkv[:, d:], preferred_element_type=jnp.float32) + bqkv[:, d:]
            k, v = kv[:, :d], kv[:, d:]
        wo = wo_ref[idx]              # [D, D]
        out = None
        for h in range(num_heads):    # static unroll, num_heads is small
            lo, hi = h * dh, (h + 1) * dh
            qh, kh, vh = q[:, lo:hi], k[:, lo:hi], v[:, lo:hi]
            s = jax.lax.dot_general(qh, kh, (((1,), (1,)), ((), ())),
                                    preferred_element_type=jnp.float32)   # q @ k.T
            if mask is not None:
                s = s + mask
            s = s - jnp.max(s, axis=-1, keepdims=True)
            e = jnp.exp(s)
            p = e * pl.reciprocal(jnp.sum(e, axis=-1, keepdims=True), approx=True)
            ctx = jnp.dot(p, vh, preferred_element_type=jnp.float32)      # [Sq, dh]
            part = jnp.dot(ctx, wo[lo:hi, :], preferred_element_type=jnp.float32)
            out = part if out is None else out + part
        return out + bo_ref[idx]

    def ffn(xx, idx):
        h1 = jnp.dot(xx, w1_ref[idx], preferred_element_type=jnp.float32) + b1_ref[idx]
        h1 = _gelu_exact(h1)
        return jnp.dot(h1, w2_ref[idx], preferred_element_type=jnp.float32) + b2_ref[idx]

    # LearningPositionEmbedding add fused with the first LayerNorms.
    s_map = layernorm(x_ref[0] + self_pos_ref[...], 0)
    c_map = layernorm(y_ref[0] + causal_pos_ref[...], 1)

    # attention_mask=None -> self/cross masks are all-zero (skipped); only the causal
    # lower-triangular mask matters.  Built in-kernel, no operand DMA.
    sy = y_ref.shape[1]
    row = jax.lax.broadcasted_iota(jnp.int32, (sy, sy), 0)
    col = jax.lax.broadcasted_iota(jnp.int32, (sy, sy), 1)
    causal_mask = jnp.where(row >= col, 0.0, jnp.finfo(jnp.float32).min).astype(jnp.float32)

    # self-attention stack
    for l in range(num_layers):
        a = attention(s_map, s_map, l, True, None)
        s_map = layernorm(s_map + a, 2 + 2 * l)
        f = ffn(s_map, l)
        s_map = layernorm(s_map + f, 3 + 2 * l)

    # causal stack + coordinates merge (cross-attention over the self map)
    for l in range(num_layers):
        a = attention(c_map, c_map, num_layers + l, True, causal_mask)
        c_map = layernorm(c_map + a, 2 + 2 * num_layers + l)
        a = attention(c_map, s_map, 2 * num_layers + l, False, None)
        c_map = layernorm(c_map + a, 2 + 3 * num_layers + 2 * l)
        f = ffn(c_map, num_layers + l)
        c_map = layernorm(c_map + f, 2 + 3 * num_layers + 2 * l + 1)

    o_ref[0] = c_map.astype(o_ref.dtype)


# ---------------------------------- pallas_call wrapper ---------------------------------
def separative_coordinate_attention(packed, x_embed, y_embed):
    """attention_mask=None, self_attn_x=True, eval mode (dropout disabled)."""
    B, Sx, D = x_embed.shape
    Sy = y_embed.shape[1]
    n_attn = 3 * ATTN_LAYERS
    n_ffn = 2 * ATTN_LAYERS
    n_ln = 2 + 5 * ATTN_LAYERS

    def const(shape):
        n = len(shape)
        return pl.BlockSpec(shape, lambda b, _n=n: (0,) * _n)

    kernel = functools.partial(_fused_forward_kernel,
                               num_heads=NUM_HEADS, num_layers=ATTN_LAYERS)

    # TODO(synk): if S*D grows, re-derive per-example slab + double-buffering against
    # v7x's 64 MiB VMEM and set vmem_limit_bytes explicitly; at these shapes it's trivial.
    return pl.pallas_call(
        kernel,
        out_shape=jax.ShapeDtypeStruct((B, Sy, D), x_embed.dtype),
        grid=(B,),
        in_specs=[
            pl.BlockSpec((1, Sx, D), lambda b: (b, 0, 0)),   # x_embed
            pl.BlockSpec((1, Sy, D), lambda b: (b, 0, 0)),   # y_embed
            const((Sx, D)), const((Sy, D)),                  # pos tables
            const((n_ln, 1, D)), const((n_ln, 1, D)),        # LN gamma/beta
            const((n_attn, D, 3 * D)), const((n_attn, 1, 3 * D)),   # packed QKV
            const((n_attn, D, D)), const((n_attn, 1, D)),           # out proj
            const((n_ffn, D, FF_DIM)), const((n_ffn, 1, FF_DIM)),   # FFN in
            const((n_ffn, FF_DIM, D)), const((n_ffn, 1, D)),        # FFN out
        ],
        out_specs=pl.BlockSpec((1, Sy, D), lambda b: (b, 0, 0)),
        compiler_params=pltpu.CompilerParams(dimension_semantics=("parallel",)),
    )(x_embed, y_embed,
      packed['self_pos'][:Sx], packed['causal_pos'][:Sy],
      packed['ln_g'], packed['ln_b'],
      packed['wqkv'], packed['bqkv'], packed['wo'], packed['bo'],
      packed['w1'], packed['b1'], packed['w2'], packed['b2'])


# ---------------------------------- parameter init / pack -------------------------------
def _lin(key, din, dout):
    return jax.random.normal(key, (din, dout), jnp.float32) * 0.02


def _init_attn(key, d):
    ks = jax.random.split(key, 4)
    z = jnp.zeros((1, d), jnp.float32)
    return {'wq': _lin(ks[0], d, d), 'bq': z, 'wk': _lin(ks[1], d, d), 'bk': z,
            'wv': _lin(ks[2], d, d), 'bv': z, 'wo': _lin(ks[3], d, d), 'bo': z}


def _init_ln(d):
    return {'g': jnp.ones((1, d), jnp.float32), 'b': jnp.zeros((1, d), jnp.float32)}


def _init_ffn(key, d, f):
    k1, k2 = jax.random.split(key)
    return {'w1': _lin(k1, d, f), 'b1': jnp.zeros((1, f), jnp.float32),
            'w2': _lin(k2, f, d), 'b2': jnp.zeros((1, d), jnp.float32)}


def init_params(key):
    keys = jax.random.split(key, 2 + 3 * ATTN_LAYERS)
    params = {
        'self_pos': jax.random.normal(keys[0], (MAX_POS, D_MODEL), jnp.float32) * 0.02,
        'causal_pos': jax.random.normal(keys[1], (MAX_POS, D_MODEL), jnp.float32) * 0.02,
        'first_self_norm': _init_ln(D_MODEL),
        'first_causal_norm': _init_ln(D_MODEL),
        'self_layers': [], 'causal_layers': [], 'merge_layers': [],
    }
    for i in range(ATTN_LAYERS):
        ka, kb, kc = keys[2 + 3 * i: 2 + 3 * (i + 1)]
        ka1, ka2 = jax.random.split(ka)
        params['self_layers'].append({'attn': _init_attn(ka1, D_MODEL),
                                      'ln1': _init_ln(D_MODEL),
                                      'mlp': _init_ffn(ka2, D_MODEL, FF_DIM),
                                      'ln2': _init_ln(D_MODEL)})
        params['causal_layers'].append({'attn': _init_attn(kb, D_MODEL),
                                        'ln1': _init_ln(D_MODEL)})
        kc1, kc2 = jax.random.split(kc)
        params['merge_layers'].append({'attn': _init_attn(kc1, D_MODEL),
                                       'ln1': _init_ln(D_MODEL),
                                       'mlp': _init_ffn(kc2, D_MODEL, FF_DIM),
                                       'ln2': _init_ln(D_MODEL)})
    return params


def pack_params(params):
    """Stack per-layer weights into a handful of operand arrays for the fused kernel.
    Packs Q|K|V into [D, 3D] and folds the 1/sqrt(head_dim) scale into wq/bq."""
    scale = (D_MODEL // NUM_HEADS) ** -0.5

    attn_blocks = ([lp['attn'] for lp in params['self_layers']]
                   + [lp['attn'] for lp in params['causal_layers']]
                   + [lp['attn'] for lp in params['merge_layers']])
    wqkv, bqkv, wo, bo = [], [], [], []
    for a in attn_blocks:
        wqkv.append(jnp.concatenate([a['wq'] * scale, a['wk'], a['wv']], axis=1))
        bqkv.append(jnp.concatenate([a['bq'] * scale, a['bk'], a['bv']], axis=1))
        wo.append(a['wo'])
        bo.append(a['bo'])

    ffn_blocks = ([lp['mlp'] for lp in params['self_layers']]
                  + [lp['mlp'] for lp in params['merge_layers']])

    ln_blocks = [params['first_self_norm'], params['first_causal_norm']]
    for lp in params['self_layers']:
        ln_blocks += [lp['ln1'], lp['ln2']]
    for lp in params['causal_layers']:
        ln_blocks += [lp['ln1']]
    for lp in params['merge_layers']:
        ln_blocks += [lp['ln1'], lp['ln2']]

    return {
        'self_pos': params['self_pos'], 'causal_pos': params['causal_pos'],
        'wqkv': jnp.stack(wqkv), 'bqkv': jnp.stack(bqkv),
        'wo': jnp.stack(wo), 'bo': jnp.stack(bo),
        'w1': jnp.stack([f['w1'] for f in ffn_blocks]),
        'b1': jnp.stack([f['b1'] for f in ffn_blocks]),
        'w2': jnp.stack([f['w2'] for f in ffn_blocks]),
        'b2': jnp.stack([f['b2'] for f in ffn_blocks]),
        'ln_g': jnp.stack([l['g'] for l in ln_blocks]),
        'ln_b': jnp.stack([l['b'] for l in ln_blocks]),
    }


# ------------------------------------------ main -----------------------------------------
if __name__ == "__main__":
    key = jax.random.PRNGKey(0)
    k_params, kx, ky = jax.random.split(key, 3)
    params = init_params(k_params)
    packed = pack_params(params)

    B, Sx, Sy = 2, 8, 8
    x_embed = jax.random.normal(kx, (B, Sx, D_MODEL), jnp.float32)
    y_embed = jax.random.normal(ky, (B, Sy, D_MODEL), jnp.float32)

    out = jax.jit(separative_coordinate_attention)(packed, x_embed, y_embed)
    out = jax.block_until_ready(out)

    assert out.shape == (B, Sy, D_MODEL)
    assert bool(jnp.all(jnp.isfinite(out)))
    print("KERNEL_OK")
</pallas_src>

<mosaic_0001>
module attributes {stable_mosaic.version = 11 : i64} {
  func.func @_fused_forward_kernel(%arg0: i32, %arg1: memref<1x8x32xf32, #tpu.memory_space<vmem>>, %arg2: memref<1x8x32xf32, #tpu.memory_space<vmem>>, %arg3: memref<8x32xf32, #tpu.memory_space<vmem>>, %arg4: memref<8x32xf32, #tpu.memory_space<vmem>>, %arg5: memref<12x1x32xf32, #tpu.memory_space<vmem>>, %arg6: memref<12x1x32xf32, #tpu.memory_space<vmem>>, %arg7: memref<6x32x96xf32, #tpu.memory_space<vmem>>, %arg8: memref<6x1x96xf32, #tpu.memory_space<vmem>>, %arg9: memref<6x32x32xf32, #tpu.memory_space<vmem>>, %arg10: memref<6x1x32xf32, #tpu.memory_space<vmem>>, %arg11: memref<4x32x64xf32, #tpu.memory_space<vmem>>, %arg12: memref<4x1x64xf32, #tpu.memory_space<vmem>>, %arg13: memref<4x64x32xf32, #tpu.memory_space<vmem>>, %arg14: memref<4x1x32xf32, #tpu.memory_space<vmem>>, %arg15: memref<1x8x32xf32, #tpu.memory_space<vmem>>) attributes {dimension_semantics = [#tpu.dimension_semantics<parallel>], iteration_bounds = array<i64: 2>, scalar_prefetch = 0 : i64, scratch_operands = 0 : i64, tpu.core_type = #tpu.core_type<tc>, window_params = [{transform_indices = @transform_0, window_bounds = array<i64: 1, 8, 32>}, {transform_indices = @transform_1, window_bounds = array<i64: 1, 8, 32>}, {pipeline_mode = #tpu.pipeline_mode<synchronous>, transform_indices = @transform_2, window_bounds = array<i64: 8, 32>}, {pipeline_mode = #tpu.pipeline_mode<synchronous>, transform_indices = @transform_3, window_bounds = array<i64: 8, 32>}, {pipeline_mode = #tpu.pipeline_mode<synchronous>, transform_indices = @transform_4, window_bounds = array<i64: 12, 1, 32>}, {pipeline_mode = #tpu.pipeline_mode<synchronous>, transform_indices = @transform_5, window_bounds = array<i64: 12, 1, 32>}, {pipeline_mode = #tpu.pipeline_mode<synchronous>, transform_indices = @transform_6, window_bounds = array<i64: 6, 32, 96>}, {pipeline_mode = #tpu.pipeline_mode<synchronous>, transform_indices = @transform_7, window_bounds = array<i64: 6, 1, 96>}, {pipeline_mode = #tpu.pipeline_mode<synchronous>, transform_indices = @transform_8, window_bounds = array<i64: 6, 32, 32>}, {pipeline_mode = #tpu.pipeline_mode<synchronous>, transform_indices = @transform_9, window_bounds = array<i64: 6, 1, 32>}, {pipeline_mode = #tpu.pipeline_mode<synchronous>, transform_indices = @transform_10, window_bounds = array<i64: 4, 32, 64>}, {pipeline_mode = #tpu.pipeline_mode<synchronous>, transform_indices = @transform_11, window_bounds = array<i64: 4, 1, 64>}, {pipeline_mode = #tpu.pipeline_mode<synchronous>, transform_indices = @transform_12, window_bounds = array<i64: 4, 64, 32>}, {pipeline_mode = #tpu.pipeline_mode<synchronous>, transform_indices = @transform_13, window_bounds = array<i64: 4, 1, 32>}, {transform_indices = @transform_14, window_bounds = array<i64: 1, 8, 32>}]} {
    %c0 = arith.constant 0 : index
    %c0_0 = arith.constant 0 : index
    %c0_1 = arith.constant 0 : index
    %0 = vector.load %arg1[%c0, %c0_0, %c0_1] : memref<1x8x32xf32, #tpu.memory_space<vmem>>, vector<1x8x32xf32>
    %1 = vector.shape_cast %0 : vector<1x8x32xf32> to vector<8x32xf32>
    %c0_2 = arith.constant 0 : index
    %c0_3 = arith.constant 0 : index
    %2 = vector.load %arg3[%c0_2, %c0_3] : memref<8x32xf32, #tpu.memory_space<vmem>>, vector<8x32xf32>
    %3 = arith.addf %1, %2 : vector<8x32xf32>
    %cst = arith.constant dense<0.000000e+00> : vector<8xf32>
    %4 = vector.multi_reduction <add>, %3, %cst [1] : vector<8x32xf32> to vector<8xf32>
    %5 = vector.shape_cast %4 : vector<8xf32> to vector<8x1xf32>
    %cst_4 = arith.constant 3.200000e+01 : f32
    %6 = vector.broadcast %cst_4 : f32 to vector<8x1xf32>
    %7 = arith.divf %5, %6 : vector<8x1xf32>
    %8 = vector.broadcast %7 : vector<8x1xf32> to vector<8x32xf32>
    %9 = arith.subf %3, %8 : vector<8x32xf32>
    %10 = arith.mulf %9, %9 : vector<8x32xf32>
    %cst_5 = arith.constant dense<0.000000e+00> : vector<8xf32>
    %11 = vector.multi_reduction <add>, %10, %cst_5 [1] : vector<8x32xf32> to vector<8xf32>
    %12 = vector.shape_cast %11 : vector<8xf32> to vector<8x1xf32>
    %cst_6 = arith.constant 3.200000e+01 : f32
    %13 = vector.broadcast %cst_6 : f32 to vector<8x1xf32>
    %14 = arith.divf %12, %13 : vector<8x1xf32>
    %15 = vector.broadcast %7 : vector<8x1xf32> to vector<8x32xf32>
    %16 = arith.subf %3, %15 : vector<8x32xf32>
    %cst_7 = arith.constant 9.99999974E-6 : f32
    %17 = vector.broadcast %cst_7 : f32 to vector<8x1xf32>
    %18 = arith.addf %14, %17 : vector<8x1xf32>
    %19 = math.rsqrt %18 : vector<8x1xf32>
    %20 = vector.broadcast %19 : vector<8x1xf32> to vector<8x32xf32>
    %21 = arith.mulf %16, %20 : vector<8x32xf32>
    %c0_8 = arith.constant 0 : index
    %c0_9 = arith.constant 0 : index
    %c0_10 = arith.constant 0 : index
    %22 = vector.load %arg5[%c0_8, %c0_9, %c0_10] : memref<12x1x32xf32, #tpu.memory_space<vmem>>, vector<1x1x32xf32>
    %23 = vector.shape_cast %22 : vector<1x1x32xf32> to vector<1x32xf32>
    %24 = vector.broadcast %23 : vector<1x32xf32> to vector<8x32xf32>
    %25 = arith.mulf %21, %24 : vector<8x32xf32>
    %c0_11 = arith.constant 0 : index
    %c0_12 = arith.constant 0 : index
    %c0_13 = arith.constant 0 : index
    %26 = vector.load %arg6[%c0_11, %c0_12, %c0_13] : memref<12x1x32xf32, #tpu.memory_space<vmem>>, vector<1x1x32xf32>
    %27 = vector.shape_cast %26 : vector<1x1x32xf32> to vector<1x32xf32>
    %28 = vector.broadcast %27 : vector<1x32xf32> to vector<8x32xf32>
    %29 = arith.addf %25, %28 : vector<8x32xf32>
    %c0_14 = arith.constant 0 : index
    %c0_15 = arith.constant 0 : index
    %c0_16 = arith.constant 0 : index
    %30 = vector.load %arg2[%c0_14, %c0_15, %c0_16] : memref<1x8x32xf32, #tpu.memory_space<vmem>>, vector<1x8x32xf32>
    %31 = vector.shape_cast %30 : vector<1x8x32xf32> to vector<8x32xf32>
    %c0_17 = arith.constant 0 : index
    %c0_18 = arith.constant 0 : index
    %32 = vector.load %arg4[%c0_17, %c0_18] : memref<8x32xf32, #tpu.memory_space<vmem>>, vector<8x32xf32>
    %33 = arith.addf %31, %32 : vector<8x32xf32>
    %cst_19 = arith.constant dense<0.000000e+00> : vector<8xf32>
    %34 = vector.multi_reduction <add>, %33, %cst_19 [1] : vector<8x32xf32> to vector<8xf32>
    %35 = vector.shape_cast %34 : vector<8xf32> to vector<8x1xf32>
    %cst_20 = arith.constant 3.200000e+01 : f32
    %36 = vector.broadcast %cst_20 : f32 to vector<8x1xf32>
    %37 = arith.divf %35, %36 : vector<8x1xf32>
    %38 = vector.broadcast %37 : vector<8x1xf32> to vector<8x32xf32>
    %39 = arith.subf %33, %38 : vector<8x32xf32>
    %40 = arith.mulf %39, %39 : vector<8x32xf32>
    %cst_21 = arith.constant dense<0.000000e+00> : vector<8xf32>
    %41 = vector.multi_reduction <add>, %40, %cst_21 [1] : vector<8x32xf32> to vector<8xf32>
    %42 = vector.shape_cast %41 : vector<8xf32> to vector<8x1xf32>
    %cst_22 = arith.constant 3.200000e+01 : f32
    %43 = vector.broadcast %cst_22 : f32 to vector<8x1xf32>
    %44 = arith.divf %42, %43 : vector<8x1xf32>
    %45 = vector.broadcast %37 : vector<8x1xf32> to vector<8x32xf32>
    %46 = arith.subf %33, %45 : vector<8x32xf32>
    %cst_23 = arith.constant 9.99999974E-6 : f32
    %47 = vector.broadcast %cst_23 : f32 to vector<8x1xf32>
    %48 = arith.addf %44, %47 : vector<8x1xf32>
    %49 = math.rsqrt %48 : vector<8x1xf32>
    %50 = vector.broadcast %49 : vector<8x1xf32> to vector<8x32xf32>
    %51 = arith.mulf %46, %50 : vector<8x32xf32>
    %c1 = arith.constant 1 : index
    %c0_24 = arith.constant 0 : index
    %c0_25 = arith.constant 0 : index
    %52 = vector.load %arg5[%c1, %c0_24, %c0_25] : memref<12x1x32xf32, #tpu.memory_space<vmem>>, vector<1x1x32xf32>
    %53 = vector.shape_cast %52 : vector<1x1x32xf32> to vector<1x32xf32>
    %54 = vector.broadcast %53 : vector<1x32xf32> to vector<8x32xf32>
    %55 = arith.mulf %51, %54 : vector<8x32xf32>
    %c1_26 = arith.constant 1 : index
    %c0_27 = arith.constant 0 : index
    %c0_28 = arith.constant 0 : index
    %56 = vector.load %arg6[%c1_26, %c0_27, %c0_28] : memref<12x1x32xf32, #tpu.memory_space<vmem>>, vector<1x1x32xf32>
    %57 = vector.shape_cast %56 : vector<1x1x32xf32> to vector<1x32xf32>
    %58 = vector.broadcast %57 : vector<1x32xf32> to vector<8x32xf32>
    %59 = arith.addf %55, %58 : vector<8x32xf32>
    %60 = tpu.iota {dimensions = array<i32: 0>} : vector<8x8xi32>
    %61 = tpu.iota {dimensions = array<i32: 1>} : vector<8x8xi32>
    %62 = arith.cmpi sge, %60, %61 : vector<8x8xi32>
    %cst_29 = arith.constant 0.000000e+00 : f32
    %cst_30 = arith.constant -3.40282347E+38 : f32
    %63 = vector.broadcast %cst_29 : f32 to vector<8x8xf32>
    %64 = vector.broadcast %cst_30 : f32 to vector<8x8xf32>
    %65 = arith.select %62, %63, %64 : vector<8x8xi1>, vector<8x8xf32>
    %c0_31 = arith.constant 0 : index
    %c0_32 = arith.constant 0 : index
    %c0_33 = arith.constant 0 : index
    %66 = vector.load %arg7[%c0_31, %c0_32, %c0_33] : memref<6x32x96xf32, #tpu.memory_space<vmem>>, vector<1x32x96xf32>
    %67 = vector.shape_cast %66 : vector<1x32x96xf32> to vector<32x96xf32>
    %c0_34 = arith.constant 0 : index
    %c0_35 = arith.constant 0 : index
    %c0_36 = arith.constant 0 : index
    %68 = vector.load %arg8[%c0_34, %c0_35, %c0_36] : memref<6x1x96xf32, #tpu.memory_space<vmem>>, vector<1x1x96xf32>
    %69 = vector.shape_cast %68 : vector<1x1x96xf32> to vector<1x96xf32>
    %cst_37 = arith.constant dense<0.000000e+00> : vector<8x96xf32>
    %70 = tpu.matmul %29, %67, %cst_37 {dimension_numbers = #tpu.dot_dimension_numbers<[1], [0], [0], [1], [0, 0, 1, 1], [], []>} : vector<8x32xf32>, vector<32x96xf32>, vector<8x96xf32> -> vector<8x96xf32>
    %71 = vector.broadcast %69 : vector<1x96xf32> to vector<8x96xf32>
    %72 = arith.addf %70, %71 : vector<8x96xf32>
    %73 = vector.extract_strided_slice %72 {offsets = [0, 0], sizes = [8, 32], strides = [1, 1]} : vector<8x96xf32> to vector<8x32xf32>
    %74 = vector.extract_strided_slice %72 {offsets = [0, 32], sizes = [8, 32], strides = [1, 1]} : vector<8x96xf32> to vector<8x32xf32>
    %75 = vector.extract_strided_slice %72 {offsets = [0, 64], sizes = [8, 32], strides = [1, 1]} : vector<8x96xf32> to vector<8x32xf32>
    %c0_38 = arith.constant 0 : index
    %c0_39 = arith.constant 0 : index
    %c0_40 = arith.constant 0 : index
    %76 = vector.load %arg9[%c0_38, %c0_39, %c0_40] : memref<6x32x32xf32, #tpu.memory_space<vmem>>, vector<1x32x32xf32>
    %77 = vector.shape_cast %76 : vector<1x32x32xf32> to vector<32x32xf32>
    %78 = vector.extract_strided_slice %73 {offsets = [0, 0], sizes = [8, 8], strides = [1, 1]} : vector<8x32xf32> to vector<8x8xf32>
    %79 = vector.extract_strided_slice %74 {offsets = [0, 0], sizes = [8, 8], strides = [1, 1]} : vector<8x32xf32> to vector<8x8xf32>
    %80 = vector.extract_strided_slice %75 {offsets = [0, 0], sizes = [8, 8], strides = [1, 1]} : vector<8x32xf32> to vector<8x8xf32>
    %cst_41 = arith.constant dense<0.000000e+00> : vector<8x8xf32>
    %81 = tpu.matmul %78, %79, %cst_41 {dimension_numbers = #tpu.dot_dimension_numbers<[1], [1], [0], [0], [0, 0, 1, 0], [], []>} : vector<8x8xf32>, vector<8x8xf32>, vector<8x8xf32> -> vector<8x8xf32>
    %cst_42 = arith.constant dense<0xFF800000> : vector<8xf32>
    %82 = vector.multi_reduction <maximumf>, %81, %cst_42 [1] : vector<8x8xf32> to vector<8xf32>
    %83 = vector.shape_cast %82 : vector<8xf32> to vector<8x1xf32>
    %84 = vector.broadcast %83 : vector<8x1xf32> to vector<8x8xf32>
    %85 = arith.subf %81, %84 : vector<8x8xf32>
    %86 = math.exp %85 : vector<8x8xf32>
    %cst_43 = arith.constant dense<0.000000e+00> : vector<8xf32>
    %87 = vector.multi_reduction <add>, %86, %cst_43 [1] : vector<8x8xf32> to vector<8xf32>
    %88 = vector.shape_cast %87 : vector<8xf32> to vector<8x1xf32>
    %89 = tpu.reciprocal %88 {approx = true} : vector<8x1xf32> -> vector<8x1xf32>
    %90 = vector.broadcast %89 : vector<8x1xf32> to vector<8x8xf32>
    %91 = arith.mulf %86, %90 : vector<8x8xf32>
    %cst_44 = arith.constant dense<0.000000e+00> : vector<8x8xf32>
    %92 = tpu.matmul %91, %80, %cst_44 {dimension_numbers = #tpu.dot_dimension_numbers<[1], [0], [0], [1], [0, 0, 1, 1], [], []>} : vector<8x8xf32>, vector<8x8xf32>, vector<8x8xf32> -> vector<8x8xf32>
    %93 = vector.extract_strided_slice %77 {offsets = [0, 0], sizes = [8, 32], strides = [1, 1]} : vector<32x32xf32> to vector<8x32xf32>
    %cst_45 = arith.constant dense<0.000000e+00> : vector<8x32xf32>
    %94 = tpu.matmul %92, %93, %cst_45 {dimension_numbers = #tpu.dot_dimension_numbers<[1], [0], [0], [1], [0, 0, 1, 1], [], []>} : vector<8x8xf32>, vector<8x32xf32>, vector<8x32xf32> -> vector<8x32xf32>
    %95 = vector.extract_strided_slice %73 {offsets = [0, 8], sizes = [8, 8], strides = [1, 1]} : vector<8x32xf32> to vector<8x8xf32>
    %96 = vector.extract_strided_slice %74 {offsets = [0, 8], sizes = [8, 8], strides = [1, 1]} : vector<8x32xf32> to vector<8x8xf32>
    %97 = vector.extract_strided_slice %75 {offsets = [0, 8], sizes = [8, 8], strides = [1, 1]} : vector<8x32xf32> to vector<8x8xf32>
    %cst_46 = arith.constant dense<0.000000e+00> : vector<8x8xf32>
    %98 = tpu.matmul %95, %96, %cst_46 {dimension_numbers = #tpu.dot_dimension_numbers<[1], [1], [0], [0], [0, 0, 1, 0], [], []>} : vector<8x8xf32>, vector<8x8xf32>, vector<8x8xf32> -> vector<8x8xf32>
    %cst_47 = arith.constant dense<0xFF800000> : vector<8xf32>
    %99 = vector.multi_reduction <maximumf>, %98, %cst_47 [1] : vector<8x8xf32> to vector<8xf32>
    %100 = vector.shape_cast %99 : vector<8xf32> to vector<8x1xf32>
    %101 = vector.broadcast %100 : vector<8x1xf32> to vector<8x8xf32>
    %102 = arith.subf %98, %101 : vector<8x8xf32>
    %103 = math.exp %102 : vector<8x8xf32>
    %cst_48 = arith.constant dense<0.000000e+00> : vector<8xf32>
    %104 = vector.multi_reduction <add>, %103, %cst_48 [1] : vector<8x8xf32> to vector<8xf32>
    %105 = vector.shape_cast %104 : vector<8xf32> to vector<8x1xf32>
    %106 = tpu.reciprocal %105 {approx = true} : vector<8x1xf32> -> vector<8x1xf32>
    %107 = vector.broadcast %106 : vector<8x1xf32> to vector<8x8xf32>
    %108 = arith.mulf %103, %107 : vector<8x8xf32>
    %cst_49 = arith.constant dense<0.000000e+00> : vector<8x8xf32>
    %109 = tpu.matmul %108, %97, %cst_49 {dimension_numbers = #tpu.dot_dimension_numbers<[1], [0], [0], [1], [0, 0, 1, 1], [], []>} : vector<8x8xf32>, vector<8x8xf32>, vector<8x8xf32> -> vector<8x8xf32>
    %110 = vector.extract_strided_slice %77 {offsets = [8, 0], sizes = [8, 32], strides = [1, 1]} : vector<32x32xf32> to vector<8x32xf32>
    %cst_50 = arith.constant dense<0.000000e+00> : vector<8x32xf32>
    %111 = tpu.matmul %109, %110, %cst_50 {dimension_numbers = #tpu.dot_dimension_numbers<[1], [0], [0], [1], [0, 0, 1, 1], [], []>} : vector<8x8xf32>, vector<8x32xf32>, vector<8x32xf32> -> vector<8x32xf32>
    %112 = arith.addf %94, %111 : vector<8x32xf32>
    %113 = vector.extract_strided_slice %73 {offsets = [0, 16], sizes = [8, 8], strides = [1, 1]} : vector<8x32xf32> to vector<8x8xf32>
    %114 = vector.extract_strided_slice %74 {offsets = [0, 16], sizes = [8, 8], strides = [1, 1]} : vector<8x32xf32> to vector<8x8xf32>
    %115 = vector.extract_strided_slice %75 {offsets = [0, 16], sizes = [8, 8], strides = [1, 1]} : vector<8x32xf32> to vector<8x8xf32>
    %cst_51 = arith.constant dense<0.000000e+00> : vector<8x8xf32>
    %116 = tpu.matmul %113, %114, %cst_51 {dimension_numbers = #tpu.dot_dimension_numbers<[1], [1], [0], [0], [0, 0, 1, 0], [], []>} : vector<8x8xf32>, vector<8x8xf32>, vector<8x8xf32> -> vector<8x8xf32>
    %cst_52 = arith.constant dense<0xFF800000> : vector<8xf32>
    %117 = vector.multi_reduction <maximumf>, %116, %cst_52 [1] : vector<8x8xf32> to vector<8xf32>
    %118 = vector.shape_cast %117 : vector<8xf32> to vector<8x1xf32>
    %119 = vector.broadcast %118 : vector<8x1xf32> to vector<8x8xf32>
    %120 = arith.subf %116, %119 : vector<8x8xf32>
    %121 = math.exp %120 : vector<8x8xf32>
    %cst_53 = arith.constant dense<0.000000e+00> : vector<8xf32>
    %122 = vector.multi_reduction <add>, %121, %cst_53 [1] : vector<8x8xf32> to vector<8xf32>
    %123 = vector.shape_cast %122 : vector<8xf32> to vector<8x1xf32>
    %124 = tpu.reciprocal %123 {approx = true} : vector<8x1xf32> -> vector<8x1xf32>
    %125 = vector.broadcast %124 : vector<8x1xf32> to vector<8x8xf32>
    %126 = arith.mulf %121, %125 : vector<8x8xf32>
    %cst_54 = arith.constant dense<0.000000e+00> : vector<8x8xf32>
    %127 = tpu.matmul %126, %115, %cst_54 {dimension_numbers = #tpu.dot_dimension_numbers<[1], [0], [0], [1], [0, 0, 1, 1], [], []>} : vector<8x8xf32>, vector<8x8xf32>, vector<8x8xf32> -> vector<8x8xf32>
    %128 = vector.extract_strided_slice %77 {offsets = [16, 0], sizes = [8, 32], strides = [1, 1]} : vector<32x32xf32> to vector<8x32xf32>
    %cst_55 = arith.constant dense<0.000000e+00> : vector<8x32xf32>
    %129 = tpu.matmul %127, %128, %cst_55 {dimension_numbers = #tpu.dot_dimension_numbers<[1], [0], [0], [1], [0, 0, 1, 1], [], []>} : vector<8x8xf32>, vector<8x32xf32>, vector<8x32xf32> -> vector<8x32xf32>
    %130 = arith.addf %112, %129 : vector<8x32xf32>
    %131 = vector.extract_strided_slice %73 {offsets = [0, 24], sizes = [8, 8], strides = [1, 1]} : vector<8x32xf32> to vector<8x8xf32>
    %132 = vector.extract_strided_slice %74 {offsets = [0, 24], sizes = [8, 8], strides = [1, 1]} : vector<8x32xf32> to vector<8x8xf32>
    %133 = vector.extract_strided_slice %75 {offsets = [0, 24], sizes = [8, 8], strides = [1, 1]} : vector<8x32xf32> to vector<8x8xf32>
    %cst_56 = arith.constant dense<0.000000e+00> : vector<8x8xf32>
    %134 = tpu.matmul %131, %132, %cst_56 {dimension_numbers = #tpu.dot_dimension_numbers<[1], [1], [0], [0], [0, 0, 1, 0], [], []>} : vector<8x8xf32>, vector<8x8xf32>, vector<8x8xf32> -> vector<8x8xf32>
    %cst_57 = arith.constant dense<0xFF800000> : vector<8xf32>
    %135 = vector.multi_reduction <maximumf>, %134, %cst_57 [1] : vector<8x8xf32> to vector<8xf32>
    %136 = vector.shape_cast %135 : vector<8xf32> to vector<8x1xf32>
    %137 = vector.broadcast %136 : vector<8x1xf32> to vector<8x8xf32>
    %138 = arith.subf %134, %137 : vector<8x8xf32>
    %139 = math.exp %138 : vector<8x8xf32>
    %cst_58 = arith.constant dense<0.000000e+00> : vector<8xf32>
    %140 = vector.multi_reduction <add>, %139, %cst_58 [1] : vector<8x8xf32> to vector<8xf32>
    %141 = vector.shape_cast %140 : vector<8xf32> to vector<8x1xf32>
    %142 = tpu.reciprocal %141 {approx = true} : vector<8x1xf32> -> vector<8x1xf32>
    %143 = vector.broadcast %142 : vector<8x1xf32> to vector<8x8xf32>
    %144 = arith.mulf %139, %143 : vector<8x8xf32>
    %cst_59 = arith.constant dense<0.000000e+00> : vector<8x8xf32>
    %145 = tpu.matmul %144, %133, %cst_59 {dimension_numbers = #tpu.dot_dimension_numbers<[1], [0], [0], [1], [0, 0, 1, 1], [], []>} : vector<8x8xf32>, vector<8x8xf32>, vector<8x8xf32> -> vector<8x8xf32>
    %146 = vector.extract_strided_slice %77 {offsets = [24, 0], sizes = [8, 32], strides = [1, 1]} : vector<32x32xf32> to vector<8x32xf32>
    %cst_60 = arith.constant dense<0.000000e+00> : vector<8x32xf32>
    %147 = tpu.matmul %145, %146, %cst_60 {dimension_numbers = #tpu.dot_dimension_numbers<[1], [0], [0], [1], [0, 0, 1, 1], [], []>} : vector<8x8xf32>, vector<8x32xf32>, vector<8x32xf32> -> vector<8x32xf32>
    %148 = arith.addf %130, %147 : vector<8x32xf32>
    %c0_61 = arith.constant 0 : index
    %c0_62 = arith.constant 0 : index
    %c0_63 = arith.constant 0 : index
    %149 = vector.load %arg10[%c0_61, %c0_62, %c0_63] : memref<6x1x32xf32, #tpu.memory_space<vmem>>, vector<1x1x32xf32>
    %150 = vector.shape_cast %149 : vector<1x1x32xf32> to vector<1x32xf32>
    %151 = vector.broadcast %150 : vector<1x32xf32> to vector<8x32xf32>
    %152 = arith.addf %148, %151 : vector<8x32xf32>
    %153 = arith.addf %29, %152 : vector<8x32xf32>
    %cst_64 = arith.constant dense<0.000000e+00> : vector<8xf32>
    %154 = vector.multi_reduction <add>, %153, %cst_64 [1] : vector<8x32xf32> to vector<8xf32>
    %155 = vector.shape_cast %154 : vector<8xf32> to vector<8x1xf32>
    %cst_65 = arith.constant 3.200000e+01 : f32
    %156 = vector.broadcast %cst_65 : f32 to vector<8x1xf32>
    %157 = arith.divf %155, %156 : vector<8x1xf32>
    %158 = vector.broadcast %157 : vector<8x1xf32> to vector<8x32xf32>
    %159 = arith.subf %153, %158 : vector<8x32xf32>
    %160 = arith.mulf %159, %159 : vector<8x32xf32>
    %cst_66 = arith.constant dense<0.000000e+00> : vector<8xf32>
    %161 = vector.multi_reduction <add>, %160, %cst_66 [1] : vector<8x32xf32> to vector<8xf32>
    %162 = vector.shape_cast %161 : vector<8xf32> to vector<8x1xf32>
    %cst_67 = arith.constant 3.200000e+01 : f32
    %163 = vector.broadcast %cst_67 : f32 to vector<8x1xf32>
    %164 = arith.divf %162, %163 : vector<8x1xf32>
    %165 = vector.broadcast %157 : vector<8x1xf32> to vector<8x32xf32>
    %166 = arith.subf %153, %165 : vector<8x32xf32>
    %cst_68 = arith.constant 9.99999974E-6 : f32
    %167 = vector.broadcast %cst_68 : f32 to vector<8x1xf32>
    %168 = arith.addf %164, %167 : vector<8x1xf32>
    %169 = math.rsqrt %168 : vector<8x1xf32>
    %170 = vector.broadcast %169 : vector<8x1xf32> to vector<8x32xf32>
    %171 = arith.mulf %166, %170 : vector<8x32xf32>
    %c2 = arith.constant 2 : index
    %c0_69 = arith.constant 0 : index
    %c0_70 = arith.constant 0 : index
    %172 = vector.load %arg5[%c2, %c0_69, %c0_70] : memref<12x1x32xf32, #tpu.memory_space<vmem>>, vector<1x1x32xf32>
    %173 = vector.shape_cast %172 : vector<1x1x32xf32> to vector<1x32xf32>
    %174 = vector.broadcast %173 : vector<1x32xf32> to vector<8x32xf32>
    %175 = arith.mulf %171, %174 : vector<8x32xf32>
    %c2_71 = arith.constant 2 : index
    %c0_72 = arith.constant 0 : index
    %c0_73 = arith.constant 0 : index
    %176 = vector.load %arg6[%c2_71, %c0_72, %c0_73] : memref<12x1x32xf32, #tpu.memory_space<vmem>>, vector<1x1x32xf32>
    %177 = vector.shape_cast %176 : vector<1x1x32xf32> to vector<1x32xf32>
    %178 = vector.broadcast %177 : vector<1x32xf32> to vector<8x32xf32>
    %179 = arith.addf %175, %178 : vector<8x32xf32>
    %c0_74 = arith.constant 0 : index
    %c0_75 = arith.constant 0 : index
    %c0_76 = arith.constant 0 : index
    %180 = vector.load %arg11[%c0_74, %c0_75, %c0_76] : memref<4x32x64xf32, #tpu.memory_space<vmem>>, vector<1x32x64xf32>
    %181 = vector.shape_cast %180 : vector<1x32x64xf32> to vector<32x64xf32>
    %cst_77 = arith.constant dense<0.000000e+00> : vector<8x64xf32>
    %182 = tpu.matmul %179, %181, %cst_77 {dimension_numbers = #tpu.dot_dimension_numbers<[1], [0], [0], [1], [0, 0, 1, 1], [], []>} : vector<8x32xf32>, vector<32x64xf32>, vector<8x64xf32> -> vector<8x64xf32>
    %c0_78 = arith.constant 0 : index
    %c0_79 = arith.constant 0 : index
    %c0_80 = arith.constant 0 : index
    %183 = vector.load %arg12[%c0_78, %c0_79, %c0_80] : memref<4x1x64xf32, #tpu.memory_space<vmem>>, vector<1x1x64xf32>
    %184 = vector.shape_cast %183 : vector<1x1x64xf32> to vector<1x64xf32>
    %185 = vector.broadcast %184 : vector<1x64xf32> to vector<8x64xf32>
    %186 = arith.addf %182, %185 : vector<8x64xf32>
    %cst_81 = arith.constant 5.000000e-01 : f32
    %187 = vector.broadcast %cst_81 : f32 to vector<8x64xf32>
    %188 = arith.mulf %187, %186 : vector<8x64xf32>
    %cst_82 = arith.constant 0.707106769 : f32
    %189 = vector.broadcast %cst_82 : f32 to vector<8x64xf32>
    %190 = arith.mulf %186, %189 : vector<8x64xf32>
    %cst_83 = arith.constant -4.000000e+00 : f32
    %cst_84 = arith.constant 4.000000e+00 : f32
    %191 = vector.broadcast %cst_83 : f32 to vector<8x64xf32>
    %192 = arith.maximumf %191, %190 : vector<8x64xf32>
    %193 = vector.broadcast %cst_84 : f32 to vector<8x64xf32>
    %194 = arith.minimumf %193, %192 : vector<8x64xf32>
    %195 = arith.mulf %194, %194 : vector<8x64xf32>
    %cst_85 = arith.constant -2.72614237E-10 : f32
    %196 = vector.broadcast %cst_85 : f32 to vector<8x64xf32>
    %197 = arith.mulf %195, %196 : vector<8x64xf32>
    %cst_86 = arith.constant 2.77068146E-8 : f32
    %198 = vector.broadcast %cst_86 : f32 to vector<8x64xf32>
    %199 = arith.addf %197, %198 : vector<8x64xf32>
    %200 = arith.mulf %195, %199 : vector<8x64xf32>
    %cst_87 = arith.constant -2.10102394E-6 : f32
    %201 = vector.broadcast %cst_87 : f32 to vector<8x64xf32>
    %202 = arith.addf %200, %201 : vector<8x64xf32>
    %203 = arith.mulf %195, %202 : vector<8x64xf32>
    %cst_88 = arith.constant -5.69250624E-5 : f32
    %204 = vector.broadcast %cst_88 : f32 to vector<8x64xf32>
    %205 = arith.addf %203, %204 : vector<8x64xf32>
    %206 = arith.mulf %195, %205 : vector<8x64xf32>
    %cst_89 = arith.constant -7.34990637E-4 : f32
    %207 = vector.broadcast %cst_89 : f32 to vector<8x64xf32>
    %208 = arith.addf %206, %207 : vector<8x64xf32>
    %209 = arith.mulf %195, %208 : vector<8x64xf32>
    %cst_90 = arith.constant -2.954600e-03 : f32
    %210 = vector.broadcast %cst_90 : f32 to vector<8x64xf32>
    %211 = arith.addf %209, %210 : vector<8x64xf32>
    %212 = arith.mulf %195, %211 : vector<8x64xf32>
    %cst_91 = arith.constant -0.0160960332 : f32
    %213 = vector.broadcast %cst_91 : f32 to vector<8x64xf32>
    %214 = arith.addf %212, %213 : vector<8x64xf32>
    %215 = arith.mulf %194, %214 : vector<8x64xf32>
    %cst_92 = arith.constant -1.45660715E-5 : f32
    %216 = vector.broadcast %cst_92 : f32 to vector<8x64xf32>
    %217 = arith.mulf %195, %216 : vector<8x64xf32>
    %cst_93 = arith.constant -2.13374049E-4 : f32
    %218 = vector.broadcast %cst_93 : f32 to vector<8x64xf32>
    %219 = arith.addf %217, %218 : vector<8x64xf32>
    %220 = arith.mulf %195, %219 : vector<8x64xf32>
    %cst_94 = arith.constant -0.00168282702 : f32
    %221 = vector.broadcast %cst_94 : f32 to vector<8x64xf32>
    %222 = arith.addf %220, %221 : vector<8x64xf32>
    %223 = arith.mulf %195, %222 : vector<8x64xf32>
    %cst_95 = arith.constant -0.00737332925 : f32
    %224 = vector.broadcast %cst_95 : f32 to vector<8x64xf32>
    %225 = arith.addf %223, %224 : vector<8x64xf32>
    %226 = arith.mulf %195, %225 : vector<8x64xf32>
    %cst_96 = arith.constant -0.0142647391 : f32
    %227 = vector.broadcast %cst_96 : f32 to vector<8x64xf32>
    %228 = arith.addf %226, %227 : vector<8x64xf32>
    %229 = arith.divf %215, %228 : vector<8x64xf32>
    %cst_97 = arith.constant 1.000000e+00 : f32
    %230 = vector.broadcast %cst_97 : f32 to vector<8x64xf32>
    %231 = arith.addf %230, %229 : vector<8x64xf32>
    %232 = arith.mulf %188, %231 : vector<8x64xf32>
    %c0_98 = arith.constant 0 : index
    %c0_99 = arith.constant 0 : index
    %c0_100 = arith.constant 0 : index
    %233 = vector.load %arg13[%c0_98, %c0_99, %c0_100] : memref<4x64x32xf32, #tpu.memory_space<vmem>>, vector<1x64x32xf32>
    %234 = vector.shape_cast %233 : vector<1x64x32xf32> to vector<64x32xf32>
    %cst_101 = arith.constant dense<0.000000e+00> : vector<8x32xf32>
    %235 = tpu.matmul %232, %234, %cst_101 {dimension_numbers = #tpu.dot_dimension_numbers<[1], [0], [0], [1], [0, 0, 1, 1], [], []>} : vector<8x64xf32>, vector<64x32xf32>, vector<8x32xf32> -> vector<8x32xf32>
    %c0_102 = arith.constant 0 : index
    %c0_103 = arith.constant 0 : index
    %c0_104 = arith.constant 0 : index
    %236 = vector.load %arg14[%c0_102, %c0_103, %c0_104] : memref<4x1x32xf32, #tpu.memory_space<vmem>>, vector<1x1x32xf32>
    %237 = vector.shape_cast %236 : vector<1x1x32xf32> to vector<1x32xf32>
    %238 = vector.broadcast %237 : vector<1x32xf32> to vector<8x32xf32>
    %239 = arith.addf %235, %238 : vector<8x32xf32>
    %240 = arith.addf %179, %239 : vector<8x32xf32>
    %cst_105 = arith.constant dense<0.000000e+00> : vector<8xf32>
    %241 = vector.multi_reduction <add>, %240, %cst_105 [1] : vector<8x32xf32> to vector<8xf32>
    %242 = vector.shape_cast %241 : vector<8xf32> to vector<8x1xf32>
    %cst_106 = arith.constant 3.200000e+01 : f32
    %243 = vector.broadcast %cst_106 : f32 to vector<8x1xf32>
    %244 = arith.divf %242, %243 : vector<8x1xf32>
    %245 = vector.broadcast %244 : vector<8x1xf32> to vector<8x32xf32>
    %246 = arith.subf %240, %245 : vector<8x32xf32>
    %247 = arith.mulf %246, %246 : vector<8x32xf32>
    %cst_107 = arith.constant dense<0.000000e+00> : vector<8xf32>
    %248 = vector.multi_reduction <add>, %247, %cst_107 [1] : vector<8x32xf32> to vector<8xf32>
    %249 = vector.shape_cast %248 : vector<8xf32> to vector<8x1xf32>
    %cst_108 = arith.constant 3.200000e+01 : f32
    %250 = vector.broadcast %cst_108 : f32 to vector<8x1xf32>
    %251 = arith.divf %249, %250 : vector<8x1xf32>
    %252 = vector.broadcast %244 : vector<8x1xf32> to vector<8x32xf32>
    %253 = arith.subf %240, %252 : vector<8x32xf32>
    %cst_109 = arith.constant 9.99999974E-6 : f32
    %254 = vector.broadcast %cst_109 : f32 to vector<8x1xf32>
    %255 = arith.addf %251, %254 : vector<8x1xf32>
    %256 = math.rsqrt %255 : vector<8x1xf32>
    %257 = vector.broadcast %256 : vector<8x1xf32> to vector<8x32xf32>
    %258 = arith.mulf %253, %257 : vector<8x32xf32>
    %c3 = arith.constant 3 : index
    %c0_110 = arith.constant 0 : index
    %c0_111 = arith.constant 0 : index
    %259 = vector.load %arg5[%c3, %c0_110, %c0_111] : memref<12x1x32xf32, #tpu.memory_space<vmem>>, vector<1x1x32xf32>
    %260 = vector.shape_cast %259 : vector<1x1x32xf32> to vector<1x32xf32>
    %261 = vector.broadcast %260 : vector<1x32xf32> to vector<8x32xf32>
    %262 = arith.mulf %258, %261 : vector<8x32xf32>
    %c3_112 = arith.constant 3 : index
    %c0_113 = arith.constant 0 : index
    %c0_114 = arith.constant 0 : index
    %263 = vector.load %arg6[%c3_112, %c0_113, %c0_114] : memref<12x1x32xf32, #tpu.memory_space<vmem>>, vector<1x1x32xf32>
    %264 = vector.shape_cast %263 : vector<1x1x32xf32> to vector<1x32xf32>
    %265 = vector.broadcast %264 : vector<1x32xf32> to vector<8x32xf32>
    %266 = arith.addf %262, %265 : vector<8x32xf32>
    %c1_115 = arith.constant 1 : index
    %c0_116 = arith.constant 0 : index
    %c0_117 = arith.constant 0 : index
    %267 = vector.load %arg7[%c1_115, %c0_116, %c0_117] : memref<6x32x96xf32, #tpu.memory_space<vmem>>, vector<1x32x96xf32>
    %268 = vector.shape_cast %267 : vector<1x32x96xf32> to vector<32x96xf32>
    %c1_118 = arith.constant 1 : index
    %c0_119 = arith.constant 0 : index
    %c0_120 = arith.constant 0 : index
    %269 = vector.load %arg8[%c1_118, %c0_119, %c0_120] : memref<6x1x96xf32, #tpu.memory_space<vmem>>, vector<1x1x96xf32>
    %270 = vector.shape_cast %269 : vector<1x1x96xf32> to vector<1x96xf32>
    %cst_121 = arith.constant dense<0.000000e+00> : vector<8x96xf32>
    %271 = tpu.matmul %266, %268, %cst_121 {dimension_numbers = #tpu.dot_dimension_numbers<[1], [0], [0], [1], [0, 0, 1, 1], [], []>} : vector<8x32xf32>, vector<32x96xf32>, vector<8x96xf32> -> vector<8x96xf32>
    %272 = vector.broadcast %270 : vector<1x96xf32> to vector<8x96xf32>
    %273 = arith.addf %271, %272 : vector<8x96xf32>
    %274 = vector.extract_strided_slice %273 {offsets = [0, 0], sizes = [8, 32], strides = [1, 1]} : vector<8x96xf32> to vector<8x32xf32>
    %275 = vector.extract_strided_slice %273 {offsets = [0, 32], sizes = [8, 32], strides = [1, 1]} : vector<8x96xf32> to vector<8x32xf32>
    %276 = vector.extract_strided_slice %273 {offsets = [0, 64], sizes = [8, 32], strides = [1, 1]} : vector<8x96xf32> to vector<8x32xf32>
    %c1_122 = arith.constant 1 : index
    %c0_123 = arith.constant 0 : index
    %c0_124 = arith.constant 0 : index
    %277 = vector.load %arg9[%c1_122, %c0_123, %c0_124] : memref<6x32x32xf32, #tpu.memory_space<vmem>>, vector<1x32x32xf32>
    %278 = vector.shape_cast %277 : vector<1x32x32xf32> to vector<32x32xf32>
    %279 = vector.extract_strided_slice %274 {offsets = [0, 0], sizes = [8, 8], strides = [1, 1]} : vector<8x32xf32> to vector<8x8xf32>
    %280 = vector.extract_strided_slice %275 {offsets = [0, 0], sizes = [8, 8], strides = [1, 1]} : vector<8x32xf32> to vector<8x8xf32>
    %281 = vector.extract_strided_slice %276 {offsets = [0, 0], sizes = [8, 8], strides = [1, 1]} : vector<8x32xf32> to vector<8x8xf32>
    %cst_125 = arith.constant dense<0.000000e+00> : vector<8x8xf32>
    %282 = tpu.matmul %279, %280, %cst_125 {dimension_numbers = #tpu.dot_dimension_numbers<[1], [1], [0], [0], [0, 0, 1, 0], [], []>} : vector<8x8xf32>, vector<8x8xf32>, vector<8x8xf32> -> vector<8x8xf32>
    %cst_126 = arith.constant dense<0xFF800000> : vector<8xf32>
    %283 = vector.multi_reduction <maximumf>, %282, %cst_126 [1] : vector<8x8xf32> to vector<8xf32>
    %284 = vector.shape_cast %283 : vector<8xf32> to vector<8x1xf32>
    %285 = vector.broadcast %284 : vector<8x1xf32> to vector<8x8xf32>
    %286 = arith.subf %282, %285 : vector<8x8xf32>
    %287 = math.exp %286 : vector<8x8xf32>
    %cst_127 = arith.constant dense<0.000000e+00> : vector<8xf32>
    %288 = vector.multi_reduction <add>, %287, %cst_127 [1] : vector<8x8xf32> to vector<8xf32>
    %289 = vector.shape_cast %288 : vector<8xf32> to vector<8x1xf32>
    %290 = tpu.reciprocal %289 {approx = true} : vector<8x1xf32> -> vector<8x1xf32>
    %291 = vector.broadcast %290 : vector<8x1xf32> to vector<8x8xf32>
    %292 = arith.mulf %287, %291 : vector<8x8xf32>
    %cst_128 = arith.constant dense<0.000000e+00> : vector<8x8xf32>
    %293 = tpu.matmul %292, %281, %cst_128 {dimension_numbers = #tpu.dot_dimension_numbers<[1], [0], [0], [1], [0, 0, 1, 1], [], []>} : vector<8x8xf32>, vector<8x8xf32>, vector<8x8xf32> -> vector<8x8xf32>
    %294 = vector.extract_strided_slice %278 {offsets = [0, 0], sizes = [8, 32], strides = [1, 1]} : vector<32x32xf32> to vector<8x32xf32>
    %cst_129 = arith.constant dense<0.000000e+00> : vector<8x32xf32>
    %295 = tpu.matmul %293, %294, %cst_129 {dimension_numbers = #tpu.dot_dimension_numbers<[1], [0], [0], [1], [0, 0, 1, 1], [], []>} : vector<8x8xf32>, vector<8x32xf32>, vector<8x32xf32> -> vector<8x32xf32>
    %296 = vector.extract_strided_slice %274 {offsets = [0, 8], sizes = [8, 8], strides = [1, 1]} : vector<8x32xf32> to vector<8x8xf32>
    %297 = vector.extract_strided_slice %275 {offsets = [0, 8], sizes = [8, 8], strides = [1, 1]} : vector<8x32xf32> to vector<8x8xf32>
    %298 = vector.extract_strided_slice %276 {offsets = [0, 8], sizes = [8, 8], strides = [1, 1]} : vector<8x32xf32> to vector<8x8xf32>
    %cst_130 = arith.constant dense<0.000000e+00> : vector<8x8xf32>
    %299 = tpu.matmul %296, %297, %cst_130 {dimension_numbers = #tpu.dot_dimension_numbers<[1], [1], [0], [0], [0, 0, 1, 0], [], []>} : vector<8x8xf32>, vector<8x8xf32>, vector<8x8xf32> -> vector<8x8xf32>
    %cst_131 = arith.constant dense<0xFF800000> : vector<8xf32>
    %300 = vector.multi_reduction <maximumf>, %299, %cst_131 [1] : vector<8x8xf32> to vector<8xf32>
    %301 = vector.shape_cast %300 : vector<8xf32> to vector<8x1xf32>
    %302 = vector.broadcast %301 : vector<8x1xf32> to vector<8x8xf32>
    %303 = arith.subf %299, %302 : vector<8x8xf32>
    %304 = math.exp %303 : vector<8x8xf32>
    %cst_132 = arith.constant dense<0.000000e+00> : vector<8xf32>
    %305 = vector.multi_reduction <add>, %304, %cst_132 [1] : vector<8x8xf32> to vector<8xf32>
    %306 = vector.shape_cast %305 : vector<8xf32> to vector<8x1xf32>
    %307 = tpu.reciprocal %306 {approx = true} : vector<8x1xf32> -> vector<8x1xf32>
    %308 = vector.broadcast %307 : vector<8x1xf32> to vector<8x8xf32>
    %309 = arith.mulf %304, %308 : vector<8x8xf32>
    %cst_133 = arith.constant dense<0.000000e+00> : vector<8x8xf32>
    %310 = tpu.matmul %309, %298, %cst_133 {dimension_numbers = #tpu.dot_dimension_numbers<[1], [0], [0], [1], [0, 0, 1, 1], [], []>} : vector<8x8xf32>, vector<8x8xf32>, vector<8x8xf32> -> vector<8x8xf32>
    %311 = vector.extract_strided_slice %278 {offsets = [8, 0], sizes = [8, 32], strides = [1, 1]} : vector<32x32xf32> to vector<8x32xf32>
    %cst_134 = arith.constant dense<0.000000e+00> : vector<8x32xf32>
    %312 = tpu.matmul %310, %311, %cst_134 {dimension_numbers = #tpu.dot_dimension_numbers<[1], [0], [0], [1], [0, 0, 1, 1], [], []>} : vector<8x8xf32>, vector<8x32xf32>, vector<8x32xf32> -> vector<8x32xf32>
    %313 = arith.addf %295, %312 : vector<8x32xf32>
    %314 = vector.extract_strided_slice %274 {offsets = [0, 16], sizes = [8, 8], strides = [1, 1]} : vector<8x32xf32> to vector<8x8xf32>
    %315 = vector.extract_strided_slice %275 {offsets = [0, 16], sizes = [8, 8], strides = [1, 1]} : vector<8x32xf32> to vector<8x8xf32>
    %316 = vector.extract_strided_slice %276 {offsets = [0, 16], sizes = [8, 8], strides = [1, 1]} : vector<8x32xf32> to vector<8x8xf32>
    %cst_135 = arith.constant dense<0.000000e+00> : vector<8x8xf32>
    %317 = tpu.matmul %314, %315, %cst_135 {dimension_numbers = #tpu.dot_dimension_numbers<[1], [1], [0], [0], [0, 0, 1, 0], [], []>} : vector<8x8xf32>, vector<8x8xf32>, vector<8x8xf32> -> vector<8x8xf32>
    %cst_136 = arith.constant dense<0xFF800000> : vector<8xf32>
    %318 = vector.multi_reduction <maximumf>, %317, %cst_136 [1] : vector<8x8xf32> to vector<8xf32>
    %319 = vector.shape_cast %318 : vector<8xf32> to vector<8x1xf32>
    %320 = vector.broadcast %319 : vector<8x1xf32> to vector<8x8xf32>
    %321 = arith.subf %317, %320 : vector<8x8xf32>
    %322 = math.exp %321 : vector<8x8xf32>
    %cst_137 = arith.constant dense<0.000000e+00> : vector<8xf32>
    %323 = vector.multi_reduction <add>, %322, %cst_137 [1] : vector<8x8xf32> to vector<8xf32>
    %324 = vector.shape_cast %323 : vector<8xf32> to vector<8x1xf32>
    %325 = tpu.reciprocal %324 {approx = true} : vector<8x1xf32> -> vector<8x1xf32>
    %326 = vector.broadcast %325 : vector<8x1xf32> to vector<8x8xf32>
    %327 = arith.mulf %322, %326 : vector<8x8xf32>
    %cst_138 = arith.constant dense<0.000000e+00> : vector<8x8xf32>
    %328 = tpu.matmul %327, %316, %cst_138 {dimension_numbers = #tpu.dot_dimension_numbers<[1], [0], [0], [1], [0, 0, 1, 1], [], []>} : vector<8x8xf32>, vector<8x8xf32>, vector<8x8xf32> -> vector<8x8xf32>
    %329 = vector.extract_strided_slice %278 {offsets = [16, 0], sizes = [8, 32], strides = [1, 1]} : vector<32x32xf32> to vector<8x32xf32>
    %cst_139 = arith.constant dense<0.000000e+00> : vector<8x32xf32>
    %330 = tpu.matmul %328, %329, %cst_139 {dimension_numbers = #tpu.dot_dimension_numbers<[1], [0], [0], [1], [0, 0, 1, 1], [], []>} : vector<8x8xf32>, vector<8x32xf32>, vector<8x32xf32> -> vector<8x32xf32>
    %331 = arith.addf %313, %330 : vector<8x32xf32>
    %332 = vector.extract_strided_slice %274 {offsets = [0, 24], sizes = [8, 8], strides = [1, 1]} : vector<8x32xf32> to vector<8x8xf32>
    %333 = vector.extract_strided_slice %275 {offsets = [0, 24], sizes = [8, 8], strides = [1, 1]} : vector<8x32xf32> to vector<8x8xf32>
    %334 = vector.extract_strided_slice %276 {offsets = [0, 24], sizes = [8, 8], strides = [1, 1]} : vector<8x32xf32> to vector<8x8xf32>
    %cst_140 = arith.constant dense<0.000000e+00> : vector<8x8xf32>
    %335 = tpu.matmul %332, %333, %cst_140 {dimension_numbers = #tpu.dot_dimension_numbers<[1], [1], [0], [0], [0, 0, 1, 0], [], []>} : vector<8x8xf32>, vector<8x8xf32>, vector<8x8xf32> -> vector<8x8xf32>
    %cst_141 = arith.constant dense<0xFF800000> : vector<8xf32>
    %336 = vector.multi_reduction <maximumf>, %335, %cst_141 [1] : vector<8x8xf32> to vector<8xf32>
    %337 = vector.shape_cast %336 : vector<8xf32> to vector<8x1xf32>
    %338 = vector.broadcast %337 : vector<8x1xf32> to vector<8x8xf32>
    %339 = arith.subf %335, %338 : vector<8x8xf32>
    %340 = math.exp %339 : vector<8x8xf32>
    %cst_142 = arith.constant dense<0.000000e+00> : vector<8xf32>
    %341 = vector.multi_reduction <add>, %340, %cst_142 [1] : vector<8x8xf32> to vector<8xf32>
    %342 = vector.shape_cast %341 : vector<8xf32> to vector<8x1xf32>
    %343 = tpu.reciprocal %342 {approx = true} : vector<8x1xf32> -> vector<8x1xf32>
    %344 = vector.broadcast %343 : vector<8x1xf32> to vector<8x8xf32>
    %345 = arith.mulf %340, %344 : vector<8x8xf32>
    %cst_143 = arith.constant dense<0.000000e+00> : vector<8x8xf32>
    %346 = tpu.matmul %345, %334, %cst_143 {dimension_numbers = #tpu.dot_dimension_numbers<[1], [0], [0], [1], [0, 0, 1, 1], [], []>} : vector<8x8xf32>, vector<8x8xf32>, vector<8x8xf32> -> vector<8x8xf32>
    %347 = vector.extract_strided_slice %278 {offsets = [24, 0], sizes = [8, 32], strides = [1, 1]} : vector<32x32xf32> to vector<8x32xf32>
    %cst_144 = arith.constant dense<0.000000e+00> : vector<8x32xf32>
    %348 = tpu.matmul %346, %347, %cst_144 {dimension_numbers = #tpu.dot_dimension_numbers<[1], [0], [0], [1], [0, 0, 1, 1], [], []>} : vector<8x8xf32>, vector<8x32xf32>, vector<8x32xf32> -> vector<8x32xf32>
    %349 = arith.addf %331, %348 : vector<8x32xf32>
    %c1_145 = arith.constant 1 : index
    %c0_146 = arith.constant 0 : index
    %c0_147 = arith.constant 0 : index
    %350 = vector.load %arg10[%c1_145, %c0_146, %c0_147] : memref<6x1x32xf32, #tpu.memory_space<vmem>>, vector<1x1x32xf32>
    %351 = vector.shape_cast %350 : vector<1x1x32xf32> to vector<1x32xf32>
    %352 = vector.broadcast %351 : vector<1x32xf32> to vector<8x32xf32>
    %353 = arith.addf %349, %352 : vector<8x32xf32>
    %354 = arith.addf %266, %353 : vector<8x32xf32>
    %cst_148 = arith.constant dense<0.000000e+00> : vector<8xf32>
    %355 = vector.multi_reduction <add>, %354, %cst_148 [1] : vector<8x32xf32> to vector<8xf32>
    %356 = vector.shape_cast %355 : vector<8xf32> to vector<8x1xf32>
    %cst_149 = arith.constant 3.200000e+01 : f32
    %357 = vector.broadcast %cst_149 : f32 to vector<8x1xf32>
    %358 = arith.divf %356, %357 : vector<8x1xf32>
    %359 = vector.broadcast %358 : vector<8x1xf32> to vector<8x32xf32>
    %360 = arith.subf %354, %359 : vector<8x32xf32>
    %361 = arith.mulf %360, %360 : vector<8x32xf32>
    %cst_150 = arith.constant dense<0.000000e+00> : vector<8xf32>
    %362 = vector.multi_reduction <add>, %361, %cst_150 [1] : vector<8x32xf32> to vector<8xf32>
    %363 = vector.shape_cast %362 : vector<8xf32> to vector<8x1xf32>
    %cst_151 = arith.constant 3.200000e+01 : f32
    %364 = vector.broadcast %cst_151 : f32 to vector<8x1xf32>
    %365 = arith.divf %363, %364 : vector<8x1xf32>
    %366 = vector.broadcast %358 : vector<8x1xf32> to vector<8x32xf32>
    %367 = arith.subf %354, %366 : vector<8x32xf32>
    %cst_152 = arith.constant 9.99999974E-6 : f32
    %368 = vector.broadcast %cst_152 : f32 to vector<8x1xf32>
    %369 = arith.addf %365, %368 : vector<8x1xf32>
    %370 = math.rsqrt %369 : vector<8x1xf32>
    %371 = vector.broadcast %370 : vector<8x1xf32> to vector<8x32xf32>
    %372 = arith.mulf %367, %371 : vector<8x32xf32>
    %c4 = arith.constant 4 : index
    %c0_153 = arith.constant 0 : index
    %c0_154 = arith.constant 0 : index
    %373 = vector.load %arg5[%c4, %c0_153, %c0_154] : memref<12x1x32xf32, #tpu.memory_space<vmem>>, vector<1x1x32xf32>
    %374 = vector.shape_cast %373 : vector<1x1x32xf32> to vector<1x32xf32>
    %375 = vector.broadcast %374 : vector<1x32xf32> to vector<8x32xf32>
    %376 = arith.mulf %372, %375 : vector<8x32xf32>
    %c4_155 = arith.constant 4 : index
    %c0_156 = arith.constant 0 : index
    %c0_157 = arith.constant 0 : index
    %377 = vector.load %arg6[%c4_155, %c0_156, %c0_157] : memref<12x1x32xf32, #tpu.memory_space<vmem>>, vector<1x1x32xf32>
    %378 = vector.shape_cast %377 : vector<1x1x32xf32> to vector<1x32xf32>
    %379 = vector.broadcast %378 : vector<1x32xf32> to vector<8x32xf32>
    %380 = arith.addf %376, %379 : vector<8x32xf32>
    %c1_158 = arith.constant 1 : index
    %c0_159 = arith.constant 0 : index
    %c0_160 = arith.constant 0 : index
    %381 = vector.load %arg11[%c1_158, %c0_159, %c0_160] : memref<4x32x64xf32, #tpu.memory_space<vmem>>, vector<1x32x64xf32>
    %382 = vector.shape_cast %381 : vector<1x32x64xf32> to vector<32x64xf32>
    %cst_161 = arith.constant dense<0.000000e+00> : vector<8x64xf32>
    %383 = tpu.matmul %380, %382, %cst_161 {dimension_numbers = #tpu.dot_dimension_numbers<[1], [0], [0], [1], [0, 0, 1, 1], [], []>} : vector<8x32xf32>, vector<32x64xf32>, vector<8x64xf32> -> vector<8x64xf32>
    %c1_162 = arith.constant 1 : index
    %c0_163 = arith.constant 0 : index
    %c0_164 = arith.constant 0 : index
    %384 = vector.load %arg12[%c1_162, %c0_163, %c0_164] : memref<4x1x64xf32, #tpu.memory_space<vmem>>, vector<1x1x64xf32>
    %385 = vector.shape_cast %384 : vector<1x1x64xf32> to vector<1x64xf32>
    %386 = vector.broadcast %385 : vector<1x64xf32> to vector<8x64xf32>
    %387 = arith.addf %383, %386 : vector<8x64xf32>
    %cst_165 = arith.constant 5.000000e-01 : f32
    %388 = vector.broadcast %cst_165 : f32 to vector<8x64xf32>
    %389 = arith.mulf %388, %387 : vector<8x64xf32>
    %cst_166 = arith.constant 0.707106769 : f32
    %390 = vector.broadcast %cst_166 : f32 to vector<8x64xf32>
    %391 = arith.mulf %387, %390 : vector<8x64xf32>
    %cst_167 = arith.constant -4.000000e+00 : f32
    %cst_168 = arith.constant 4.000000e+00 : f32
    %392 = vector.broadcast %cst_167 : f32 to vector<8x64xf32>
    %393 = arith.maximumf %392, %391 : vector<8x64xf32>
    %394 = vector.broadcast %cst_168 : f32 to vector<8x64xf32>
    %395 = arith.minimumf %394, %393 : vector<8x64xf32>
    %396 = arith.mulf %395, %395 : vector<8x64xf32>
    %cst_169 = arith.constant -2.72614237E-10 : f32
    %397 = vector.broadcast %cst_169 : f32 to vector<8x64xf32>
    %398 = arith.mulf %396, %397 : vector<8x64xf32>
    %cst_170 = arith.constant 2.77068146E-8 : f32
    %399 = vector.broadcast %cst_170 : f32 to vector<8x64xf32>
    %400 = arith.addf %398, %399 : vector<8x64xf32>
    %401 = arith.mulf %396, %400 : vector<8x64xf32>
    %cst_171 = arith.constant -2.10102394E-6 : f32
    %402 = vector.broadcast %cst_171 : f32 to vector<8x64xf32>
    %403 = arith.addf %401, %402 : vector<8x64xf32>
    %404 = arith.mulf %396, %403 : vector<8x64xf32>
    %cst_172 = arith.constant -5.69250624E-5 : f32
    %405 = vector.broadcast %cst_172 : f32 to vector<8x64xf32>
    %406 = arith.addf %404, %405 : vector<8x64xf32>
    %407 = arith.mulf %396, %406 : vector<8x64xf32>
    %cst_173 = arith.constant -7.34990637E-4 : f32
    %408 = vector.broadcast %cst_173 : f32 to vector<8x64xf32>
    %409 = arith.addf %407, %408 : vector<8x64xf32>
    %410 = arith.mulf %396, %409 : vector<8x64xf32>
    %cst_174 = arith.constant -2.954600e-03 : f32
    %411 = vector.broadcast %cst_174 : f32 to vector<8x64xf32>
    %412 = arith.addf %410, %411 : vector<8x64xf32>
    %413 = arith.mulf %396, %412 : vector<8x64xf32>
    %cst_175 = arith.constant -0.0160960332 : f32
    %414 = vector.broadcast %cst_175 : f32 to vector<8x64xf32>
    %415 = arith.addf %413, %414 : vector<8x64xf32>
    %416 = arith.mulf %395, %415 : vector<8x64xf32>
    %cst_176 = arith.constant -1.45660715E-5 : f32
    %417 = vector.broadcast %cst_176 : f32 to vector<8x64xf32>
    %418 = arith.mulf %396, %417 : vector<8x64xf32>
    %cst_177 = arith.constant -2.13374049E-4 : f32
    %419 = vector.broadcast %cst_177 : f32 to vector<8x64xf32>
    %420 = arith.addf %418, %419 : vector<8x64xf32>
    %421 = arith.mulf %396, %420 : vector<8x64xf32>
    %cst_178 = arith.constant -0.00168282702 : f32
    %422 = vector.broadcast %cst_178 : f32 to vector<8x64xf32>
    %423 = arith.addf %421, %422 : vector<8x64xf32>
    %424 = arith.mulf %396, %423 : vector<8x64xf32>
    %cst_179 = arith.constant -0.00737332925 : f32
    %425 = vector.broadcast %cst_179 : f32 to vector<8x64xf32>
    %426 = arith.addf %424, %425 : vector<8x64xf32>
    %427 = arith.mulf %396, %426 : vector<8x64xf32>
    %cst_180 = arith.constant -0.0142647391 : f32
    %428 = vector.broadcast %cst_180 : f32 to vector<8x64xf32>
    %429 = arith.addf %427, %428 : vector<8x64xf32>
    %430 = arith.divf %416, %429 : vector<8x64xf32>
    %cst_181 = arith.constant 1.000000e+00 : f32
    %431 = vector.broadcast %cst_181 : f32 to vector<8x64xf32>
    %432 = arith.addf %431, %430 : vector<8x64xf32>
    %433 = arith.mulf %389, %432 : vector<8x64xf32>
    %c1_182 = arith.constant 1 : index
    %c0_183 = arith.constant 0 : index
    %c0_184 = arith.constant 0 : index
    %434 = vector.load %arg13[%c1_182, %c0_183, %c0_184] : memref<4x64x32xf32, #tpu.memory_space<vmem>>, vector<1x64x32xf32>
    %435 = vector.shape_cast %434 : vector<1x64x32xf32> to vector<64x32xf32>
    %cst_185 = arith.constant dense<0.000000e+00> : vector<8x32xf32>
    %436 = tpu.matmul %433, %435, %cst_185 {dimension_numbers = #tpu.dot_dimension_numbers<[1], [0], [0], [1], [0, 0, 1, 1], [], []>} : vector<8x64xf32>, vector<64x32xf32>, vector<8x32xf32> -> vector<8x32xf32>
    %c1_186 = arith.constant 1 : index
    %c0_187 = arith.constant 0 : index
    %c0_188 = arith.constant 0 : index
    %437 = vector.load %arg14[%c1_186, %c0_187, %c0_188] : memref<4x1x32xf32, #tpu.memory_space<vmem>>, vector<1x1x32xf32>
    %438 = vector.shape_cast %437 : vector<1x1x32xf32> to vector<1x32xf32>
    %439 = vector.broadcast %438 : vector<1x32xf32> to vector<8x32xf32>
    %440 = arith.addf %436, %439 : vector<8x32xf32>
    %441 = arith.addf %380, %440 : vector<8x32xf32>
    %cst_189 = arith.constant dense<0.000000e+00> : vector<8xf32>
    %442 = vector.multi_reduction <add>, %441, %cst_189 [1] : vector<8x32xf32> to vector<8xf32>
    %443 = vector.shape_cast %442 : vector<8xf32> to vector<8x1xf32>
    %cst_190 = arith.constant 3.200000e+01 : f32
    %444 = vector.broadcast %cst_190 : f32 to vector<8x1xf32>
    %445 = arith.divf %443, %444 : vector<8x1xf32>
    %446 = vector.broadcast %445 : vector<8x1xf32> to vector<8x32xf32>
    %447 = arith.subf %441, %446 : vector<8x32xf32>
    %448 = arith.mulf %447, %447 : vector<8x32xf32>
    %cst_191 = arith.constant dense<0.000000e+00> : vector<8xf32>
    %449 = vector.multi_reduction <add>, %448, %cst_191 [1] : vector<8x32xf32> to vector<8xf32>
    %450 = vector.shape_cast %449 : vector<8xf32> to vector<8x1xf32>
    %cst_192 = arith.constant 3.200000e+01 : f32
    %451 = vector.broadcast %cst_192 : f32 to vector<8x1xf32>
    %452 = arith.divf %450, %451 : vector<8x1xf32>
    %453 = vector.broadcast %445 : vector<8x1xf32> to vector<8x32xf32>
    %454 = arith.subf %441, %453 : vector<8x32xf32>
    %cst_193 = arith.constant 9.99999974E-6 : f32
    %455 = vector.broadcast %cst_193 : f32 to vector<8x1xf32>
    %456 = arith.addf %452, %455 : vector<8x1xf32>
    %457 = math.rsqrt %456 : vector<8x1xf32>
    %458 = vector.broadcast %457 : vector<8x1xf32> to vector<8x32xf32>
    %459 = arith.mulf %454, %458 : vector<8x32xf32>
    %c5 = arith.constant 5 : index
    %c0_194 = arith.constant 0 : index
    %c0_195 = arith.constant 0 : index
    %460 = vector.load %arg5[%c5, %c0_194, %c0_195] : memref<12x1x32xf32, #tpu.memory_space<vmem>>, vector<1x1x32xf32>
    %461 = vector.shape_cast %460 : vector<1x1x32xf32> to vector<1x32xf32>
    %462 = vector.broadcast %461 : vector<1x32xf32> to vector<8x32xf32>
    %463 = arith.mulf %459, %462 : vector<8x32xf32>
    %c5_196 = arith.constant 5 : index
    %c0_197 = arith.constant 0 : index
    %c0_198 = arith.constant 0 : index
    %464 = vector.load %arg6[%c5_196, %c0_197, %c0_198] : memref<12x1x32xf32, #tpu.memory_space<vmem>>, vector<1x1x32xf32>
    %465 = vector.shape_cast %464 : vector<1x1x32xf32> to vector<1x32xf32>
    %466 = vector.broadcast %465 : vector<1x32xf32> to vector<8x32xf32>
    %467 = arith.addf %463, %466 : vector<8x32xf32>
    %c2_199 = arith.constant 2 : index
    %c0_200 = arith.constant 0 : index
    %c0_201 = arith.constant 0 : index
    %468 = vector.load %arg7[%c2_199, %c0_200, %c0_201] : memref<6x32x96xf32, #tpu.memory_space<vmem>>, vector<1x32x96xf32>
    %469 = vector.shape_cast %468 : vector<1x32x96xf32> to vector<32x96xf32>
    %c2_202 = arith.constant 2 : index
    %c0_203 = arith.constant 0 : index
    %c0_204 = arith.constant 0 : index
    %470 = vector.load %arg8[%c2_202, %c0_203, %c0_204] : memref<6x1x96xf32, #tpu.memory_space<vmem>>, vector<1x1x96xf32>
    %471 = vector.shape_cast %470 : vector<1x1x96xf32> to vector<1x96xf32>
    %cst_205 = arith.constant dense<0.000000e+00> : vector<8x96xf32>
    %472 = tpu.matmul %59, %469, %cst_205 {dimension_numbers = #tpu.dot_dimension_numbers<[1], [0], [0], [1], [0, 0, 1, 1], [], []>} : vector<8x32xf32>, vector<32x96xf32>, vector<8x96xf32> -> vector<8x96xf32>
    %473 = vector.broadcast %471 : vector<1x96xf32> to vector<8x96xf32>
    %474 = arith.addf %472, %473 : vector<8x96xf32>
    %475 = vector.extract_strided_slice %474 {offsets = [0, 0], sizes = [8, 32], strides = [1, 1]} : vector<8x96xf32> to vector<8x32xf32>
    %476 = vector.extract_strided_slice %474 {offsets = [0, 32], sizes = [8, 32], strides = [1, 1]} : vector<8x96xf32> to vector<8x32xf32>
    %477 = vector.extract_strided_slice %474 {offsets = [0, 64], sizes = [8, 32], strides = [1, 1]} : vector<8x96xf32> to vector<8x32xf32>
    %c2_206 = arith.constant 2 : index
    %c0_207 = arith.constant 0 : index
    %c0_208 = arith.constant 0 : index
    %478 = vector.load %arg9[%c2_206, %c0_207, %c0_208] : memref<6x32x32xf32, #tpu.memory_space<vmem>>, vector<1x32x32xf32>
    %479 = vector.shape_cast %478 : vector<1x32x32xf32> to vector<32x32xf32>
    %480 = vector.extract_strided_slice %475 {offsets = [0, 0], sizes = [8, 8], strides = [1, 1]} : vector<8x32xf32> to vector<8x8xf32>
    %481 = vector.extract_strided_slice %476 {offsets = [0, 0], sizes = [8, 8], strides = [1, 1]} : vector<8x32xf32> to vector<8x8xf32>
    %482 = vector.extract_strided_slice %477 {offsets = [0, 0], sizes = [8, 8], strides = [1, 1]} : vector<8x32xf32> to vector<8x8xf32>
    %cst_209 = arith.constant dense<0.000000e+00> : vector<8x8xf32>
    %483 = tpu.matmul %480, %481, %cst_209 {dimension_numbers = #tpu.dot_dimension_numbers<[1], [1], [0], [0], [0, 0, 1, 0], [], []>} : vector<8x8xf32>, vector<8x8xf32>, vector<8x8xf32> -> vector<8x8xf32>
    %484 = arith.addf %483, %65 : vector<8x8xf32>
    %cst_210 = arith.constant dense<0xFF800000> : vector<8xf32>
    %485 = vector.multi_reduction <maximumf>, %484, %cst_210 [1] : vector<8x8xf32> to vector<8xf32>
    %486 = vector.shape_cast %485 : vector<8xf32> to vector<8x1xf32>
    %487 = vector.broadcast %486 : vector<8x1xf32> to vector<8x8xf32>
    %488 = arith.subf %484, %487 : vector<8x8xf32>
    %489 = math.exp %488 : vector<8x8xf32>
    %cst_211 = arith.constant dense<0.000000e+00> : vector<8xf32>
    %490 = vector.multi_reduction <add>, %489, %cst_211 [1] : vector<8x8xf32> to vector<8xf32>
    %491 = vector.shape_cast %490 : vector<8xf32> to vector<8x1xf32>
    %492 = tpu.reciprocal %491 {approx = true} : vector<8x1xf32> -> vector<8x1xf32>
    %493 = vector.broadcast %492 : vector<8x1xf32> to vector<8x8xf32>
    %494 = arith.mulf %489, %493 : vector<8x8xf32>
    %cst_212 = arith.constant dense<0.000000e+00> : vector<8x8xf32>
    %495 = tpu.matmul %494, %482, %cst_212 {dimension_numbers = #tpu.dot_dimension_numbers<[1], [0], [0], [1], [0, 0, 1, 1], [], []>} : vector<8x8xf32>, vector<8x8xf32>, vector<8x8xf32> -> vector<8x8xf32>
    %496 = vector.extract_strided_slice %479 {offsets = [0, 0], sizes = [8, 32], strides = [1, 1]} : vector<32x32xf32> to vector<8x32xf32>
    %cst_213 = arith.constant dense<0.000000e+00> : vector<8x32xf32>
    %497 = tpu.matmul %495, %496, %cst_213 {dimension_numbers = #tpu.dot_dimension_numbers<[1], [0], [0], [1], [0, 0, 1, 1], [], []>} : vector<8x8xf32>, vector<8x32xf32>, vector<8x32xf32> -> vector<8x32xf32>
    %498 = vector.extract_strided_slice %475 {offsets = [0, 8], sizes = [8, 8], strides = [1, 1]} : vector<8x32xf32> to vector<8x8xf32>
    %499 = vector.extract_strided_slice %476 {offsets = [0, 8], sizes = [8, 8], strides = [1, 1]} : vector<8x32xf32> to vector<8x8xf32>
    %500 = vector.extract_strided_slice %477 {offsets = [0, 8], sizes = [8, 8], strides = [1, 1]} : vector<8x32xf32> to vector<8x8xf32>
    %cst_214 = arith.constant dense<0.000000e+00> : vector<8x8xf32>
    %501 = tpu.matmul %498, %499, %cst_214 {dimension_numbers = #tpu.dot_dimension_numbers<[1], [1], [0], [0], [0, 0, 1, 0], [], []>} : vector<8x8xf32>, vector<8x8xf32>, vector<8x8xf32> -> vector<8x8xf32>
    %502 = arith.addf %501, %65 : vector<8x8xf32>
    %cst_215 = arith.constant dense<0xFF800000> : vector<8xf32>
    %503 = vector.multi_reduction <maximumf>, %502, %cst_215 [1] : vector<8x8xf32> to vector<8xf32>
    %504 = vector.shape_cast %503 : vector<8xf32> to vector<8x1xf32>
    %505 = vector.broadcast %504 : vector<8x1xf32> to vector<8x8xf32>
    %506 = arith.subf %502, %505 : vector<8x8xf32>
    %507 = math.exp %506 : vector<8x8xf32>
    %cst_216 = arith.constant dense<0.000000e+00> : vector<8xf32>
    %508 = vector.multi_reduction <add>, %507, %cst_216 [1] : vector<8x8xf32> to vector<8xf32>
    %509 = vector.shape_cast %508 : vector<8xf32> to vector<8x1xf32>
    %510 = tpu.reciprocal %509 {approx = true} : vector<8x1xf32> -> vector<8x1xf32>
    %511 = vector.broadcast %510 : vector<8x1xf32> to vector<8x8xf32>
    %512 = arith.mulf %507, %511 : vector<8x8xf32>
    %cst_217 = arith.constant dense<0.000000e+00> : vector<8x8xf32>
    %513 = tpu.matmul %512, %500, %cst_217 {dimension_numbers = #tpu.dot_dimension_numbers<[1], [0], [0], [1], [0, 0, 1, 1], [], []>} : vector<8x8xf32>, vector<8x8xf32>, vector<8x8xf32> -> vector<8x8xf32>
    %514 = vector.extract_strided_slice %479 {offsets = [8, 0], sizes = [8, 32], strides = [1, 1]} : vector<32x32xf32> to vector<8x32xf32>
    %cst_218 = arith.constant dense<0.000000e+00> : vector<8x32xf32>
    %515 = tpu.matmul %513, %514, %cst_218 {dimension_numbers = #tpu.dot_dimension_numbers<[1], [0], [0], [1], [0, 0, 1, 1], [], []>} : vector<8x8xf32>, vector<8x32xf32>, vector<8x32xf32> -> vector<8x32xf32>
    %516 = arith.addf %497, %515 : vector<8x32xf32>
    %517 = vector.extract_strided_slice %475 {offsets = [0, 16], sizes = [8, 8], strides = [1, 1]} : vector<8x32xf32> to vector<8x8xf32>
    %518 = vector.extract_strided_slice %476 {offsets = [0, 16], sizes = [8, 8], strides = [1, 1]} : vector<8x32xf32> to vector<8x8xf32>
    %519 = vector.extract_strided_slice %477 {offsets = [0, 16], sizes = [8, 8], strides = [1, 1]} : vector<8x32xf32> to vector<8x8xf32>
    %cst_219 = arith.constant dense<0.000000e+00> : vector<8x8xf32>
    %520 = tpu.matmul %517, %518, %cst_219 {dimension_numbers = #tpu.dot_dimension_numbers<[1], [1], [0], [0], [0, 0, 1, 0], [], []>} : vector<8x8xf32>, vector<8x8xf32>, vector<8x8xf32> -> vector<8x8xf32>
    %521 = arith.addf %520, %65 : vector<8x8xf32>
    %cst_220 = arith.constant dense<0xFF800000> : vector<8xf32>
    %522 = vector.multi_reduction <maximumf>, %521, %cst_220 [1] : vector<8x8xf32> to vector<8xf32>
    %523 = vector.shape_cast %522 : vector<8xf32> to vector<8x1xf32>
    %524 = vector.broadcast %523 : vector<8x1xf32> to vector<8x8xf32>
    %525 = arith.subf %521, %524 : vector<8x8xf32>
    %526 = math.exp %525 : vector<8x8xf32>
    %cst_221 = arith.constant dense<0.000000e+00> : vector<8xf32>
    %527 = vector.multi_reduction <add>, %526, %cst_221 [1] : vector<8x8xf32> to vector<8xf32>
    %528 = vector.shape_cast %527 : vector<8xf32> to vector<8x1xf32>
    %529 = tpu.reciprocal %528 {approx = true} : vector<8x1xf32> -> vector<8x1xf32>
    %530 = vector.broadcast %529 : vector<8x1xf32> to vector<8x8xf32>
    %531 = arith.mulf %526, %530 : vector<8x8xf32>
    %cst_222 = arith.constant dense<0.000000e+00> : vector<8x8xf32>
    %532 = tpu.matmul %531, %519, %cst_222 {dimension_numbers = #tpu.dot_dimension_numbers<[1], [0], [0], [1], [0, 0, 1, 1], [], []>} : vector<8x8xf32>, vector<8x8xf32>, vector<8x8xf32> -> vector<8x8xf32>
    %533 = vector.extract_strided_slice %479 {offsets = [16, 0], sizes = [8, 32], strides = [1, 1]} : vector<32x32xf32> to vector<8x32xf32>
    %cst_223 = arith.constant dense<0.000000e+00> : vector<8x32xf32>
    %534 = tpu.matmul %532, %533, %cst_223 {dimension_numbers = #tpu.dot_dimension_numbers<[1], [0], [0], [1], [0, 0, 1, 1], [], []>} : vector<8x8xf32>, vector<8x32xf32>, vector<8x32xf32> -> vector<8x32xf32>
    %535 = arith.addf %516, %534 : vector<8x32xf32>
    %536 = vector.extract_strided_slice %475 {offsets = [0, 24], sizes = [8, 8], strides = [1, 1]} : vector<8x32xf32> to vector<8x8xf32>
    %537 = vector.extract_strided_slice %476 {offsets = [0, 24], sizes = [8, 8], strides = [1, 1]} : vector<8x32xf32> to vector<8x8xf32>
    %538 = vector.extract_strided_slice %477 {offsets = [0, 24], sizes = [8, 8], strides = [1, 1]} : vector<8x32xf32> to vector<8x8xf32>
    %cst_224 = arith.constant dense<0.000000e+00> : vector<8x8xf32>
    %539 = tpu.matmul %536, %537, %cst_224 {dimension_numbers = #tpu.dot_dimension_numbers<[1], [1], [0], [0], [0, 0, 1, 0], [], []>} : vector<8x8xf32>, vector<8x8xf32>, vector<8x8xf32> -> vector<8x8xf32>
    %540 = arith.addf %539, %65 : vector<8x8xf32>
    %cst_225 = arith.constant dense<0xFF800000> : vector<8xf32>
    %541 = vector.multi_reduction <maximumf>, %540, %cst_225 [1] : vector<8x8xf32> to vector<8xf32>
    %542 = vector.shape_cast %541 : vector<8xf32> to vector<8x1xf32>
    %543 = vector.broadcast %542 : vector<8x1xf32> to vector<8x8xf32>
    %544 = arith.subf %540, %543 : vector<8x8xf32>
    %545 = math.exp %544 : vector<8x8xf32>
    %cst_226 = arith.constant dense<0.000000e+00> : vector<8xf32>
    %546 = vector.multi_reduction <add>, %545, %cst_226 [1] : vector<8x8xf32> to vector<8xf32>
    %547 = vector.shape_cast %546 : vector<8xf32> to vector<8x1xf32>
    %548 = tpu.reciprocal %547 {approx = true} : vector<8x1xf32> -> vector<8x1xf32>
    %549 = vector.broadcast %548 : vector<8x1xf32> to vector<8x8xf32>
    %550 = arith.mulf %545, %549 : vector<8x8xf32>
    %cst_227 = arith.constant dense<0.000000e+00> : vector<8x8xf32>
    %551 = tpu.matmul %550, %538, %cst_227 {dimension_numbers = #tpu.dot_dimension_numbers<[1], [0], [0], [1], [0, 0, 1, 1], [], []>} : vector<8x8xf32>, vector<8x8xf32>, vector<8x8xf32> -> vector<8x8xf32>
    %552 = vector.extract_strided_slice %479 {offsets = [24, 0], sizes = [8, 32], strides = [1, 1]} : vector<32x32xf32> to vector<8x32xf32>
    %cst_228 = arith.constant dense<0.000000e+00> : vector<8x32xf32>
    %553 = tpu.matmul %551, %552, %cst_228 {dimension_numbers = #tpu.dot_dimension_numbers<[1], [0], [0], [1], [0, 0, 1, 1], [], []>} : vector<8x8xf32>, vector<8x32xf32>, vector<8x32xf32> -> vector<8x32xf32>
    %554 = arith.addf %535, %553 : vector<8x32xf32>
    %c2_229 = arith.constant 2 : index
    %c0_230 = arith.constant 0 : index
    %c0_231 = arith.constant 0 : index
    %555 = vector.load %arg10[%c2_229, %c0_230, %c0_231] : memref<6x1x32xf32, #tpu.memory_space<vmem>>, vector<1x1x32xf32>
    %556 = vector.shape_cast %555 : vector<1x1x32xf32> to vector<1x32xf32>
    %557 = vector.broadcast %556 : vector<1x32xf32> to vector<8x32xf32>
    %558 = arith.addf %554, %557 : vector<8x32xf32>
    %559 = arith.addf %59, %558 : vector<8x32xf32>
    %cst_232 = arith.constant dense<0.000000e+00> : vector<8xf32>
    %560 = vector.multi_reduction <add>, %559, %cst_232 [1] : vector<8x32xf32> to vector<8xf32>
    %561 = vector.shape_cast %560 : vector<8xf32> to vector<8x1xf32>
    %cst_233 = arith.constant 3.200000e+01 : f32
    %562 = vector.broadcast %cst_233 : f32 to vector<8x1xf32>
    %563 = arith.divf %561, %562 : vector<8x1xf32>
    %564 = vector.broadcast %563 : vector<8x1xf32> to vector<8x32xf32>
    %565 = arith.subf %559, %564 : vector<8x32xf32>
    %566 = arith.mulf %565, %565 : vector<8x32xf32>
    %cst_234 = arith.constant dense<0.000000e+00> : vector<8xf32>
    %567 = vector.multi_reduction <add>, %566, %cst_234 [1] : vector<8x32xf32> to vector<8xf32>
    %568 = vector.shape_cast %567 : vector<8xf32> to vector<8x1xf32>
    %cst_235 = arith.constant 3.200000e+01 : f32
    %569 = vector.broadcast %cst_235 : f32 to vector<8x1xf32>
    %570 = arith.divf %568, %569 : vector<8x1xf32>
    %571 = vector.broadcast %563 : vector<8x1xf32> to vector<8x32xf32>
    %572 = arith.subf %559, %571 : vector<8x32xf32>
    %cst_236 = arith.constant 9.99999974E-6 : f32
    %573 = vector.broadcast %cst_236 : f32 to vector<8x1xf32>
    %574 = arith.addf %570, %573 : vector<8x1xf32>
    %575 = math.rsqrt %574 : vector<8x1xf32>
    %576 = vector.broadcast %575 : vector<8x1xf32> to vector<8x32xf32>
    %577 = arith.mulf %572, %576 : vector<8x32xf32>
    %c6 = arith.constant 6 : index
    %c0_237 = arith.constant 0 : index
    %c0_238 = arith.constant 0 : index
    %578 = vector.load %arg5[%c6, %c0_237, %c0_238] : memref<12x1x32xf32, #tpu.memory_space<vmem>>, vector<1x1x32xf32>
    %579 = vector.shape_cast %578 : vector<1x1x32xf32> to vector<1x32xf32>
    %580 = vector.broadcast %579 : vector<1x32xf32> to vector<8x32xf32>
    %581 = arith.mulf %577, %580 : vector<8x32xf32>
    %c6_239 = arith.constant 6 : index
    %c0_240 = arith.constant 0 : index
    %c0_241 = arith.constant 0 : index
    %582 = vector.load %arg6[%c6_239, %c0_240, %c0_241] : memref<12x1x32xf32, #tpu.memory_space<vmem>>, vector<1x1x32xf32>
    %583 = vector.shape_cast %582 : vector<1x1x32xf32> to vector<1x32xf32>
    %584 = vector.broadcast %583 : vector<1x32xf32> to vector<8x32xf32>
    %585 = arith.addf %581, %584 : vector<8x32xf32>
    %c4_242 = arith.constant 4 : index
    %c0_243 = arith.constant 0 : index
    %c0_244 = arith.constant 0 : index
    %586 = vector.load %arg7[%c4_242, %c0_243, %c0_244] : memref<6x32x96xf32, #tpu.memory_space<vmem>>, vector<1x32x96xf32>
    %587 = vector.shape_cast %586 : vector<1x32x96xf32> to vector<32x96xf32>
    %c4_245 = arith.constant 4 : index
    %c0_246 = arith.constant 0 : index
    %c0_247 = arith.constant 0 : index
    %588 = vector.load %arg8[%c4_245, %c0_246, %c0_247] : memref<6x1x96xf32, #tpu.memory_space<vmem>>, vector<1x1x96xf32>
    %589 = vector.shape_cast %588 : vector<1x1x96xf32> to vector<1x96xf32>
    %590 = vector.extract_strided_slice %587 {offsets = [0, 0], sizes = [32, 32], strides = [1, 1]} : vector<32x96xf32> to vector<32x32xf32>
    %cst_248 = arith.constant dense<0.000000e+00> : vector<8x32xf32>
    %591 = tpu.matmul %585, %590, %cst_248 {dimension_numbers = #tpu.dot_dimension_numbers<[1], [0], [0], [1], [0, 0, 1, 1], [], []>} : vector<8x32xf32>, vector<32x32xf32>, vector<8x32xf32> -> vector<8x32xf32>
    %592 = vector.extract_strided_slice %589 {offsets = [0, 0], sizes = [1, 32], strides = [1, 1]} : vector<1x96xf32> to vector<1x32xf32>
    %593 = vector.broadcast %592 : vector<1x32xf32> to vector<8x32xf32>
    %594 = arith.addf %591, %593 : vector<8x32xf32>
    %595 = vector.extract_strided_slice %587 {offsets = [0, 32], sizes = [32, 64], strides = [1, 1]} : vector<32x96xf32> to vector<32x64xf32>
    %cst_249 = arith.constant dense<0.000000e+00> : vector<8x64xf32>
    %596 = tpu.matmul %467, %595, %cst_249 {dimension_numbers = #tpu.dot_dimension_numbers<[1], [0], [0], [1], [0, 0, 1, 1], [], []>} : vector<8x32xf32>, vector<32x64xf32>, vector<8x64xf32> -> vector<8x64xf32>
    %597 = vector.extract_strided_slice %589 {offsets = [0, 32], sizes = [1, 64], strides = [1, 1]} : vector<1x96xf32> to vector<1x64xf32>
    %598 = vector.broadcast %597 : vector<1x64xf32> to vector<8x64xf32>
    %599 = arith.addf %596, %598 : vector<8x64xf32>
    %600 = vector.extract_strided_slice %599 {offsets = [0, 0], sizes = [8, 32], strides = [1, 1]} : vector<8x64xf32> to vector<8x32xf32>
    %601 = vector.extract_strided_slice %599 {offsets = [0, 32], sizes = [8, 32], strides = [1, 1]} : vector<8x64xf32> to vector<8x32xf32>
    %c4_250 = arith.constant 4 : index
    %c0_251 = arith.constant 0 : index
    %c0_252 = arith.constant 0 : index
    %602 = vector.load %arg9[%c4_250, %c0_251, %c0_252] : memref<6x32x32xf32, #tpu.memory_space<vmem>>, vector<1x32x32xf32>
    %603 = vector.shape_cast %602 : vector<1x32x32xf32> to vector<32x32xf32>
    %604 = vector.extract_strided_slice %594 {offsets = [0, 0], sizes = [8, 8], strides = [1, 1]} : vector<8x32xf32> to vector<8x8xf32>
    %605 = vector.extract_strided_slice %600 {offsets = [0, 0], sizes = [8, 8], strides = [1, 1]} : vector<8x32xf32> to vector<8x8xf32>
    %606 = vector.extract_strided_slice %601 {offsets = [0, 0], sizes = [8, 8], strides = [1, 1]} : vector<8x32xf32> to vector<8x8xf32>
    %cst_253 = arith.constant dense<0.000000e+00> : vector<8x8xf32>
    %607 = tpu.matmul %604, %605, %cst_253 {dimension_numbers = #tpu.dot_dimension_numbers<[1], [1], [0], [0], [0, 0, 1, 0], [], []>} : vector<8x8xf32>, vector<8x8xf32>, vector<8x8xf32> -> vector<8x8xf32>
    %cst_254 = arith.constant dense<0xFF800000> : vector<8xf32>
    %608 = vector.multi_reduction <maximumf>, %607, %cst_254 [1] : vector<8x8xf32> to vector<8xf32>
    %609 = vector.shape_cast %608 : vector<8xf32> to vector<8x1xf32>
    %610 = vector.broadcast %609 : vector<8x1xf32> to vector<8x8xf32>
    %611 = arith.subf %607, %610 : vector<8x8xf32>
    %612 = math.exp %611 : vector<8x8xf32>
    %cst_255 = arith.constant dense<0.000000e+00> : vector<8xf32>
    %613 = vector.multi_reduction <add>, %612, %cst_255 [1] : vector<8x8xf32> to vector<8xf32>
    %614 = vector.shape_cast %613 : vector<8xf32> to vector<8x1xf32>
    %615 = tpu.reciprocal %614 {approx = true} : vector<8x1xf32> -> vector<8x1xf32>
    %616 = vector.broadcast %615 : vector<8x1xf32> to vector<8x8xf32>
    %617 = arith.mulf %612, %616 : vector<8x8xf32>
    %cst_256 = arith.constant dense<0.000000e+00> : vector<8x8xf32>
    %618 = tpu.matmul %617, %606, %cst_256 {dimension_numbers = #tpu.dot_dimension_numbers<[1], [0], [0], [1], [0, 0, 1, 1], [], []>} : vector<8x8xf32>, vector<8x8xf32>, vector<8x8xf32> -> vector<8x8xf32>
    %619 = vector.extract_strided_slice %603 {offsets = [0, 0], sizes = [8, 32], strides = [1, 1]} : vector<32x32xf32> to vector<8x32xf32>
    %cst_257 = arith.constant dense<0.000000e+00> : vector<8x32xf32>
    %620 = tpu.matmul %618, %619, %cst_257 {dimension_numbers = #tpu.dot_dimension_numbers<[1], [0], [0], [1], [0, 0, 1, 1], [], []>} : vector<8x8xf32>, vector<8x32xf32>, vector<8x32xf32> -> vector<8x32xf32>
    %621 = vector.extract_strided_slice %594 {offsets = [0, 8], sizes = [8, 8], strides = [1, 1]} : vector<8x32xf32> to vector<8x8xf32>
    %622 = vector.extract_strided_slice %600 {offsets = [0, 8], sizes = [8, 8], strides = [1, 1]} : vector<8x32xf32> to vector<8x8xf32>
    %623 = vector.extract_strided_slice %601 {offsets = [0, 8], sizes = [8, 8], strides = [1, 1]} : vector<8x32xf32> to vector<8x8xf32>
    %cst_258 = arith.constant dense<0.000000e+00> : vector<8x8xf32>
    %624 = tpu.matmul %621, %622, %cst_258 {dimension_numbers = #tpu.dot_dimension_numbers<[1], [1], [0], [0], [0, 0, 1, 0], [], []>} : vector<8x8xf32>, vector<8x8xf32>, vector<8x8xf32> -> vector<8x8xf32>
    %cst_259 = arith.constant dense<0xFF800000> : vector<8xf32>
    %625 = vector.multi_reduction <maximumf>, %624, %cst_259 [1] : vector<8x8xf32> to vector<8xf32>
    %626 = vector.shape_cast %625 : vector<8xf32> to vector<8x1xf32>
    %627 = vector.broadcast %626 : vector<8x1xf32> to vector<8x8xf32>
    %628 = arith.subf %624, %627 : vector<8x8xf32>
    %629 = math.exp %628 : vector<8x8xf32>
    %cst_260 = arith.constant dense<0.000000e+00> : vector<8xf32>
    %630 = vector.multi_reduction <add>, %629, %cst_260 [1] : vector<8x8xf32> to vector<8xf32>
    %631 = vector.shape_cast %630 : vector<8xf32> to vector<8x1xf32>
    %632 = tpu.reciprocal %631 {approx = true} : vector<8x1xf32> -> vector<8x1xf32>
    %633 = vector.broadcast %632 : vector<8x1xf32> to vector<8x8xf32>
    %634 = arith.mulf %629, %633 : vector<8x8xf32>
    %cst_261 = arith.constant dense<0.000000e+00> : vector<8x8xf32>
    %635 = tpu.matmul %634, %623, %cst_261 {dimension_numbers = #tpu.dot_dimension_numbers<[1], [0], [0], [1], [0, 0, 1, 1], [], []>} : vector<8x8xf32>, vector<8x8xf32>, vector<8x8xf32> -> vector<8x8xf32>
    %636 = vector.extract_strided_slice %603 {offsets = [8, 0], sizes = [8, 32], strides = [1, 1]} : vector<32x32xf32> to vector<8x32xf32>
    %cst_262 = arith.constant dense<0.000000e+00> : vector<8x32xf32>
    %637 = tpu.matmul %635, %636, %cst_262 {dimension_numbers = #tpu.dot_dimension_numbers<[1], [0], [0], [1], [0, 0, 1, 1], [], []>} : vector<8x8xf32>, vector<8x32xf32>, vector<8x32xf32> -> vector<8x32xf32>
    %638 = arith.addf %620, %637 : vector<8x32xf32>
    %639 = vector.extract_strided_slice %594 {offsets = [0, 16], sizes = [8, 8], strides = [1, 1]} : vector<8x32xf32> to vector<8x8xf32>
    %640 = vector.extract_strided_slice %600 {offsets = [0, 16], sizes = [8, 8], strides = [1, 1]} : vector<8x32xf32> to vector<8x8xf32>
    %641 = vector.extract_strided_slice %601 {offsets = [0, 16], sizes = [8, 8], strides = [1, 1]} : vector<8x32xf32> to vector<8x8xf32>
    %cst_263 = arith.constant dense<0.000000e+00> : vector<8x8xf32>
    %642 = tpu.matmul %639, %640, %cst_263 {dimension_numbers = #tpu.dot_dimension_numbers<[1], [1], [0], [0], [0, 0, 1, 0], [], []>} : vector<8x8xf32>, vector<8x8xf32>, vector<8x8xf32> -> vector<8x8xf32>
    %cst_264 = arith.constant dense<0xFF800000> : vector<8xf32>
    %643 = vector.multi_reduction <maximumf>, %642, %cst_264 [1] : vector<8x8xf32> to vector<8xf32>
    %644 = vector.shape_cast %643 : vector<8xf32> to vector<8x1xf32>
    %645 = vector.broadcast %644 : vector<8x1xf32> to vector<8x8xf32>
    %646 = arith.subf %642, %645 : vector<8x8xf32>
    %647 = math.exp %646 : vector<8x8xf32>
    %cst_265 = arith.constant dense<0.000000e+00> : vector<8xf32>
    %648 = vector.multi_reduction <add>, %647, %cst_265 [1] : vector<8x8xf32> to vector<8xf32>
    %649 = vector.shape_cast %648 : vector<8xf32> to vector<8x1xf32>
    %650 = tpu.reciprocal %649 {approx = true} : vector<8x1xf32> -> vector<8x1xf32>
    %651 = vector.broadcast %650 : vector<8x1xf32> to vector<8x8xf32>
    %652 = arith.mulf %647, %651 : vector<8x8xf32>
    %cst_266 = arith.constant dense<0.000000e+00> : vector<8x8xf32>
    %653 = tpu.matmul %652, %641, %cst_266 {dimension_numbers = #tpu.dot_dimension_numbers<[1], [0], [0], [1], [0, 0, 1, 1], [], []>} : vector<8x8xf32>, vector<8x8xf32>, vector<8x8xf32> -> vector<8x8xf32>
    %654 = vector.extract_strided_slice %603 {offsets = [16, 0], sizes = [8, 32], strides = [1, 1]} : vector<32x32xf32> to vector<8x32xf32>
    %cst_267 = arith.constant dense<0.000000e+00> : vector<8x32xf32>
    %655 = tpu.matmul %653, %654, %cst_267 {dimension_numbers = #tpu.dot_dimension_numbers<[1], [0], [0], [1], [0, 0, 1, 1], [], []>} : vector<8x8xf32>, vector<8x32xf32>, vector<8x32xf32> -> vector<8x32xf32>
    %656 = arith.addf %638, %655 : vector<8x32xf32>
    %657 = vector.extract_strided_slice %594 {offsets = [0, 24], sizes = [8, 8], strides = [1, 1]} : vector<8x32xf32> to vector<8x8xf32>
    %658 = vector.extract_strided_slice %600 {offsets = [0, 24], sizes = [8, 8], strides = [1, 1]} : vector<8x32xf32> to vector<8x8xf32>
    %659 = vector.extract_strided_slice %601 {offsets = [0, 24], sizes = [8, 8], strides = [1, 1]} : vector<8x32xf32> to vector<8x8xf32>
    %cst_268 = arith.constant dense<0.000000e+00> : vector<8x8xf32>
    %660 = tpu.matmul %657, %658, %cst_268 {dimension_numbers = #tpu.dot_dimension_numbers<[1], [1], [0], [0], [0, 0, 1, 0], [], []>} : vector<8x8xf32>, vector<8x8xf32>, vector<8x8xf32> -> vector<8x8xf32>
    %cst_269 = arith.constant dense<0xFF800000> : vector<8xf32>
    %661 = vector.multi_reduction <maximumf>, %660, %cst_269 [1] : vector<8x8xf32> to vector<8xf32>
    %662 = vector.shape_cast %661 : vector<8xf32> to vector<8x1xf32>
    %663 = vector.broadcast %662 : vector<8x1xf32> to vector<8x8xf32>
    %664 = arith.subf %660, %663 : vector<8x8xf32>
    %665 = math.exp %664 : vector<8x8xf32>
    %cst_270 = arith.constant dense<0.000000e+00> : vector<8xf32>
    %666 = vector.multi_reduction <add>, %665, %cst_270 [1] : vector<8x8xf32> to vector<8xf32>
    %667 = vector.shape_cast %666 : vector<8xf32> to vector<8x1xf32>
    %668 = tpu.reciprocal %667 {approx = true} : vector<8x1xf32> -> vector<8x1xf32>
    %669 = vector.broadcast %668 : vector<8x1xf32> to vector<8x8xf32>
    %670 = arith.mulf %665, %669 : vector<8x8xf32>
    %cst_271 = arith.constant dense<0.000000e+00> : vector<8x8xf32>
    %671 = tpu.matmul %670, %659, %cst_271 {dimension_numbers = #tpu.dot_dimension_numbers<[1], [0], [0], [1], [0, 0, 1, 1], [], []>} : vector<8x8xf32>, vector<8x8xf32>, vector<8x8xf32> -> vector<8x8xf32>
    %672 = vector.extract_strided_slice %603 {offsets = [24, 0], sizes = [8, 32], strides = [1, 1]} : vector<32x32xf32> to vector<8x32xf32>
    %cst_272 = arith.constant dense<0.000000e+00> : vector<8x32xf32>
    %673 = tpu.matmul %671, %672, %cst_272 {dimension_numbers = #tpu.dot_dimension_numbers<[1], [0], [0], [1], [0, 0, 1, 1], [], []>} : vector<8x8xf32>, vector<8x32xf32>, vector<8x32xf32> -> vector<8x32xf32>
    %674 = arith.addf %656, %673 : vector<8x32xf32>
    %c4_273 = arith.constant 4 : index
    %c0_274 = arith.constant 0 : index
    %c0_275 = arith.constant 0 : index
    %675 = vector.load %arg10[%c4_273, %c0_274, %c0_275] : memref<6x1x32xf32, #tpu.memory_space<vmem>>, vector<1x1x32xf32>
    %676 = vector.shape_cast %675 : vector<1x1x32xf32> to vector<1x32xf32>
    %677 = vector.broadcast %676 : vector<1x32xf32> to vector<8x32xf32>
    %678 = arith.addf %674, %677 : vector<8x32xf32>
    %679 = arith.addf %585, %678 : vector<8x32xf32>
    %cst_276 = arith.constant dense<0.000000e+00> : vector<8xf32>
    %680 = vector.multi_reduction <add>, %679, %cst_276 [1] : vector<8x32xf32> to vector<8xf32>
    %681 = vector.shape_cast %680 : vector<8xf32> to vector<8x1xf32>
    %cst_277 = arith.constant 3.200000e+01 : f32
    %682 = vector.broadcast %cst_277 : f32 to vector<8x1xf32>
    %683 = arith.divf %681, %682 : vector<8x1xf32>
    %684 = vector.broadcast %683 : vector<8x1xf32> to vector<8x32xf32>
    %685 = arith.subf %679, %684 : vector<8x32xf32>
    %686 = arith.mulf %685, %685 : vector<8x32xf32>
    %cst_278 = arith.constant dense<0.000000e+00> : vector<8xf32>
    %687 = vector.multi_reduction <add>, %686, %cst_278 [1] : vector<8x32xf32> to vector<8xf32>
    %688 = vector.shape_cast %687 : vector<8xf32> to vector<8x1xf32>
    %cst_279 = arith.constant 3.200000e+01 : f32
    %689 = vector.broadcast %cst_279 : f32 to vector<8x1xf32>
    %690 = arith.divf %688, %689 : vector<8x1xf32>
    %691 = vector.broadcast %683 : vector<8x1xf32> to vector<8x32xf32>
    %692 = arith.subf %679, %691 : vector<8x32xf32>
    %cst_280 = arith.constant 9.99999974E-6 : f32
    %693 = vector.broadcast %cst_280 : f32 to vector<8x1xf32>
    %694 = arith.addf %690, %693 : vector<8x1xf32>
    %695 = math.rsqrt %694 : vector<8x1xf32>
    %696 = vector.broadcast %695 : vector<8x1xf32> to vector<8x32xf32>
    %697 = arith.mulf %692, %696 : vector<8x32xf32>
    %c8 = arith.constant 8 : index
    %c0_281 = arith.constant 0 : index
    %c0_282 = arith.constant 0 : index
    %698 = vector.load %arg5[%c8, %c0_281, %c0_282] : memref<12x1x32xf32, #tpu.memory_space<vmem>>, vector<1x1x32xf32>
    %699 = vector.shape_cast %698 : vector<1x1x32xf32> to vector<1x32xf32>
    %700 = vector.broadcast %699 : vector<1x32xf32> to vector<8x32xf32>
    %701 = arith.mulf %697, %700 : vector<8x32xf32>
    %c8_283 = arith.constant 8 : index
    %c0_284 = arith.constant 0 : index
    %c0_285 = arith.constant 0 : index
    %702 = vector.load %arg6[%c8_283, %c0_284, %c0_285] : memref<12x1x32xf32, #tpu.memory_space<vmem>>, vector<1x1x32xf32>
    %703 = vector.shape_cast %702 : vector<1x1x32xf32> to vector<1x32xf32>
    %704 = vector.broadcast %703 : vector<1x32xf32> to vector<8x32xf32>
    %705 = arith.addf %701, %704 : vector<8x32xf32>
    %c2_286 = arith.constant 2 : index
    %c0_287 = arith.constant 0 : index
    %c0_288 = arith.constant 0 : index
    %706 = vector.load %arg11[%c2_286, %c0_287, %c0_288] : memref<4x32x64xf32, #tpu.memory_space<vmem>>, vector<1x32x64xf32>
    %707 = vector.shape_cast %706 : vector<1x32x64xf32> to vector<32x64xf32>
    %cst_289 = arith.constant dense<0.000000e+00> : vector<8x64xf32>
    %708 = tpu.matmul %705, %707, %cst_289 {dimension_numbers = #tpu.dot_dimension_numbers<[1], [0], [0], [1], [0, 0, 1, 1], [], []>} : vector<8x32xf32>, vector<32x64xf32>, vector<8x64xf32> -> vector<8x64xf32>
    %c2_290 = arith.constant 2 : index
    %c0_291 = arith.constant 0 : index
    %c0_292 = arith.constant 0 : index
    %709 = vector.load %arg12[%c2_290, %c0_291, %c0_292] : memref<4x1x64xf32, #tpu.memory_space<vmem>>, vector<1x1x64xf32>
    %710 = vector.shape_cast %709 : vector<1x1x64xf32> to vector<1x64xf32>
    %711 = vector.broadcast %710 : vector<1x64xf32> to vector<8x64xf32>
    %712 = arith.addf %708, %711 : vector<8x64xf32>
    %cst_293 = arith.constant 5.000000e-01 : f32
    %713 = vector.broadcast %cst_293 : f32 to vector<8x64xf32>
    %714 = arith.mulf %713, %712 : vector<8x64xf32>
    %cst_294 = arith.constant 0.707106769 : f32
    %715 = vector.broadcast %cst_294 : f32 to vector<8x64xf32>
    %716 = arith.mulf %712, %715 : vector<8x64xf32>
    %cst_295 = arith.constant -4.000000e+00 : f32
    %cst_296 = arith.constant 4.000000e+00 : f32
    %717 = vector.broadcast %cst_295 : f32 to vector<8x64xf32>
    %718 = arith.maximumf %717, %716 : vector<8x64xf32>
    %719 = vector.broadcast %cst_296 : f32 to vector<8x64xf32>
    %720 = arith.minimumf %719, %718 : vector<8x64xf32>
    %721 = arith.mulf %720, %720 : vector<8x64xf32>
    %cst_297 = arith.constant -2.72614237E-10 : f32
    %722 = vector.broadcast %cst_297 : f32 to vector<8x64xf32>
    %723 = arith.mulf %721, %722 : vector<8x64xf32>
    %cst_298 = arith.constant 2.77068146E-8 : f32
    %724 = vector.broadcast %cst_298 : f32 to vector<8x64xf32>
    %725 = arith.addf %723, %724 : vector<8x64xf32>
    %726 = arith.mulf %721, %725 : vector<8x64xf32>
    %cst_299 = arith.constant -2.10102394E-6 : f32
    %727 = vector.broadcast %cst_299 : f32 to vector<8x64xf32>
    %728 = arith.addf %726, %727 : vector<8x64xf32>
    %729 = arith.mulf %721, %728 : vector<8x64xf32>
    %cst_300 = arith.constant -5.69250624E-5 : f32
    %730 = vector.broadcast %cst_300 : f32 to vector<8x64xf32>
    %731 = arith.addf %729, %730 : vector<8x64xf32>
    %732 = arith.mulf %721, %731 : vector<8x64xf32>
    %cst_301 = arith.constant -7.34990637E-4 : f32
    %733 = vector.broadcast %cst_301 : f32 to vector<8x64xf32>
    %734 = arith.addf %732, %733 : vector<8x64xf32>
    %735 = arith.mulf %721, %734 : vector<8x64xf32>
    %cst_302 = arith.constant -2.954600e-03 : f32
    %736 = vector.broadcast %cst_302 : f32 to vector<8x64xf32>
    %737 = arith.addf %735, %736 : vector<8x64xf32>
    %738 = arith.mulf %721, %737 : vector<8x64xf32>
    %cst_303 = arith.constant -0.0160960332 : f32
    %739 = vector.broadcast %cst_303 : f32 to vector<8x64xf32>
    %740 = arith.addf %738, %739 : vector<8x64xf32>
    %741 = arith.mulf %720, %740 : vector<8x64xf32>
    %cst_304 = arith.constant -1.45660715E-5 : f32
    %742 = vector.broadcast %cst_304 : f32 to vector<8x64xf32>
    %743 = arith.mulf %721, %742 : vector<8x64xf32>
    %cst_305 = arith.constant -2.13374049E-4 : f32
    %744 = vector.broadcast %cst_305 : f32 to vector<8x64xf32>
    %745 = arith.addf %743, %744 : vector<8x64xf32>
    %746 = arith.mulf %721, %745 : vector<8x64xf32>
    %cst_306 = arith.constant -0.00168282702 : f32
    %747 = vector.broadcast %cst_306 : f32 to vector<8x64xf32>
    %748 = arith.addf %746, %747 : vector<8x64xf32>
    %749 = arith.mulf %721, %748 : vector<8x64xf32>
    %cst_307 = arith.constant -0.00737332925 : f32
    %750 = vector.broadcast %cst_307 : f32 to vector<8x64xf32>
    %751 = arith.addf %749, %750 : vector<8x64xf32>
    %752 = arith.mulf %721, %751 : vector<8x64xf32>
    %cst_308 = arith.constant -0.0142647391 : f32
    %753 = vector.broadcast %cst_308 : f32 to vector<8x64xf32>
    %754 = arith.addf %752, %753 : vector<8x64xf32>
    %755 = arith.divf %741, %754 : vector<8x64xf32>
    %cst_309 = arith.constant 1.000000e+00 : f32
    %756 = vector.broadcast %cst_309 : f32 to vector<8x64xf32>
    %757 = arith.addf %756, %755 : vector<8x64xf32>
    %758 = arith.mulf %714, %757 : vector<8x64xf32>
    %c2_310 = arith.constant 2 : index
    %c0_311 = arith.constant 0 : index
    %c0_312 = arith.constant 0 : index
    %759 = vector.load %arg13[%c2_310, %c0_311, %c0_312] : memref<4x64x32xf32, #tpu.memory_space<vmem>>, vector<1x64x32xf32>
    %760 = vector.shape_cast %759 : vector<1x64x32xf32> to vector<64x32xf32>
    %cst_313 = arith.constant dense<0.000000e+00> : vector<8x32xf32>
    %761 = tpu.matmul %758, %760, %cst_313 {dimension_numbers = #tpu.dot_dimension_numbers<[1], [0], [0], [1], [0, 0, 1, 1], [], []>} : vector<8x64xf32>, vector<64x32xf32>, vector<8x32xf32> -> vector<8x32xf32>
    %c2_314 = arith.constant 2 : index
    %c0_315 = arith.constant 0 : index
    %c0_316 = arith.constant 0 : index
    %762 = vector.load %arg14[%c2_314, %c0_315, %c0_316] : memref<4x1x32xf32, #tpu.memory_space<vmem>>, vector<1x1x32xf32>
    %763 = vector.shape_cast %762 : vector<1x1x32xf32> to vector<1x32xf32>
    %764 = vector.broadcast %763 : vector<1x32xf32> to vector<8x32xf32>
    %765 = arith.addf %761, %764 : vector<8x32xf32>
    %766 = arith.addf %705, %765 : vector<8x32xf32>
    %cst_317 = arith.constant dense<0.000000e+00> : vector<8xf32>
    %767 = vector.multi_reduction <add>, %766, %cst_317 [1] : vector<8x32xf32> to vector<8xf32>
    %768 = vector.shape_cast %767 : vector<8xf32> to vector<8x1xf32>
    %cst_318 = arith.constant 3.200000e+01 : f32
    %769 = vector.broadcast %cst_318 : f32 to vector<8x1xf32>
    %770 = arith.divf %768, %769 : vector<8x1xf32>
    %771 = vector.broadcast %770 : vector<8x1xf32> to vector<8x32xf32>
    %772 = arith.subf %766, %771 : vector<8x32xf32>
    %773 = arith.mulf %772, %772 : vector<8x32xf32>
    %cst_319 = arith.constant dense<0.000000e+00> : vector<8xf32>
    %774 = vector.multi_reduction <add>, %773, %cst_319 [1] : vector<8x32xf32> to vector<8xf32>
    %775 = vector.shape_cast %774 : vector<8xf32> to vector<8x1xf32>
    %cst_320 = arith.constant 3.200000e+01 : f32
    %776 = vector.broadcast %cst_320 : f32 to vector<8x1xf32>
    %777 = arith.divf %775, %776 : vector<8x1xf32>
    %778 = vector.broadcast %770 : vector<8x1xf32> to vector<8x32xf32>
    %779 = arith.subf %766, %778 : vector<8x32xf32>
    %cst_321 = arith.constant 9.99999974E-6 : f32
    %780 = vector.broadcast %cst_321 : f32 to vector<8x1xf32>
    %781 = arith.addf %777, %780 : vector<8x1xf32>
    %782 = math.rsqrt %781 : vector<8x1xf32>
    %783 = vector.broadcast %782 : vector<8x1xf32> to vector<8x32xf32>
    %784 = arith.mulf %779, %783 : vector<8x32xf32>
    %c9 = arith.constant 9 : index
    %c0_322 = arith.constant 0 : index
    %c0_323 = arith.constant 0 : index
    %785 = vector.load %arg5[%c9, %c0_322, %c0_323] : memref<12x1x32xf32, #tpu.memory_space<vmem>>, vector<1x1x32xf32>
    %786 = vector.shape_cast %785 : vector<1x1x32xf32> to vector<1x32xf32>
    %787 = vector.broadcast %786 : vector<1x32xf32> to vector<8x32xf32>
    %788 = arith.mulf %784, %787 : vector<8x32xf32>
    %c9_324 = arith.constant 9 : index
    %c0_325 = arith.constant 0 : index
    %c0_326 = arith.constant 0 : index
    %789 = vector.load %arg6[%c9_324, %c0_325, %c0_326] : memref<12x1x32xf32, #tpu.memory_space<vmem>>, vector<1x1x32xf32>
    %790 = vector.shape_cast %789 : vector<1x1x32xf32> to vector<1x32xf32>
    %791 = vector.broadcast %790 : vector<1x32xf32> to vector<8x32xf32>
    %792 = arith.addf %788, %791 : vector<8x32xf32>
    %c3_327 = arith.constant 3 : index
    %c0_328 = arith.constant 0 : index
    %c0_329 = arith.constant 0 : index
    %793 = vector.load %arg7[%c3_327, %c0_328, %c0_329] : memref<6x32x96xf32, #tpu.memory_space<vmem>>, vector<1x32x96xf32>
    %794 = vector.shape_cast %793 : vector<1x32x96xf32> to vector<32x96xf32>
    %c3_330 = arith.constant 3 : index
    %c0_331 = arith.constant 0 : index
    %c0_332 = arith.constant 0 : index
    %795 = vector.load %arg8[%c3_330, %c0_331, %c0_332] : memref<6x1x96xf32, #tpu.memory_space<vmem>>, vector<1x1x96xf32>
    %796 = vector.shape_cast %795 : vector<1x1x96xf32> to vector<1x96xf32>
    %cst_333 = arith.constant dense<0.000000e+00> : vector<8x96xf32>
    %797 = tpu.matmul %792, %794, %cst_333 {dimension_numbers = #tpu.dot_dimension_numbers<[1], [0], [0], [1], [0, 0, 1, 1], [], []>} : vector<8x32xf32>, vector<32x96xf32>, vector<8x96xf32> -> vector<8x96xf32>
    %798 = vector.broadcast %796 : vector<1x96xf32> to vector<8x96xf32>
    %799 = arith.addf %797, %798 : vector<8x96xf32>
    %800 = vector.extract_strided_slice %799 {offsets = [0, 0], sizes = [8, 32], strides = [1, 1]} : vector<8x96xf32> to vector<8x32xf32>
    %801 = vector.extract_strided_slice %799 {offsets = [0, 32], sizes = [8, 32], strides = [1, 1]} : vector<8x96xf32> to vector<8x32xf32>
    %802 = vector.extract_strided_slice %799 {offsets = [0, 64], sizes = [8, 32], strides = [1, 1]} : vector<8x96xf32> to vector<8x32xf32>
    %c3_334 = arith.constant 3 : index
    %c0_335 = arith.constant 0 : index
    %c0_336 = arith.constant 0 : index
    %803 = vector.load %arg9[%c3_334, %c0_335, %c0_336] : memref<6x32x32xf32, #tpu.memory_space<vmem>>, vector<1x32x32xf32>
    %804 = vector.shape_cast %803 : vector<1x32x32xf32> to vector<32x32xf32>
    %805 = vector.extract_strided_slice %800 {offsets = [0, 0], sizes = [8, 8], strides = [1, 1]} : vector<8x32xf32> to vector<8x8xf32>
    %806 = vector.extract_strided_slice %801 {offsets = [0, 0], sizes = [8, 8], strides = [1, 1]} : vector<8x32xf32> to vector<8x8xf32>
    %807 = vector.extract_strided_slice %802 {offsets = [0, 0], sizes = [8, 8], strides = [1, 1]} : vector<8x32xf32> to vector<8x8xf32>
    %cst_337 = arith.constant dense<0.000000e+00> : vector<8x8xf32>
    %808 = tpu.matmul %805, %806, %cst_337 {dimension_numbers = #tpu.dot_dimension_numbers<[1], [1], [0], [0], [0, 0, 1, 0], [], []>} : vector<8x8xf32>, vector<8x8xf32>, vector<8x8xf32> -> vector<8x8xf32>
    %809 = arith.addf %808, %65 : vector<8x8xf32>
    %cst_338 = arith.constant dense<0xFF800000> : vector<8xf32>
    %810 = vector.multi_reduction <maximumf>, %809, %cst_338 [1] : vector<8x8xf32> to vector<8xf32>
    %811 = vector.shape_cast %810 : vector<8xf32> to vector<8x1xf32>
    %812 = vector.broadcast %811 : vector<8x1xf32> to vector<8x8xf32>
    %813 = arith.subf %809, %812 : vector<8x8xf32>
    %814 = math.exp %813 : vector<8x8xf32>
    %cst_339 = arith.constant dense<0.000000e+00> : vector<8xf32>
    %815 = vector.multi_reduction <add>, %814, %cst_339 [1] : vector<8x8xf32> to vector<8xf32>
    %816 = vector.shape_cast %815 : vector<8xf32> to vector<8x1xf32>
    %817 = tpu.reciprocal %816 {approx = true} : vector<8x1xf32> -> vector<8x1xf32>
    %818 = vector.broadcast %817 : vector<8x1xf32> to vector<8x8xf32>
    %819 = arith.mulf %814, %818 : vector<8x8xf32>
    %cst_340 = arith.constant dense<0.000000e+00> : vector<8x8xf32>
    %820 = tpu.matmul %819, %807, %cst_340 {dimension_numbers = #tpu.dot_dimension_numbers<[1], [0], [0], [1], [0, 0, 1, 1], [], []>} : vector<8x8xf32>, vector<8x8xf32>, vector<8x8xf32> -> vector<8x8xf32>
    %821 = vector.extract_strided_slice %804 {offsets = [0, 0], sizes = [8, 32], strides = [1, 1]} : vector<32x32xf32> to vector<8x32xf32>
    %cst_341 = arith.constant dense<0.000000e+00> : vector<8x32xf32>
    %822 = tpu.matmul %820, %821, %cst_341 {dimension_numbers = #tpu.dot_dimension_numbers<[1], [0], [0], [1], [0, 0, 1, 1], [], []>} : vector<8x8xf32>, vector<8x32xf32>, vector<8x32xf32> -> vector<8x32xf32>
    %823 = vector.extract_strided_slice %800 {offsets = [0, 8], sizes = [8, 8], strides = [1, 1]} : vector<8x32xf32> to vector<8x8xf32>
    %824 = vector.extract_strided_slice %801 {offsets = [0, 8], sizes = [8, 8], strides = [1, 1]} : vector<8x32xf32> to vector<8x8xf32>
    %825 = vector.extract_strided_slice %802 {offsets = [0, 8], sizes = [8, 8], strides = [1, 1]} : vector<8x32xf32> to vector<8x8xf32>
    %cst_342 = arith.constant dense<0.000000e+00> : vector<8x8xf32>
    %826 = tpu.matmul %823, %824, %cst_342 {dimension_numbers = #tpu.dot_dimension_numbers<[1], [1], [0], [0], [0, 0, 1, 0], [], []>} : vector<8x8xf32>, vector<8x8xf32>, vector<8x8xf32> -> vector<8x8xf32>
    %827 = arith.addf %826, %65 : vector<8x8xf32>
    %cst_343 = arith.constant dense<0xFF800000> : vector<8xf32>
    %828 = vector.multi_reduction <maximumf>, %827, %cst_343 [1] : vector<8x8xf32> to vector<8xf32>
    %829 = vector.shape_cast %828 : vector<8xf32> to vector<8x1xf32>
    %830 = vector.broadcast %829 : vector<8x1xf32> to vector<8x8xf32>
    %831 = arith.subf %827, %830 : vector<8x8xf32>
    %832 = math.exp %831 : vector<8x8xf32>
    %cst_344 = arith.constant dense<0.000000e+00> : vector<8xf32>
    %833 = vector.multi_reduction <add>, %832, %cst_344 [1] : vector<8x8xf32> to vector<8xf32>
    %834 = vector.shape_cast %833 : vector<8xf32> to vector<8x1xf32>
    %835 = tpu.reciprocal %834 {approx = true} : vector<8x1xf32> -> vector<8x1xf32>
    %836 = vector.broadcast %835 : vector<8x1xf32> to vector<8x8xf32>
    %837 = arith.mulf %832, %836 : vector<8x8xf32>
    %cst_345 = arith.constant dense<0.000000e+00> : vector<8x8xf32>
    %838 = tpu.matmul %837, %825, %cst_345 {dimension_numbers = #tpu.dot_dimension_numbers<[1], [0], [0], [1], [0, 0, 1, 1], [], []>} : vector<8x8xf32>, vector<8x8xf32>, vector<8x8xf32> -> vector<8x8xf32>
    %839 = vector.extract_strided_slice %804 {offsets = [8, 0], sizes = [8, 32], strides = [1, 1]} : vector<32x32xf32> to vector<8x32xf32>
    %cst_346 = arith.constant dense<0.000000e+00> : vector<8x32xf32>
    %840 = tpu.matmul %838, %839, %cst_346 {dimension_numbers = #tpu.dot_dimension_numbers<[1], [0], [0], [1], [0, 0, 1, 1], [], []>} : vector<8x8xf32>, vector<8x32xf32>, vector<8x32xf32> -> vector<8x32xf32>
    %841 = arith.addf %822, %840 : vector<8x32xf32>
    %842 = vector.extract_strided_slice %800 {offsets = [0, 16], sizes = [8, 8], strides = [1, 1]} : vector<8x32xf32> to vector<8x8xf32>
    %843 = vector.extract_strided_slice %801 {offsets = [0, 16], sizes = [8, 8], strides = [1, 1]} : vector<8x32xf32> to vector<8x8xf32>
    %844 = vector.extract_strided_slice %802 {offsets = [0, 16], sizes = [8, 8], strides = [1, 1]} : vector<8x32xf32> to vector<8x8xf32>
    %cst_347 = arith.constant dense<0.000000e+00> : vector<8x8xf32>
    %845 = tpu.matmul %842, %843, %cst_347 {dimension_numbers = #tpu.dot_dimension_numbers<[1], [1], [0], [0], [0, 0, 1, 0], [], []>} : vector<8x8xf32>, vector<8x8xf32>, vector<8x8xf32> -> vector<8x8xf32>
    %846 = arith.addf %845, %65 : vector<8x8xf32>
    %cst_348 = arith.constant dense<0xFF800000> : vector<8xf32>
    %847 = vector.multi_reduction <maximumf>, %846, %cst_348 [1] : vector<8x8xf32> to vector<8xf32>
    %848 = vector.shape_cast %847 : vector<8xf32> to vector<8x1xf32>
    %849 = vector.broadcast %848 : vector<8x1xf32> to vector<8x8xf32>
    %850 = arith.subf %846, %849 : vector<8x8xf32>
    %851 = math.exp %850 : vector<8x8xf32>
    %cst_349 = arith.constant dense<0.000000e+00> : vector<8xf32>
    %852 = vector.multi_reduction <add>, %851, %cst_349 [1] : vector<8x8xf32> to vector<8xf32>
    %853 = vector.shape_cast %852 : vector<8xf32> to vector<8x1xf32>
    %854 = tpu.reciprocal %853 {approx = true} : vector<8x1xf32> -> vector<8x1xf32>
    %855 = vector.broadcast %854 : vector<8x1xf32> to vector<8x8xf32>
    %856 = arith.mulf %851, %855 : vector<8x8xf32>
    %cst_350 = arith.constant dense<0.000000e+00> : vector<8x8xf32>
    %857 = tpu.matmul %856, %844, %cst_350 {dimension_numbers = #tpu.dot_dimension_numbers<[1], [0], [0], [1], [0, 0, 1, 1], [], []>} : vector<8x8xf32>, vector<8x8xf32>, vector<8x8xf32> -> vector<8x8xf32>
    %858 = vector.extract_strided_slice %804 {offsets = [16, 0], sizes = [8, 32], strides = [1, 1]} : vector<32x32xf32> to vector<8x32xf32>
    %cst_351 = arith.constant dense<0.000000e+00> : vector<8x32xf32>
    %859 = tpu.matmul %857, %858, %cst_351 {dimension_numbers = #tpu.dot_dimension_numbers<[1], [0], [0], [1], [0, 0, 1, 1], [], []>} : vector<8x8xf32>, vector<8x32xf32>, vector<8x32xf32> -> vector<8x32xf32>
    %860 = arith.addf %841, %859 : vector<8x32xf32>
    %861 = vector.extract_strided_slice %800 {offsets = [0, 24], sizes = [8, 8], strides = [1, 1]} : vector<8x32xf32> to vector<8x8xf32>
    %862 = vector.extract_strided_slice %801 {offsets = [0, 24], sizes = [8, 8], strides = [1, 1]} : vector<8x32xf32> to vector<8x8xf32>
    %863 = vector.extract_strided_slice %802 {offsets = [0, 24], sizes = [8, 8], strides = [1, 1]} : vector<8x32xf32> to vector<8x8xf32>
    %cst_352 = arith.constant dense<0.000000e+00> : vector<8x8xf32>
    %864 = tpu.matmul %861, %862, %cst_352 {dimension_numbers = #tpu.dot_dimension_numbers<[1], [1], [0], [0], [0, 0, 1, 0], [], []>} : vector<8x8xf32>, vector<8x8xf32>, vector<8x8xf32> -> vector<8x8xf32>
    %865 = arith.addf %864, %65 : vector<8x8xf32>
    %cst_353 = arith.constant dense<0xFF800000> : vector<8xf32>
    %866 = vector.multi_reduction <maximumf>, %865, %cst_353 [1] : vector<8x8xf32> to vector<8xf32>
    %867 = vector.shape_cast %866 : vector<8xf32> to vector<8x1xf32>
    %868 = vector.broadcast %867 : vector<8x1xf32> to vector<8x8xf32>
    %869 = arith.subf %865, %868 : vector<8x8xf32>
    %870 = math.exp %869 : vector<8x8xf32>
    %cst_354 = arith.constant dense<0.000000e+00> : vector<8xf32>
    %871 = vector.multi_reduction <add>, %870, %cst_354 [1] : vector<8x8xf32> to vector<8xf32>
    %872 = vector.shape_cast %871 : vector<8xf32> to vector<8x1xf32>
    %873 = tpu.reciprocal %872 {approx = true} : vector<8x1xf32> -> vector<8x1xf32>
    %874 = vector.broadcast %873 : vector<8x1xf32> to vector<8x8xf32>
    %875 = arith.mulf %870, %874 : vector<8x8xf32>
    %cst_355 = arith.constant dense<0.000000e+00> : vector<8x8xf32>
    %876 = tpu.matmul %875, %863, %cst_355 {dimension_numbers = #tpu.dot_dimension_numbers<[1], [0], [0], [1], [0, 0, 1, 1], [], []>} : vector<8x8xf32>, vector<8x8xf32>, vector<8x8xf32> -> vector<8x8xf32>
    %877 = vector.extract_strided_slice %804 {offsets = [24, 0], sizes = [8, 32], strides = [1, 1]} : vector<32x32xf32> to vector<8x32xf32>
    %cst_356 = arith.constant dense<0.000000e+00> : vector<8x32xf32>
    %878 = tpu.matmul %876, %877, %cst_356 {dimension_numbers = #tpu.dot_dimension_numbers<[1], [0], [0], [1], [0, 0, 1, 1], [], []>} : vector<8x8xf32>, vector<8x32xf32>, vector<8x32xf32> -> vector<8x32xf32>
    %879 = arith.addf %860, %878 : vector<8x32xf32>
    %c3_357 = arith.constant 3 : index
    %c0_358 = arith.constant 0 : index
    %c0_359 = arith.constant 0 : index
    %880 = vector.load %arg10[%c3_357, %c0_358, %c0_359] : memref<6x1x32xf32, #tpu.memory_space<vmem>>, vector<1x1x32xf32>
    %881 = vector.shape_cast %880 : vector<1x1x32xf32> to vector<1x32xf32>
    %882 = vector.broadcast %881 : vector<1x32xf32> to vector<8x32xf32>
    %883 = arith.addf %879, %882 : vector<8x32xf32>
    %884 = arith.addf %792, %883 : vector<8x32xf32>
    %cst_360 = arith.constant dense<0.000000e+00> : vector<8xf32>
    %885 = vector.multi_reduction <add>, %884, %cst_360 [1] : vector<8x32xf32> to vector<8xf32>
    %886 = vector.shape_cast %885 : vector<8xf32> to vector<8x1xf32>
    %cst_361 = arith.constant 3.200000e+01 : f32
    %887 = vector.broadcast %cst_361 : f32 to vector<8x1xf32>
    %888 = arith.divf %886, %887 : vector<8x1xf32>
    %889 = vector.broadcast %888 : vector<8x1xf32> to vector<8x32xf32>
    %890 = arith.subf %884, %889 : vector<8x32xf32>
    %891 = arith.mulf %890, %890 : vector<8x32xf32>
    %cst_362 = arith.constant dense<0.000000e+00> : vector<8xf32>
    %892 = vector.multi_reduction <add>, %891, %cst_362 [1] : vector<8x32xf32> to vector<8xf32>
    %893 = vector.shape_cast %892 : vector<8xf32> to vector<8x1xf32>
    %cst_363 = arith.constant 3.200000e+01 : f32
    %894 = vector.broadcast %cst_363 : f32 to vector<8x1xf32>
    %895 = arith.divf %893, %894 : vector<8x1xf32>
    %896 = vector.broadcast %888 : vector<8x1xf32> to vector<8x32xf32>
    %897 = arith.subf %884, %896 : vector<8x32xf32>
    %cst_364 = arith.constant 9.99999974E-6 : f32
    %898 = vector.broadcast %cst_364 : f32 to vector<8x1xf32>
    %899 = arith.addf %895, %898 : vector<8x1xf32>
    %900 = math.rsqrt %899 : vector<8x1xf32>
    %901 = vector.broadcast %900 : vector<8x1xf32> to vector<8x32xf32>
    %902 = arith.mulf %897, %901 : vector<8x32xf32>
    %c7 = arith.constant 7 : index
    %c0_365 = arith.constant 0 : index
    %c0_366 = arith.constant 0 : index
    %903 = vector.load %arg5[%c7, %c0_365, %c0_366] : memref<12x1x32xf32, #tpu.memory_space<vmem>>, vector<1x1x32xf32>
    %904 = vector.shape_cast %903 : vector<1x1x32xf32> to vector<1x32xf32>
    %905 = vector.broadcast %904 : vector<1x32xf32> to vector<8x32xf32>
    %906 = arith.mulf %902, %905 : vector<8x32xf32>
    %c7_367 = arith.constant 7 : index
    %c0_368 = arith.constant 0 : index
    %c0_369 = arith.constant 0 : index
    %907 = vector.load %arg6[%c7_367, %c0_368, %c0_369] : memref<12x1x32xf32, #tpu.memory_space<vmem>>, vector<1x1x32xf32>
    %908 = vector.shape_cast %907 : vector<1x1x32xf32> to vector<1x32xf32>
    %909 = vector.broadcast %908 : vector<1x32xf32> to vector<8x32xf32>
    %910 = arith.addf %906, %909 : vector<8x32xf32>
    %c5_370 = arith.constant 5 : index
    %c0_371 = arith.constant 0 : index
    %c0_372 = arith.constant 0 : index
    %911 = vector.load %arg7[%c5_370, %c0_371, %c0_372] : memref<6x32x96xf32, #tpu.memory_space<vmem>>, vector<1x32x96xf32>
    %912 = vector.shape_cast %911 : vector<1x32x96xf32> to vector<32x96xf32>
    %c5_373 = arith.constant 5 : index
    %c0_374 = arith.constant 0 : index
    %c0_375 = arith.constant 0 : index
    %913 = vector.load %arg8[%c5_373, %c0_374, %c0_375] : memref<6x1x96xf32, #tpu.memory_space<vmem>>, vector<1x1x96xf32>
    %914 = vector.shape_cast %913 : vector<1x1x96xf32> to vector<1x96xf32>
    %915 = vector.extract_strided_slice %912 {offsets = [0, 0], sizes = [32, 32], strides = [1, 1]} : vector<32x96xf32> to vector<32x32xf32>
    %cst_376 = arith.constant dense<0.000000e+00> : vector<8x32xf32>
    %916 = tpu.matmul %910, %915, %cst_376 {dimension_numbers = #tpu.dot_dimension_numbers<[1], [0], [0], [1], [0, 0, 1, 1], [], []>} : vector<8x32xf32>, vector<32x32xf32>, vector<8x32xf32> -> vector<8x32xf32>
    %917 = vector.extract_strided_slice %914 {offsets = [0, 0], sizes = [1, 32], strides = [1, 1]} : vector<1x96xf32> to vector<1x32xf32>
    %918 = vector.broadcast %917 : vector<1x32xf32> to vector<8x32xf32>
    %919 = arith.addf %916, %918 : vector<8x32xf32>
    %920 = vector.extract_strided_slice %912 {offsets = [0, 32], sizes = [32, 64], strides = [1, 1]} : vector<32x96xf32> to vector<32x64xf32>
    %cst_377 = arith.constant dense<0.000000e+00> : vector<8x64xf32>
    %921 = tpu.matmul %467, %920, %cst_377 {dimension_numbers = #tpu.dot_dimension_numbers<[1], [0], [0], [1], [0, 0, 1, 1], [], []>} : vector<8x32xf32>, vector<32x64xf32>, vector<8x64xf32> -> vector<8x64xf32>
    %922 = vector.extract_strided_slice %914 {offsets = [0, 32], sizes = [1, 64], strides = [1, 1]} : vector<1x96xf32> to vector<1x64xf32>
    %923 = vector.broadcast %922 : vector<1x64xf32> to vector<8x64xf32>
    %924 = arith.addf %921, %923 : vector<8x64xf32>
    %925 = vector.extract_strided_slice %924 {offsets = [0, 0], sizes = [8, 32], strides = [1, 1]} : vector<8x64xf32> to vector<8x32xf32>
    %926 = vector.extract_strided_slice %924 {offsets = [0, 32], sizes = [8, 32], strides = [1, 1]} : vector<8x64xf32> to vector<8x32xf32>
    %c5_378 = arith.constant 5 : index
    %c0_379 = arith.constant 0 : index
    %c0_380 = arith.constant 0 : index
    %927 = vector.load %arg9[%c5_378, %c0_379, %c0_380] : memref<6x32x32xf32, #tpu.memory_space<vmem>>, vector<1x32x32xf32>
    %928 = vector.shape_cast %927 : vector<1x32x32xf32> to vector<32x32xf32>
    %929 = vector.extract_strided_slice %919 {offsets = [0, 0], sizes = [8, 8], strides = [1, 1]} : vector<8x32xf32> to vector<8x8xf32>
    %930 = vector.extract_strided_slice %925 {offsets = [0, 0], sizes = [8, 8], strides = [1, 1]} : vector<8x32xf32> to vector<8x8xf32>
    %931 = vector.extract_strided_slice %926 {offsets = [0, 0], sizes = [8, 8], strides = [1, 1]} : vector<8x32xf32> to vector<8x8xf32>
    %cst_381 = arith.constant dense<0.000000e+00> : vector<8x8xf32>
    %932 = tpu.matmul %929, %930, %cst_381 {dimension_numbers = #tpu.dot_dimension_numbers<[1], [1], [0], [0], [0, 0, 1, 0], [], []>} : vector<8x8xf32>, vector<8x8xf32>, vector<8x8xf32> -> vector<8x8xf32>
    %cst_382 = arith.constant dense<0xFF800000> : vector<8xf32>
    %933 = vector.multi_reduction <maximumf>, %932, %cst_382 [1] : vector<8x8xf32> to vector<8xf32>
    %934 = vector.shape_cast %933 : vector<8xf32> to vector<8x1xf32>
    %935 = vector.broadcast %934 : vector<8x1xf32> to vector<8x8xf32>
    %936 = arith.subf %932, %935 : vector<8x8xf32>
    %937 = math.exp %936 : vector<8x8xf32>
    %cst_383 = arith.constant dense<0.000000e+00> : vector<8xf32>
    %938 = vector.multi_reduction <add>, %937, %cst_383 [1] : vector<8x8xf32> to vector<8xf32>
    %939 = vector.shape_cast %938 : vector<8xf32> to vector<8x1xf32>
    %940 = tpu.reciprocal %939 {approx = true} : vector<8x1xf32> -> vector<8x1xf32>
    %941 = vector.broadcast %940 : vector<8x1xf32> to vector<8x8xf32>
    %942 = arith.mulf %937, %941 : vector<8x8xf32>
    %cst_384 = arith.constant dense<0.000000e+00> : vector<8x8xf32>
    %943 = tpu.matmul %942, %931, %cst_384 {dimension_numbers = #tpu.dot_dimension_numbers<[1], [0], [0], [1], [0, 0, 1, 1], [], []>} : vector<8x8xf32>, vector<8x8xf32>, vector<8x8xf32> -> vector<8x8xf32>
    %944 = vector.extract_strided_slice %928 {offsets = [0, 0], sizes = [8, 32], strides = [1, 1]} : vector<32x32xf32> to vector<8x32xf32>
    %cst_385 = arith.constant dense<0.000000e+00> : vector<8x32xf32>
    %945 = tpu.matmul %943, %944, %cst_385 {dimension_numbers = #tpu.dot_dimension_numbers<[1], [0], [0], [1], [0, 0, 1, 1], [], []>} : vector<8x8xf32>, vector<8x32xf32>, vector<8x32xf32> -> vector<8x32xf32>
    %946 = vector.extract_strided_slice %919 {offsets = [0, 8], sizes = [8, 8], strides = [1, 1]} : vector<8x32xf32> to vector<8x8xf32>
    %947 = vector.extract_strided_slice %925 {offsets = [0, 8], sizes = [8, 8], strides = [1, 1]} : vector<8x32xf32> to vector<8x8xf32>
    %948 = vector.extract_strided_slice %926 {offsets = [0, 8], sizes = [8, 8], strides = [1, 1]} : vector<8x32xf32> to vector<8x8xf32>
    %cst_386 = arith.constant dense<0.000000e+00> : vector<8x8xf32>
    %949 = tpu.matmul %946, %947, %cst_386 {dimension_numbers = #tpu.dot_dimension_numbers<[1], [1], [0], [0], [0, 0, 1, 0], [], []>} : vector<8x8xf32>, vector<8x8xf32>, vector<8x8xf32> -> vector<8x8xf32>
    %cst_387 = arith.constant dense<0xFF800000> : vector<8xf32>
    %950 = vector.multi_reduction <maximumf>, %949, %cst_387 [1] : vector<8x8xf32> to vector<8xf32>
    %951 = vector.shape_cast %950 : vector<8xf32> to vector<8x1xf32>
    %952 = vector.broadcast %951 : vector<8x1xf32> to vector<8x8xf32>
    %953 = arith.subf %949, %952 : vector<8x8xf32>
    %954 = math.exp %953 : vector<8x8xf32>
    %cst_388 = arith.constant dense<0.000000e+00> : vector<8xf32>
    %955 = vector.multi_reduction <add>, %954, %cst_388 [1] : vector<8x8xf32> to vector<8xf32>
    %956 = vector.shape_cast %955 : vector<8xf32> to vector<8x1xf32>
    %957 = tpu.reciprocal %956 {approx = true} : vector<8x1xf32> -> vector<8x1xf32>
    %958 = vector.broadcast %957 : vector<8x1xf32> to vector<8x8xf32>
    %959 = arith.mulf %954, %958 : vector<8x8xf32>
    %cst_389 = arith.constant dense<0.000000e+00> : vector<8x8xf32>
    %960 = tpu.matmul %959, %948, %cst_389 {dimension_numbers = #tpu.dot_dimension_numbers<[1], [0], [0], [1], [0, 0, 1, 1], [], []>} : vector<8x8xf32>, vector<8x8xf32>, vector<8x8xf32> -> vector<8x8xf32>
    %961 = vector.extract_strided_slice %928 {offsets = [8, 0], sizes = [8, 32], strides = [1, 1]} : vector<32x32xf32> to vector<8x32xf32>
    %cst_390 = arith.constant dense<0.000000e+00> : vector<8x32xf32>
    %962 = tpu.matmul %960, %961, %cst_390 {dimension_numbers = #tpu.dot_dimension_numbers<[1], [0], [0], [1], [0, 0, 1, 1], [], []>} : vector<8x8xf32>, vector<8x32xf32>, vector<8x32xf32> -> vector<8x32xf32>
    %963 = arith.addf %945, %962 : vector<8x32xf32>
    %964 = vector.extract_strided_slice %919 {offsets = [0, 16], sizes = [8, 8], strides = [1, 1]} : vector<8x32xf32> to vector<8x8xf32>
    %965 = vector.extract_strided_slice %925 {offsets = [0, 16], sizes = [8, 8], strides = [1, 1]} : vector<8x32xf32> to vector<8x8xf32>
    %966 = vector.extract_strided_slice %926 {offsets = [0, 16], sizes = [8, 8], strides = [1, 1]} : vector<8x32xf32> to vector<8x8xf32>
    %cst_391 = arith.constant dense<0.000000e+00> : vector<8x8xf32>
    %967 = tpu.matmul %964, %965, %cst_391 {dimension_numbers = #tpu.dot_dimension_numbers<[1], [1], [0], [0], [0, 0, 1, 0], [], []>} : vector<8x8xf32>, vector<8x8xf32>, vector<8x8xf32> -> vector<8x8xf32>
    %cst_392 = arith.constant dense<0xFF800000> : vector<8xf32>
    %968 = vector.multi_reduction <maximumf>, %967, %cst_392 [1] : vector<8x8xf32> to vector<8xf32>
    %969 = vector.shape_cast %968 : vector<8xf32> to vector<8x1xf32>
    %970 = vector.broadcast %969 : vector<8x1xf32> to vector<8x8xf32>
    %971 = arith.subf %967, %970 : vector<8x8xf32>
    %972 = math.exp %971 : vector<8x8xf32>
    %cst_393 = arith.constant dense<0.000000e+00> : vector<8xf32>
    %973 = vector.multi_reduction <add>, %972, %cst_393 [1] : vector<8x8xf32> to vector<8xf32>
    %974 = vector.shape_cast %973 : vector<8xf32> to vector<8x1xf32>
    %975 = tpu.reciprocal %974 {approx = true} : vector<8x1xf32> -> vector<8x1xf32>
    %976 = vector.broadcast %975 : vector<8x1xf32> to vector<8x8xf32>
    %977 = arith.mulf %972, %976 : vector<8x8xf32>
    %cst_394 = arith.constant dense<0.000000e+00> : vector<8x8xf32>
    %978 = tpu.matmul %977, %966, %cst_394 {dimension_numbers = #tpu.dot_dimension_numbers<[1], [0], [0], [1], [0, 0, 1, 1], [], []>} : vector<8x8xf32>, vector<8x8xf32>, vector<8x8xf32> -> vector<8x8xf32>
    %979 = vector.extract_strided_slice %928 {offsets = [16, 0], sizes = [8, 32], strides = [1, 1]} : vector<32x32xf32> to vector<8x32xf32>
    %cst_395 = arith.constant dense<0.000000e+00> : vector<8x32xf32>
    %980 = tpu.matmul %978, %979, %cst_395 {dimension_numbers = #tpu.dot_dimension_numbers<[1], [0], [0], [1], [0, 0, 1, 1], [], []>} : vector<8x8xf32>, vector<8x32xf32>, vector<8x32xf32> -> vector<8x32xf32>
    %981 = arith.addf %963, %980 : vector<8x32xf32>
    %982 = vector.extract_strided_slice %919 {offsets = [0, 24], sizes = [8, 8], strides = [1, 1]} : vector<8x32xf32> to vector<8x8xf32>
    %983 = vector.extract_strided_slice %925 {offsets = [0, 24], sizes = [8, 8], strides = [1, 1]} : vector<8x32xf32> to vector<8x8xf32>
    %984 = vector.extract_strided_slice %926 {offsets = [0, 24], sizes = [8, 8], strides = [1, 1]} : vector<8x32xf32> to vector<8x8xf32>
    %cst_396 = arith.constant dense<0.000000e+00> : vector<8x8xf32>
    %985 = tpu.matmul %982, %983, %cst_396 {dimension_numbers = #tpu.dot_dimension_numbers<[1], [1], [0], [0], [0, 0, 1, 0], [], []>} : vector<8x8xf32>, vector<8x8xf32>, vector<8x8xf32> -> vector<8x8xf32>
    %cst_397 = arith.constant dense<0xFF800000> : vector<8xf32>
    %986 = vector.multi_reduction <maximumf>, %985, %cst_397 [1] : vector<8x8xf32> to vector<8xf32>
    %987 = vector.shape_cast %986 : vector<8xf32> to vector<8x1xf32>
    %988 = vector.broadcast %987 : vector<8x1xf32> to vector<8x8xf32>
    %989 = arith.subf %985, %988 : vector<8x8xf32>
    %990 = math.exp %989 : vector<8x8xf32>
    %cst_398 = arith.constant dense<0.000000e+00> : vector<8xf32>
    %991 = vector.multi_reduction <add>, %990, %cst_398 [1] : vector<8x8xf32> to vector<8xf32>
    %992 = vector.shape_cast %991 : vector<8xf32> to vector<8x1xf32>
    %993 = tpu.reciprocal %992 {approx = true} : vector<8x1xf32> -> vector<8x1xf32>
    %994 = vector.broadcast %993 : vector<8x1xf32> to vector<8x8xf32>
    %995 = arith.mulf %990, %994 : vector<8x8xf32>
    %cst_399 = arith.constant dense<0.000000e+00> : vector<8x8xf32>
    %996 = tpu.matmul %995, %984, %cst_399 {dimension_numbers = #tpu.dot_dimension_numbers<[1], [0], [0], [1], [0, 0, 1, 1], [], []>} : vector<8x8xf32>, vector<8x8xf32>, vector<8x8xf32> -> vector<8x8xf32>
    %997 = vector.extract_strided_slice %928 {offsets = [24, 0], sizes = [8, 32], strides = [1, 1]} : vector<32x32xf32> to vector<8x32xf32>
    %cst_400 = arith.constant dense<0.000000e+00> : vector<8x32xf32>
    %998 = tpu.matmul %996, %997, %cst_400 {dimension_numbers = #tpu.dot_dimension_numbers<[1], [0], [0], [1], [0, 0, 1, 1], [], []>} : vector<8x8xf32>, vector<8x32xf32>, vector<8x32xf32> -> vector<8x32xf32>
    %999 = arith.addf %981, %998 : vector<8x32xf32>
    %c5_401 = arith.constant 5 : index
    %c0_402 = arith.constant 0 : index
    %c0_403 = arith.constant 0 : index
    %1000 = vector.load %arg10[%c5_401, %c0_402, %c0_403] : memref<6x1x32xf32, #tpu.memory_space<vmem>>, vector<1x1x32xf32>
    %1001 = vector.shape_cast %1000 : vector<1x1x32xf32> to vector<1x32xf32>
    %1002 = vector.broadcast %1001 : vector<1x32xf32> to vector<8x32xf32>
    %1003 = arith.addf %999, %1002 : vector<8x32xf32>
    %1004 = arith.addf %910, %1003 : vector<8x32xf32>
    %cst_404 = arith.constant dense<0.000000e+00> : vector<8xf32>
    %1005 = vector.multi_reduction <add>, %1004, %cst_404 [1] : vector<8x32xf32> to vector<8xf32>
    %1006 = vector.shape_cast %1005 : vector<8xf32> to vector<8x1xf32>
    %cst_405 = arith.constant 3.200000e+01 : f32
    %1007 = vector.broadcast %cst_405 : f32 to vector<8x1xf32>
    %1008 = arith.divf %1006, %1007 : vector<8x1xf32>
    %1009 = vector.broadcast %1008 : vector<8x1xf32> to vector<8x32xf32>
    %1010 = arith.subf %1004, %1009 : vector<8x32xf32>
    %1011 = arith.mulf %1010, %1010 : vector<8x32xf32>
    %cst_406 = arith.constant dense<0.000000e+00> : vector<8xf32>
    %1012 = vector.multi_reduction <add>, %1011, %cst_406 [1] : vector<8x32xf32> to vector<8xf32>
    %1013 = vector.shape_cast %1012 : vector<8xf32> to vector<8x1xf32>
    %cst_407 = arith.constant 3.200000e+01 : f32
    %1014 = vector.broadcast %cst_407 : f32 to vector<8x1xf32>
    %1015 = arith.divf %1013, %1014 : vector<8x1xf32>
    %1016 = vector.broadcast %1008 : vector<8x1xf32> to vector<8x32xf32>
    %1017 = arith.subf %1004, %1016 : vector<8x32xf32>
    %cst_408 = arith.constant 9.99999974E-6 : f32
    %1018 = vector.broadcast %cst_408 : f32 to vector<8x1xf32>
    %1019 = arith.addf %1015, %1018 : vector<8x1xf32>
    %1020 = math.rsqrt %1019 : vector<8x1xf32>
    %1021 = vector.broadcast %1020 : vector<8x1xf32> to vector<8x32xf32>
    %1022 = arith.mulf %1017, %1021 : vector<8x32xf32>
    %c10 = arith.constant 10 : index
    %c0_409 = arith.constant 0 : index
    %c0_410 = arith.constant 0 : index
    %1023 = vector.load %arg5[%c10, %c0_409, %c0_410] : memref<12x1x32xf32, #tpu.memory_space<vmem>>, vector<1x1x32xf32>
    %1024 = vector.shape_cast %1023 : vector<1x1x32xf32> to vector<1x32xf32>
    %1025 = vector.broadcast %1024 : vector<1x32xf32> to vector<8x32xf32>
    %1026 = arith.mulf %1022, %1025 : vector<8x32xf32>
    %c10_411 = arith.constant 10 : index
    %c0_412 = arith.constant 0 : index
    %c0_413 = arith.constant 0 : index
    %1027 = vector.load %arg6[%c10_411, %c0_412, %c0_413] : memref<12x1x32xf32, #tpu.memory_space<vmem>>, vector<1x1x32xf32>
    %1028 = vector.shape_cast %1027 : vector<1x1x32xf32> to vector<1x32xf32>
    %1029 = vector.broadcast %1028 : vector<1x32xf32> to vector<8x32xf32>
    %1030 = arith.addf %1026, %1029 : vector<8x32xf32>
    %c3_414 = arith.constant 3 : index
    %c0_415 = arith.constant 0 : index
    %c0_416 = arith.constant 0 : index
    %1031 = vector.load %arg11[%c3_414, %c0_415, %c0_416] : memref<4x32x64xf32, #tpu.memory_space<vmem>>, vector<1x32x64xf32>
    %1032 = vector.shape_cast %1031 : vector<1x32x64xf32> to vector<32x64xf32>
    %cst_417 = arith.constant dense<0.000000e+00> : vector<8x64xf32>
    %1033 = tpu.matmul %1030, %1032, %cst_417 {dimension_numbers = #tpu.dot_dimension_numbers<[1], [0], [0], [1], [0, 0, 1, 1], [], []>} : vector<8x32xf32>, vector<32x64xf32>, vector<8x64xf32> -> vector<8x64xf32>
    %c3_418 = arith.constant 3 : index
    %c0_419 = arith.constant 0 : index
    %c0_420 = arith.constant 0 : index
    %1034 = vector.load %arg12[%c3_418, %c0_419, %c0_420] : memref<4x1x64xf32, #tpu.memory_space<vmem>>, vector<1x1x64xf32>
    %1035 = vector.shape_cast %1034 : vector<1x1x64xf32> to vector<1x64xf32>
    %1036 = vector.broadcast %1035 : vector<1x64xf32> to vector<8x64xf32>
    %1037 = arith.addf %1033, %1036 : vector<8x64xf32>
    %cst_421 = arith.constant 5.000000e-01 : f32
    %1038 = vector.broadcast %cst_421 : f32 to vector<8x64xf32>
    %1039 = arith.mulf %1038, %1037 : vector<8x64xf32>
    %cst_422 = arith.constant 0.707106769 : f32
    %1040 = vector.broadcast %cst_422 : f32 to vector<8x64xf32>
    %1041 = arith.mulf %1037, %1040 : vector<8x64xf32>
    %cst_423 = arith.constant -4.000000e+00 : f32
    %cst_424 = arith.constant 4.000000e+00 : f32
    %1042 = vector.broadcast %cst_423 : f32 to vector<8x64xf32>
    %1043 = arith.maximumf %1042, %1041 : vector<8x64xf32>
    %1044 = vector.broadcast %cst_424 : f32 to vector<8x64xf32>
    %1045 = arith.minimumf %1044, %1043 : vector<8x64xf32>
    %1046 = arith.mulf %1045, %1045 : vector<8x64xf32>
    %cst_425 = arith.constant -2.72614237E-10 : f32
    %1047 = vector.broadcast %cst_425 : f32 to vector<8x64xf32>
    %1048 = arith.mulf %1046, %1047 : vector<8x64xf32>
    %cst_426 = arith.constant 2.77068146E-8 : f32
    %1049 = vector.broadcast %cst_426 : f32 to vector<8x64xf32>
    %1050 = arith.addf %1048, %1049 : vector<8x64xf32>
    %1051 = arith.mulf %1046, %1050 : vector<8x64xf32>
    %cst_427 = arith.constant -2.10102394E-6 : f32
    %1052 = vector.broadcast %cst_427 : f32 to vector<8x64xf32>
    %1053 = arith.addf %1051, %1052 : vector<8x64xf32>
    %1054 = arith.mulf %1046, %1053 : vector<8x64xf32>
    %cst_428 = arith.constant -5.69250624E-5 : f32
    %1055 = vector.broadcast %cst_428 : f32 to vector<8x64xf32>
    %1056 = arith.addf %1054, %1055 : vector<8x64xf32>
    %1057 = arith.mulf %1046, %1056 : vector<8x64xf32>
    %cst_429 = arith.constant -7.34990637E-4 : f32
    %1058 = vector.broadcast %cst_429 : f32 to vector<8x64xf32>
    %1059 = arith.addf %1057, %1058 : vector<8x64xf32>
    %1060 = arith.mulf %1046, %1059 : vector<8x64xf32>
    %cst_430 = arith.constant -2.954600e-03 : f32
    %1061 = vector.broadcast %cst_430 : f32 to vector<8x64xf32>
    %1062 = arith.addf %1060, %1061 : vector<8x64xf32>
    %1063 = arith.mulf %1046, %1062 : vector<8x64xf32>
    %cst_431 = arith.constant -0.0160960332 : f32
    %1064 = vector.broadcast %cst_431 : f32 to vector<8x64xf32>
    %1065 = arith.addf %1063, %1064 : vector<8x64xf32>
    %1066 = arith.mulf %1045, %1065 : vector<8x64xf32>
    %cst_432 = arith.constant -1.45660715E-5 : f32
    %1067 = vector.broadcast %cst_432 : f32 to vector<8x64xf32>
    %1068 = arith.mulf %1046, %1067 : vector<8x64xf32>
    %cst_433 = arith.constant -2.13374049E-4 : f32
    %1069 = vector.broadcast %cst_433 : f32 to vector<8x64xf32>
    %1070 = arith.addf %1068, %1069 : vector<8x64xf32>
    %1071 = arith.mulf %1046, %1070 : vector<8x64xf32>
    %cst_434 = arith.constant -0.00168282702 : f32
    %1072 = vector.broadcast %cst_434 : f32 to vector<8x64xf32>
    %1073 = arith.addf %1071, %1072 : vector<8x64xf32>
    %1074 = arith.mulf %1046, %1073 : vector<8x64xf32>
    %cst_435 = arith.constant -0.00737332925 : f32
    %1075 = vector.broadcast %cst_435 : f32 to vector<8x64xf32>
    %1076 = arith.addf %1074, %1075 : vector<8x64xf32>
    %1077 = arith.mulf %1046, %1076 : vector<8x64xf32>
    %cst_436 = arith.constant -0.0142647391 : f32
    %1078 = vector.broadcast %cst_436 : f32 to vector<8x64xf32>
    %1079 = arith.addf %1077, %1078 : vector<8x64xf32>
    %1080 = arith.divf %1066, %1079 : vector<8x64xf32>
    %cst_437 = arith.constant 1.000000e+00 : f32
    %1081 = vector.broadcast %cst_437 : f32 to vector<8x64xf32>
    %1082 = arith.addf %1081, %1080 : vector<8x64xf32>
    %1083 = arith.mulf %1039, %1082 : vector<8x64xf32>
    %c3_438 = arith.constant 3 : index
    %c0_439 = arith.constant 0 : index
    %c0_440 = arith.constant 0 : index
    %1084 = vector.load %arg13[%c3_438, %c0_439, %c0_440] : memref<4x64x32xf32, #tpu.memory_space<vmem>>, vector<1x64x32xf32>
    %1085 = vector.shape_cast %1084 : vector<1x64x32xf32> to vector<64x32xf32>
    %cst_441 = arith.constant dense<0.000000e+00> : vector<8x32xf32>
    %1086 = tpu.matmul %1083, %1085, %cst_441 {dimension_numbers = #tpu.dot_dimension_numbers<[1], [0], [0], [1], [0, 0, 1, 1], [], []>} : vector<8x64xf32>, vector<64x32xf32>, vector<8x32xf32> -> vector<8x32xf32>
    %c3_442 = arith.constant 3 : index
    %c0_443 = arith.constant 0 : index
    %c0_444 = arith.constant 0 : index
    %1087 = vector.load %arg14[%c3_442, %c0_443, %c0_444] : memref<4x1x32xf32, #tpu.memory_space<vmem>>, vector<1x1x32xf32>
    %1088 = vector.shape_cast %1087 : vector<1x1x32xf32> to vector<1x32xf32>
    %1089 = vector.broadcast %1088 : vector<1x32xf32> to vector<8x32xf32>
    %1090 = arith.addf %1086, %1089 : vector<8x32xf32>
    %1091 = arith.addf %1030, %1090 : vector<8x32xf32>
    %cst_445 = arith.constant dense<0.000000e+00> : vector<8xf32>
    %1092 = vector.multi_reduction <add>, %1091, %cst_445 [1] : vector<8x32xf32> to vector<8xf32>
    %1093 = vector.shape_cast %1092 : vector<8xf32> to vector<8x1xf32>
    %cst_446 = arith.constant 3.200000e+01 : f32
    %1094 = vector.broadcast %cst_446 : f32 to vector<8x1xf32>
    %1095 = arith.divf %1093, %1094 : vector<8x1xf32>
    %1096 = vector.broadcast %1095 : vector<8x1xf32> to vector<8x32xf32>
    %1097 = arith.subf %1091, %1096 : vector<8x32xf32>
    %1098 = arith.mulf %1097, %1097 : vector<8x32xf32>
    %cst_447 = arith.constant dense<0.000000e+00> : vector<8xf32>
    %1099 = vector.multi_reduction <add>, %1098, %cst_447 [1] : vector<8x32xf32> to vector<8xf32>
    %1100 = vector.shape_cast %1099 : vector<8xf32> to vector<8x1xf32>
    %cst_448 = arith.constant 3.200000e+01 : f32
    %1101 = vector.broadcast %cst_448 : f32 to vector<8x1xf32>
    %1102 = arith.divf %1100, %1101 : vector<8x1xf32>
    %1103 = vector.broadcast %1095 : vector<8x1xf32> to vector<8x32xf32>
    %1104 = arith.subf %1091, %1103 : vector<8x32xf32>
    %cst_449 = arith.constant 9.99999974E-6 : f32
    %1105 = vector.broadcast %cst_449 : f32 to vector<8x1xf32>
    %1106 = arith.addf %1102, %1105 : vector<8x1xf32>
    %1107 = math.rsqrt %1106 : vector<8x1xf32>
    %1108 = vector.broadcast %1107 : vector<8x1xf32> to vector<8x32xf32>
    %1109 = arith.mulf %1104, %1108 : vector<8x32xf32>
    %c11 = arith.constant 11 : index
    %c0_450 = arith.constant 0 : index
    %c0_451 = arith.constant 0 : index
    %1110 = vector.load %arg5[%c11, %c0_450, %c0_451] : memref<12x1x32xf32, #tpu.memory_space<vmem>>, vector<1x1x32xf32>
    %1111 = vector.shape_cast %1110 : vector<1x1x32xf32> to vector<1x32xf32>
    %1112 = vector.broadcast %1111 : vector<1x32xf32> to vector<8x32xf32>
    %1113 = arith.mulf %1109, %1112 : vector<8x32xf32>
    %c11_452 = arith.constant 11 : index
    %c0_453 = arith.constant 0 : index
    %c0_454 = arith.constant 0 : index
    %1114 = vector.load %arg6[%c11_452, %c0_453, %c0_454] : memref<12x1x32xf32, #tpu.memory_space<vmem>>, vector<1x1x32xf32>
    %1115 = vector.shape_cast %1114 : vector<1x1x32xf32> to vector<1x32xf32>
    %1116 = vector.broadcast %1115 : vector<1x32xf32> to vector<8x32xf32>
    %1117 = arith.addf %1113, %1116 : vector<8x32xf32>
    %c0_455 = arith.constant 0 : index
    %c0_456 = arith.constant 0 : index
    %c0_457 = arith.constant 0 : index
    %1118 = vector.load %arg15[%c0_455, %c0_456, %c0_457] : memref<1x8x32xf32, #tpu.memory_space<vmem>>, vector<1x8x32xf32>
    %1119 = vector.shape_cast %1118 : vector<1x8x32xf32> to vector<8x32xf32>
    %1120 = vector.shape_cast %1117 : vector<8x32xf32> to vector<1x8x32xf32>
    tpu.vector_store %arg15[%c0_455, %c0_456, %c0_457], %1120 {strides = array<i32>} : memref<1x8x32xf32, #tpu.memory_space<vmem>>, vector<1x8x32xf32>,
    return
  }
  func.func @transform_0(%arg0: i32) -> (i32, i32, i32) {
    %c0_i32 = arith.constant 0 : i32
    %c0_i32_0 = arith.constant 0 : i32
    %c0_i32_1 = arith.constant 0 : i32
    return %arg0, %c0_i32, %c0_i32_0 : i32, i32, i32
  }
  func.func @transform_1(%arg0: i32) -> (i32, i32, i32) {
    %c0_i32 = arith.constant 0 : i32
    %c0_i32_0 = arith.constant 0 : i32
    %c0_i32_1 = arith.constant 0 : i32
    return %arg0, %c0_i32, %c0_i32_0 : i32, i32, i32
  }
  func.func @transform_2(%arg0: i32) -> (i32, i32) {
    %c0_i32 = arith.constant 0 : i32
    %c0_i32_0 = arith.constant 0 : i32
    %c0_i32_1 = arith.constant 0 : i32
    return %c0_i32, %c0_i32_0 : i32, i32
  }
  func.func @transform_3(%arg0: i32) -> (i32, i32) {
    %c0_i32 = arith.constant 0 : i32
    %c0_i32_0 = arith.constant 0 : i32
    %c0_i32_1 = arith.constant 0 : i32
    return %c0_i32, %c0_i32_0 : i32, i32
  }
  func.func @transform_4(%arg0: i32) -> (i32, i32, i32) {
    %c0_i32 = arith.constant 0 : i32
    %c0_i32_0 = arith.constant 0 : i32
    %c0_i32_1 = arith.constant 0 : i32
    %c0_i32_2 = arith.constant 0 : i32
    return %c0_i32, %c0_i32_0, %c0_i32_1 : i32, i32, i32
  }
  func.func @transform_5(%arg0: i32) -> (i32, i32, i32) {
    %c0_i32 = arith.constant 0 : i32
    %c0_i32_0 = arith.constant 0 : i32
    %c0_i32_1 = arith.constant 0 : i32
    %c0_i32_2 = arith.constant 0 : i32
    return %c0_i32, %c0_i32_0, %c0_i32_1 : i32, i32, i32
  }
  func.func @transform_6(%arg0: i32) -> (i32, i32, i32) {
    %c0_i32 = arith.constant 0 : i32
    %c0_i32_0 = arith.constant 0 : i32
    %c0_i32_1 = arith.constant 0 : i32
    %c0_i32_2 = arith.constant 0 : i32
    return %c0_i32, %c0_i32_0, %c0_i32_1 : i32, i32, i32
  }
  func.func @transform_7(%arg0: i32) -> (i32, i32, i32) {
    %c0_i32 = arith.constant 0 : i32
    %c0_i32_0 = arith.constant 0 : i32
    %c0_i32_1 = arith.constant 0 : i32
    %c0_i32_2 = arith.constant 0 : i32
    return %c0_i32, %c0_i32_0, %c0_i32_1 : i32, i32, i32
  }
  func.func @transform_8(%arg0: i32) -> (i32, i32, i32) {
    %c0_i32 = arith.constant 0 : i32
    %c0_i32_0 = arith.constant 0 : i32
    %c0_i32_1 = arith.constant 0 : i32
    %c0_i32_2 = arith.constant 0 : i32
    return %c0_i32, %c0_i32_0, %c0_i32_1 : i32, i32, i32
  }
  func.func @transform_9(%arg0: i32) -> (i32, i32, i32) {
    %c0_i32 = arith.constant 0 : i32
    %c0_i32_0 = arith.constant 0 : i32
    %c0_i32_1 = arith.constant 0 : i32
    %c0_i32_2 = arith.constant 0 : i32
    return %c0_i32, %c0_i32_0, %c0_i32_1 : i32, i32, i32
  }
  func.func @transform_10(%arg0: i32) -> (i32, i32, i32) {
    %c0_i32 = arith.constant 0 : i32
    %c0_i32_0 = arith.constant 0 : i32
    %c0_i32_1 = arith.constant 0 : i32
    %c0_i32_2 = arith.constant 0 : i32
    return %c0_i32, %c0_i32_0, %c0_i32_1 : i32, i32, i32
  }
  func.func @transform_11(%arg0: i32) -> (i32, i32, i32) {
    %c0_i32 = arith.constant 0 : i32
    %c0_i32_0 = arith.constant 0 : i32
    %c0_i32_1 = arith.constant 0 : i32
    %c0_i32_2 = arith.constant 0 : i32
    return %c0_i32, %c0_i32_0, %c0_i32_1 : i32, i32, i32
  }
  func.func @transform_12(%arg0: i32) -> (i32, i32, i32) {
    %c0_i32 = arith.constant 0 : i32
    %c0_i32_0 = arith.constant 0 : i32
    %c0_i32_1 = arith.constant 0 : i32
    %c0_i32_2 = arith.constant 0 : i32
    return %c0_i32, %c0_i32_0, %c0_i32_1 : i32, i32, i32
  }
  func.func @transform_13(%arg0: i32) -> (i32, i32, i32) {
    %c0_i32 = arith.constant 0 : i32
    %c0_i32_0 = arith.constant 0 : i32
    %c0_i32_1 = arith.constant 0 : i32
    %c0_i32_2 = arith.constant 0 : i32
    return %c0_i32, %c0_i32_0, %c0_i32_1 : i32, i32, i32
  }
  func.func @transform_14(%arg0: i32) -> (i32, i32, i32) {
    %c0_i32 = arith.constant 0 : i32
    %c0_i32_0 = arith.constant 0 : i32
    %c0_i32_1 = arith.constant 0 : i32
    return %arg0, %c0_i32, %c0_i32_0 : i32, i32, i32
  }
}

</mosaic_0001>

<bundles_post_ra>
// kernel: separative_coordinate_attention.1
= control target key start
LH: loop header
LB: loop body
LE: loop exit
PB: predicated region body
PF: predicated region fallthrough
CT: control target
= control target key end

     0   :  { %s11458_s0 = inlined_call_operand.vmem [shape: f32[2,8,32], index: 0, kind: input, shape index: {}]   ;;  %s11459_s1 = inlined_call_operand.vmem [shape: f32[2,8,32], index: 1, kind: input, shape index: {}]   ;;  %s11460_s2 = inlined_call_operand.vmem [shape: f32[8,32], index: 2, kind: input, shape index: {}]   ;;  %s11461_s3 = inlined_call_operand.vmem [shape: f32[8,32], index: 3, kind: input, shape index: {}]   ;;  %s11462_s4 = inlined_call_operand.hbm [shape: f32[12,1,32], index: 4, kind: input, shape index: {}]   ;;  %s11463_s5 = inlined_call_operand.hbm [shape: f32[12,1,32], index: 5, kind: input, shape index: {}]   ;;  %s11464_s6 = inlined_call_operand.vmem [shape: f32[6,32,96], index: 6, kind: input, shape index: {}]   ;;  %s11465_s7 = inlined_call_operand.vmem [shape: f32[6,1,96], index: 7, kind: input, shape index: {}]   ;;  %s11466_s8 = inlined_call_operand.vmem [shape: f32[6,32,32], index: 8, kind: input, shape index: {}]   ;;  %s11467_s9 = inlined_call_operand.hbm [shape: f32[6,1,32], index: 9, kind: input, shape index: {}]   ;;  %s11468_s10 = inlined_call_operand.hbm [shape: f32[4,32,64], index: 10, kind: input, shape index: {}]   ;;  %s11469_s11 = inlined_call_operand.hbm [shape: f32[4,1,64], index: 11, kind: input, shape index: {}]   ;;  %s11470_s12 = inlined_call_operand.vmem [shape: f32[4,64,32], index: 12, kind: input, shape index: {}]   ;;  %s11471_s13 = inlined_call_operand.hbm [shape: f32[4,1,32], index: 13, kind: input, shape index: {}]   ;;  %s11472_s14 = inlined_call_operand.hbm [shape: f32[2,8,32], index: 14, kind: output, shape index: {}]  }
   0x1   :  { %11503 = sst [smem:[#allocation27_spill]] %s11463_s5 }
   0x2   :  { %11504 = sst [smem:[#allocation28_spill]] %s11472_s14 }
   0x3   :  { %19 = vsyncpa [#allocation3], 0 }
   0x4   :  { %20 = vsyncpa [#allocation6], 0 }
   0x5   :  { %21 = vsyncpa [#allocation9], 0 }
   0x6   :  { %22 = vsyncpa [#allocation12], 0 }
   0x7   :  { %23 = vsyncpa [#allocation4], 0 }
   0x8   :  { %25 = vsyncpa [#allocation4 + $0x1], 0  ;;  %s10219_s29 = smov 0   ;;  %s10221_s30 = smov 0  }
   0x9   :  { %s10223_s15 = smov 0   ;;  %s10225_s16 = smov 0  }
   0xa LB: > { %11505 = sst [smem:[#allocation19_spill]] %s10104_s29  ;;  %s10240_s17 = sadd.s32 4294967295, %s10116_s16   ;;  %s10116_s16 = sphi %s10225_s16, %s11546_s16   ;;  %s10112_s15 = sphi %s10223_s15, %s11549_s15   ;;  %s10108_s30 = sphi %s10221_s30, %s11548_s30   ;;  %s10104_s29 = sphi %s10219_s29, %s11547_s29  }
   0xb   : > { %11506 = sst [smem:[#allocation20_spill]] %s10108_s30  ;;  %s8423_s18 = sadd.s32 4294967294, %s10116_s16  }
   0xc   : > { %11507 = sst [smem:[#allocation21_spill]] %s10112_s15  ;;  %s10244_s19 = sadd.s32 1, %s10116_s16  }
   0xd   : > { %11508 = sst [smem:[#allocation22_spill]] %s10116_s16  ;;  %s342_s20 = sadd.s32 1, %s10112_s15 }
   0xe   : > { %11509 = sst [smem:[#allocation23_spill]] %s10244_s19  ;;  %s339_s21 = ssub.s32 %s10116_s16, %s10244_s19 }
   0xf   : > { %p352_p0 = scmp.ne.s32.totalorder %s10112_s15, %s10108_s30  ;;  %p340_p1 = scmp.eq.s32.totalorder %s339_s21, 0 }
  0x10   : > { %p353_p2 = scmp.eq.s32.totalorder %s10240_s17, 1  ;;  %p358_p3 = scmp.ne.s32.totalorder %s10108_s30, %s10104_s29 }
  0x11   : > { %p359_p4 = scmp.eq.s32.totalorder %s8423_s18, 1  ;;  %p8424_p7 = scmp.ge.s32.totalorder %s10116_s16, 1 }
  0x12   : > { %s10255_s22 = scalar_select %p340_p1, %s10112_s15, %s342_s20  }
  0x13   : > { %p10257_p5 = por %p353_p2, %p352_p0  ;;  %p10261_p6 = por %p359_p4, %p358_p3 }
  0x14   : > { %11510 = sst [smem:[#allocation24_spill]] %s10255_s22  ;;  %p366_p8 = scmp.lt.s32.totalorder %s10116_s16, 3 }
  0x15   : > { %s11511_s23 = scalar_select %p10257_p5, 1, 0 }
  0x16   : > { %s11513_s24 = scalar_select %p10261_p6, 1, 0 }
  0x17   : > { %11512 = sst [smem:[#allocation25_spill]] %s11511_s23  ;;  %p11478_p9 = scmp.eq.s32.totalorder %s10240_s17, 0 }
  0x18   : > { %11514 = sst [smem:[#allocation26_spill]] %s11513_s24  ;;  %p10268_p10 = pnand %p8424_p7, %p366_p8 }
  0x19   : > { %s10118_s26 = smov [#allocation5]   ;;  %s10119_s18 = smov [#allocation8]  }
  0x1a   : > { %s11515_s25 = scalar_select %p10268_p10, 1, 0 }
  0x1b   : > { %p9629_p11 = pneg %p10268_p10  ;;  %s397_s27 = sshll.u32 %s10118_s26, 4  ;;  %s398_s27 = int_to_ptr.vmem [resolvable:$true] %s397_s27 }
  0x1c   : > { %s432_s20 = sshll.u32 %s10119_s18, 4  ;;  %s11517_s5 = sld [smem:[#allocation27_spill]]  ;;  %s10280_s20 = int_to_ptr.vmem [resolvable:$true] %s432_s20 }
  0x1d   : > { %p10276_p12 = pnand %p11478_p9, %p9629_p11 }
  0x1f   : > { %p10290_p0 = pneg %p10276_p12 }
  0x22   : > { %s9870_s15 = scalar_lea.hbm %s11517_s5, 192 }
  0x23   : > { %p9871_p13 = scmp.ne.s32.totalorder %s11517_s5, %s9870_s15  ;;  %p9877_p3 = scmp.lt.u32.totalorder %s9870_s15, %s11517_s5 }
  0x25   : > { %p9873_p1 = pnand %p10290_p0, %p9871_p13 }
  0x27   : > { %p9874_p2 = pneg %p9873_p1 }
  0x29   : > { %p9879_p4 = pnand %p9877_p3, %p9874_p2 }
  0x2b   : > { %9882 = shalt.err (!%p9879_p4)
}
  0x2c   : > { %s9883_s22 = scalar_lea.vmem %s398_s27, 192  ;;  %p9891_p9 = scmp.lt.s32.totalorder %s398_s27, %s398_s27 }
  0x2d   : > { %p9884_p7 = scmp.ne.s32.totalorder %s398_s27, %s9883_s22  ;;  %p9892_p6 = scmp.lt.s32.totalorder %s9883_s22, %s9883_s22 }
  0x2f   : > { %p9886_p8 = pnand %p9884_p7, %p10290_p0  ;;  %p9893_p5 = por %p9892_p6, %p9891_p9 }
  0x31   : > { %p9887_p11 = pneg %p9886_p8 }
  0x33   : > { %p9894_p10 = pnand %p9893_p5, %p9887_p11 }
  0x35   : > { %9897 = shalt.err (!%p9894_p10)
}
  0x36   : > { %s11486_s19 = smov 16   ;;  %s11488_s24 = smov 1  }
  0x37   : > { %9635 = dma.hbm_to_vmem [thread:$0]  (!%p10276_p12), %s11517_s5, 192, %s398_s27, [#allocation6], %s11486_s19, %s11486_s19, %s11488_s24  }
  0x38   : > { %s9898_s16 = scalar_lea.hbm %s11468_s10, 2048 }
  0x39   : > { %p9899_p5 = scmp.ne.s32.totalorder %s11468_s10, %s9898_s16  ;;  %p9905_p10 = scmp.lt.u32.totalorder %s9898_s16, %s11468_s10 }
  0x3b   : > { %p9901_p6 = pnand %p9899_p5, %p10290_p0 }
  0x3d   : > { %p9902_p9 = pneg %p9901_p6 }
  0x3f   : > { %p9907_p13 = pnand %p9905_p10, %p9902_p9 }
  0x41   : > { %9910 = shalt.err (!%p9907_p13)
}
  0x42   : > { %s9911_s27 = scalar_lea.vmem %s10280_s20, 2048  ;;  %p9919_p4 = scmp.lt.s32.totalorder %s10280_s20, %s10280_s20 }
  0x43   : > { %p9912_p1 = scmp.ne.s32.totalorder %s10280_s20, %s9911_s27  ;;  %p9920_p7 = scmp.lt.s32.totalorder %s9911_s27, %s9911_s27 }
  0x45   : > { %p9914_p2 = pnand %p9912_p1, %p10290_p0  ;;  %p9921_p8 = por %p9920_p7, %p9919_p4 }
  0x47   : > { %p9915_p3 = pneg %p9914_p2 }
  0x49   : > { %p9922_p11 = pnand %p9921_p8, %p9915_p3 }
  0x4b   : > { %9925 = shalt.err (!%p9922_p11)
}
  0x4c   : > { %s10122_s14 = smov 128   ;;  %s10123_s30 = smov 8  }
  0x4d   : > { %9641 = dma.hbm_to_vmem [thread:$0]  (!%p10276_p12), %s11468_s10, 2048, %s10280_s20, [#allocation9], %s10122_s14, %s10122_s14, %s10123_s30  }
  0x4e   : > { %s10124_s29 = smov [#allocation2]   ;;  %s10125_s21 = smov [#allocation7]  }
  0x4f   : > { %s384_s15 = sshll.u32 %s10124_s29, 4  ;;  %s419_s18 = sshll.u32 %s10125_s21, 4  ;;  %s385_s15 = int_to_ptr.vmem [resolvable:$true] %s384_s15  ;;  %s10332_s18 = int_to_ptr.vmem [resolvable:$true] %s419_s18 }
  0x50   : > { %s9926_s19 = scalar_lea.hbm %s11462_s4, 192 }
  0x51   : > { %p9927_p5 = scmp.ne.s32.totalorder %s11462_s4, %s9926_s19  ;;  %p9933_p10 = scmp.lt.u32.totalorder %s9926_s19, %s11462_s4 }
  0x53   : > { %p9929_p6 = pnand %p9927_p5, %p10290_p0 }
  0x55   : > { %p9930_p9 = pneg %p9929_p6 }
  0x57   : > { %p9935_p13 = pnand %p9933_p10, %p9930_p9 }
  0x59   : > { %9938 = shalt.err (!%p9935_p13)
}
  0x5a   : > { %s9939_s14 = scalar_lea.vmem %s385_s15, 192  ;;  %p9947_p4 = scmp.lt.s32.totalorder %s385_s15, %s385_s15 }
  0x5b   : > { %p9940_p1 = scmp.ne.s32.totalorder %s385_s15, %s9939_s14  ;;  %p9948_p7 = scmp.lt.s32.totalorder %s9939_s14, %s9939_s14 }
  0x5d   : > { %p9942_p2 = pnand %p9940_p1, %p10290_p0  ;;  %p9949_p8 = por %p9948_p7, %p9947_p4 }
  0x5f   : > { %p9943_p3 = pneg %p9942_p2 }
  0x61   : > { %p9950_p11 = pnand %p9949_p8, %p9943_p3 }
  0x63   : > { %9953 = shalt.err (!%p9950_p11)
}
  0x64   : > { %s11519_s5 = smov 1   ;;  %s11520_s24 = smov 16  }
  0x65   : > { %9632 = dma.hbm_to_vmem [thread:$0]  (!%p10276_p12), %s11462_s4, 192, %s385_s15, [#allocation3], %s11520_s24, %s11520_s24, %s11519_s5  }
  0x66   : > { %s9954_s21 = scalar_lea.hbm %s11467_s9, 96 }
  0x67   : > { %p9955_p5 = scmp.ne.s32.totalorder %s11467_s9, %s9954_s21  ;;  %p9961_p10 = scmp.lt.u32.totalorder %s9954_s21, %s11467_s9 }
  0x69   : > { %p9957_p6 = pnand %p9955_p5, %p10290_p0 }
  0x6b   : > { %p9958_p9 = pneg %p9957_p6 }
  0x6d   : > { %p9963_p13 = pnand %p9961_p10, %p9958_p9 }
  0x6f   : > { %9966 = shalt.err (!%p9963_p13)
}
  0x70   : > { %s9967_s15 = scalar_lea.vmem %s10332_s18, 96  ;;  %p9975_p4 = scmp.lt.s32.totalorder %s10332_s18, %s10332_s18 }
  0x71   : > { %p9968_p1 = scmp.ne.s32.totalorder %s10332_s18, %s9967_s15  ;;  %p9976_p7 = scmp.lt.s32.totalorder %s9967_s15, %s9967_s15 }
  0x73   : > { %p9970_p2 = pnand %p9968_p1, %p10290_p0  ;;  %p9977_p8 = por %p9976_p7, %p9975_p4 }
  0x75   : > { %p9971_p3 = pneg %p9970_p2 }
  0x77   : > { %p9978_p11 = pnand %p9977_p8, %p9971_p3 }
  0x79   : > { %9981 = shalt.err (!%p9978_p11)
}
  0x7a   : > { %9638 = dma.hbm_to_vmem [thread:$0]  (!%p10276_p12), %s11467_s9, 96, %s10332_s18, [#allocation6], %s11520_s24, %s11520_s24, %s11519_s5  }
  0x7b   : > { %s10126_s19 = smov [#allocation10]   ;;  %s10127_s29 = smov [#allocation11]  }
  0x7c   : > { %s445_s23 = sshll.u32 %s10126_s19, 4  ;;  %s461_s21 = sshll.u32 %s10127_s29, 4  ;;  %s446_s23 = int_to_ptr.vmem [resolvable:$true] %s445_s23  ;;  %s10381_s21 = int_to_ptr.vmem [resolvable:$true] %s461_s21 }
  0x7d   : > { %s9982_s16 = scalar_lea.hbm %s11469_s11, 64 }
  0x7e   : > { %p9983_p5 = scmp.ne.s32.totalorder %s11469_s11, %s9982_s16  ;;  %p9989_p10 = scmp.lt.u32.totalorder %s9982_s16, %s11469_s11 }
  0x80   : > { %p9985_p6 = pnand %p9983_p5, %p10290_p0 }
  0x82   : > { %p9986_p9 = pneg %p9985_p6 }
  0x84   : > { %p9991_p13 = pnand %p9989_p10, %p9986_p9 }
  0x86   : > { %9994 = shalt.err (!%p9991_p13)
}
  0x87   : > { %s9995_s30 = scalar_lea.vmem %s446_s23, 64  ;;  %p10003_p4 = scmp.lt.s32.totalorder %s446_s23, %s446_s23 }
  0x88   : > { %p9996_p1 = scmp.ne.s32.totalorder %s446_s23, %s9995_s30  ;;  %p10004_p7 = scmp.lt.s32.totalorder %s9995_s30, %s9995_s30 }
  0x8a   : > { %p9998_p2 = pnand %p9996_p1, %p10290_p0  ;;  %p10005_p8 = por %p10004_p7, %p10003_p4 }
  0x8c   : > { %p9999_p3 = pneg %p9998_p2 }
  0x8e   : > { %p10006_p11 = pnand %p10005_p8, %p9999_p3 }
  0x90   : > { %10009 = shalt.err (!%p10006_p11)
}
  0x91   : > { %9644 = dma.hbm_to_vmem [thread:$0]  (!%p10276_p12), %s11469_s11, 64, %s446_s23, [#allocation9], %s11520_s24, %s11520_s24, %s11519_s5  }
  0x92   : > { %s10010_s16 = scalar_lea.hbm %s11471_s13, 64 }
  0x93   : > { %p10011_p5 = scmp.ne.s32.totalorder %s11471_s13, %s10010_s16  ;;  %p10017_p10 = scmp.lt.u32.totalorder %s10010_s16, %s11471_s13 }
  0x95   : > { %p10013_p6 = pnand %p10011_p5, %p10290_p0 }
  0x97   : > { %p10014_p9 = pneg %p10013_p6 }
  0x99   : > { %p10019_p13 = pnand %p10017_p10, %p10014_p9 }
  0x9b   : > { %10022 = shalt.err (!%p10019_p13)
}
  0x9c   : > { %s10023_s23 = scalar_lea.vmem %s10381_s21, 64  ;;  %p10031_p4 = scmp.lt.s32.totalorder %s10381_s21, %s10381_s21 }
  0x9d   : > { %p10024_p1 = scmp.ne.s32.totalorder %s10381_s21, %s10023_s23  ;;  %p10032_p7 = scmp.lt.s32.totalorder %s10023_s23, %s10023_s23 }
  0x9f   : > { %p10026_p2 = pnand %p10024_p1, %p10290_p0  ;;  %p10033_p8 = por %p10032_p7, %p10031_p4 }
  0xa1   : > { %p10027_p3 = pneg %p10026_p2 }
  0xa3   : > { %p10034_p11 = pnand %p10033_p8, %p10027_p3 }
  0xa5   : > { %10037 = shalt.err (!%p10034_p11)
}
  0xa6   : > { %9647 = dma.hbm_to_vmem [thread:$0]  (!%p10276_p12), %s11471_s13, 64, %s10381_s21, [#allocation12], %s11520_s24, %s11520_s24, %s11519_s5  }
  0xa7   : > { %p11521_p5 = scmp.ne.s32.totalorder %s11515_s25, 0 }
  0xa8   : > { %p11522_p0 = scmp.eq.s32.totalorder (!%p11521_p5), %s10240_s17, 0 }
  0xa9   : > { %491 = sbr.rel (%p11521_p5) target bundleno = 20136 (0x4ea8), region = 76 }
  0xb0   : > { %10083 = dma.done.wait (%p11522_p0), [#allocation3], 192   ;;  %p11523_p6 = pmov %p11522_p0 }
  0xb1   : > { %p11524_p9 = pmov %p11522_p0 }
  0xb2   : > { %10085 = vsyncadd (%p11523_p6), [#allocation3], 4294967104 }
  0xb3   : > { %10087 = dma.done.wait (%p11524_p9), [#allocation6], 288   ;;  %p11525_p10 = pmov %p11522_p0 }
  0xb4   : > { %p11526_p13 = pmov %p11522_p0 }
  0xb5   : > { %10089 = vsyncadd (%p11525_p10), [#allocation6], 4294967008 }
  0xb6   : > { %10091 = dma.done.wait (%p11526_p13), [#allocation9], 2112   ;;  %p11527_p12 = pmov %p11522_p0 }
  0xb7   : > { %p11528_p1 = pmov %p11522_p0 }
  0xb8   : > { %10093 = vsyncadd (%p11527_p12), [#allocation9], 4294965184 }
  0xb9   : > { %10095 = dma.done.wait (%p11528_p1), [#allocation12], 64   ;;  %p11529_p2 = pmov %p11522_p0 }
  0xba   : > { %p560_p3 = scmp.lt.s32.totalorder %s10240_s17, 1  ;;  %v569_v1 = vld [vmem:[%s11460_s2] sm:$0xff]  ;;  %vm571_vm0 = vcmask 261120   ;;  %v643_v10 = vld [vmem:[%s11464_s6 + $0x8] sm:$0xff]  ;;  %v644_v11 = vld [vmem:[%s11464_s6 + $0x10] sm:$0xff]  ;;  %v10128_v12 = vmov 0.0|0.0  }
  0xbb   : > { %10097 = vsyncadd (%p11529_p2), [#allocation12], 4294967232  ;;  %v642_v9 = vld [vmem:[%s11464_s6] sm:$0xff]  ;;  %9483 = vmatprep.subr.bf16.mxu0 %v10128_v12  ;;  %v645_v14 = vld [vmem:[%s11464_s6 + $0x18] sm:$0xff]  ;;  %vm10129_vm1 = vmmov 0   ;;  %v10130_v15 = vmov 0.0  }
  0xbc   : > { %s10450_s25 = scalar_select %p560_p3, %s10240_s17, 1  ;;  %v9484_v13 = vpack.c.bf16 %v643_v10, %v642_v9  ;;  %8923 = vmatprep.mubr.msk.f32.mxu0 %vm10129_vm1, %v10130_v15  ;;  %8931 = vmatprep.subr.mxu1 %v10130_v15  ;;  %v9487_v16 = vpack.c.bf16 %v645_v14, %v644_v11  ;;  %v8442_v21 = vld [vmem:[#allocation2] ss:$0 sm:$0xff]  ;;  %v8443_v23 = vld [vmem:[#allocation5] ss:$0 sm:$0xff]  ;;  %vm733_vm2 = vcmask 64512  }
  0xbd   : > { %8933 = vmatprep.mubr.msk.f32.mxu1 %vm10129_vm1, %v10130_v15  ;;  %v8446_v26 = vld [vmem:[%s11465_s7] ss:$0 sm:$0xff]  ;;  %s10131_s26 = smov 120   ;;  %s10132_s5 = smov 96   ;;  %v727_v49 = vld [vmem:[%s11466_s8 + $0x8] sm:$0xff]  ;;  %vm1853_vm3 = vcmask 523264  }
  0xbe   : > { %s11490_s28 = sshll.u32 %s10450_s25, 3  ;;  %9485 = vmatpush3.bf16.msra.mxu0 %v9484_v13  ;;  %s11502_s21 = smov 56   ;;  %v726_v58 = vld [vmem:[%s11466_s8] sm:$0xff] }
  0xbf   : > { %s563_s24 = scalar_lea.vmem %s11458_s0, %s11490_s28  ;;  %9486 = vmatprep.subr.bf16.mxu0 %v10128_v12  ;;  %s11501_s29 = smov 64  }
  0xc0   : > { %v568_v0 = vld [vmem:[%s563_s24] sm:$0xff]  ;;  %s10133_s24 = smov 88   ;;  %s11499_s22 = smov 80  }
  0xc1   : > { %v570_v2 = vadd.f32 %v569_v1, %v568_v0  ;;  %s10137_s27 = smov 112   ;;  %s11493_s18 = smov 48  }
  0xc2   : > { %9488 = vmatpush3.bf16.msra.mxu0 %v9487_v16  ;;  %s11495_s23 = smov 104   ;;  %s11497_s30 = smov 72  }
  0xc3   : > { %v572_v3 = vsel %vm571_vm0, %v570_v2, 0.0  ;;  %8926 = vmatprep.subr.mxu0 %v10130_v15  ;;  %s11491_s20 = smov 40   ;;  %s11532_s15 = smov 40  }
  0xc4   : > { %573 = vadd.xlane.f32.xlu0 %v572_v3  ;;  %s11535_s28 = smov 72   ;;  %s11539_s19 = sld [smem:[#allocation25_spill]] }
  0xc5   : > { %s8672_s16 = sshll.u32 %s10240_s17, 7  ;;  %s10143_s17 = smov [#allocation13]  }
  0xca   : > { %p11541_p7 = scmp.ne.s32.totalorder %s11539_s19, 0 }
 0x151   : > { %v574_v4 = vpop.xlane.xlu0 %573 }
 0x152   : > { %v576_v5 = vmul.f32 0.03125, %v574_v4 }
 0x154   : > { %v577_v6 = vsub.f32 %v570_v2, %v576_v5 }
 0x156   : > { %v578_v7 = vmul.f32 %v577_v6, %v577_v6 }
 0x158   : > { %v579_v8 = vsel %vm571_vm0, %v578_v7, 0.0 }
 0x159   : > { %580 = vadd.xlane.f32.xlu0 %v579_v8 }
 0x1e6   : > { %v581_v17 = vpop.xlane.xlu0 %580 }
 0x1e7   : > { %v582_v18 = vmul.f32 0.03125, %v581_v17 }
 0x1e9   : > { %v583_v19 = vadd.f32 1e-05, %v582_v18 }
 0x1eb   : > { %9742 = vrsqrt.f32 %v583_v19 }
 0x1f5   : > { %v9743_v20 = vpop.eup %9742 }
 0x1f6   : > { %v585_v22 = vmul.f32 %v9743_v20, %v577_v6 }
 0x1f8   : > { %v593_v24 = vmul.f32 %v8442_v21, %v585_v22  ;;  %v728_v22 = vld [vmem:[%s11466_s8 + $0x10] sm:$0xff] }
 0x1fa   : > { %v10483_v25 = vadd.f32 %v8443_v23, %v593_v24 }
 0x1fc   : > { %8924 = vmatmul.mubr.msk.f32.vlgmr.msra.gmra.mrb[0].mxu0 %vm571_vm0, %v10483_v25 }
 0x1fd   : > { %8928 = vmatprep.mubr.msk.f32.mxu0 %vm10129_vm1, %v10130_v15 }
 0x2cf   : > { %v722_v27 = vpop.f32.mrb[0].mxu0 }
 0x2d0   : > { %v10492_v28 = vadd.f32 %v8446_v26, %v722_v27  ;;  %v8925_v29 = vpop.f32.mrb[1].mxu0 }
 0x2d2   : > { %895 = vrot.lane.b32.xlu0 %v10492_v28, %s10131_s26  ;;  %731 = vrot.lane.b32.xlu1 %v10492_v28, %s10132_s5 }
 0x2d6   : > { %897 = vrot.lane.b32.xlu1 %v10492_v28, %s10133_s24 }
 0x344   : > { %v732_v30 = vpop.permute.xlu1 %731  ;;  %v896_v32 = vpop.permute.xlu0 %895 }
 0x345   : > { %8927 = vmatpush3.xpose.msk.msra.mxu0 %vm733_vm2, %v732_v30 }
 0x346   : > { %8936 = vmatprep.subr.mxu0 %v10130_v15 }
 0x348   : > { %8929 = vmatmul.mubr.msk.f32.vlgmr.msra.gmra.mrb[2].mxu0 %vm733_vm2, %v10492_v28  ;;  %v898_v31 = vpop.permute.xlu1 %897 }
 0x349   : > { %8937 = vmatpush3.xpose.msk.msra.mxu0 %vm733_vm2, %v898_v31  ;;  %8938 = vmatprep.mubr.msk.f32.mxu0 %vm10129_vm1, %v10130_v15 }
 0x34a   : > { %8946 = vmatprep.subr.mxu0 %v10130_v15 }
 0x34c   : > { %8939 = vmatmul.mubr.msk.f32.vlgmr.msra.gmra.mrb[4].mxu0 %vm733_vm2, %v896_v32 }
 0x34d   : > { %8948 = vmatprep.mubr.msk.f32.mxu0 %vm10129_vm1, %v10130_v15  ;;  %8947 = vmatpush3.msra.mxu0 %v727_v49 }
 0x34e   : > { %8956 = vmatprep.subr.mxu0 %v10130_v15 }
 0x41b   : > { %v804_v33 = vpop.f32.mrb[2].mxu0 }
 0x41c   : > { %v8930_v34 = vpop.f32.mrb[3].mxu0  ;;  %v808_v35 = vsel %vm733_vm2, %v804_v33, -inf }
 0x41d   : > { %809 = vmax.xlane.f32.xlu1 %v808_v35  ;;  %v729_v35 = vld [vmem:[%s11466_s8 + $0x18] sm:$0xff] }
 0x41f   : > { %v969_v36 = vpop.f32.mrb[4].mxu0 }
 0x420   : > { %v8940_v37 = vpop.f32.mrb[5].mxu0  ;;  %v973_v38 = vsel %vm733_vm2, %v969_v36, -inf }
 0x421   : > { %974 = vmax.xlane.f32.xlu0 %v973_v38 }
 0x437   : > { %984 = vrot.lane.b32.xlu0 %v10492_v28, %s11502_s21 }
 0x4aa   : > { %v810_v39 = vpop.xlane.xlu1 %809 }
 0x4ab   : > { %v811_v40 = vsub.f32 %v804_v33, %v810_v39 }
 0x4ad   : > { %v812_v41 = vmul.f32 1.442695, %v811_v40 }
 0x4ae   : > { %v975_v42 = vpop.xlane.xlu0 %974 }
 0x4af   : > { %9744 = vpow2.f32 %v812_v41  ;;  %v976_v43 = vsub.f32 %v969_v36, %v975_v42 }
 0x4b1   : > { %v977_v44 = vmul.f32 1.442695, %v976_v43 }
 0x4b2   : > { %v985_v55 = vpop.permute.xlu0 %984 }
 0x4b3   : > { %9746 = vpow2.f32 %v977_v44 }
 0x4b9   : > { %v9745_v45 = vpop.eup %9744 }
 0x4ba   : > { %v814_v46 = vsel %vm733_vm2, %v9745_v45, 0.0 }
 0x4bb   : > { %815 = vadd.xlane.f32.xlu1 %v814_v46 }
 0x4bd   : > { %v9747_v47 = vpop.eup %9746 }
 0x4be   : > { %v979_v48 = vsel %vm733_vm2, %v9747_v47, 0.0 }
 0x4bf   : > { %980 = vadd.xlane.f32.xlu1 %v979_v48 }
 0x4d0   : > { %819 = vrot.lane.b32.xlu1 %v10492_v28, %s11501_s29 }
 0x4d4   : > { %1208 = vrot.lane.b32.xlu1 %v10492_v28, %s11499_s22 }
 0x4d8   : > { %1206 = vrot.lane.b32.xlu1 %v10492_v28, %s10137_s27 }
 0x548   : > { %v816_v50 = vpop.xlane.xlu1 %815 }
 0x549   : > { %9748 = vrcp.f32 %v816_v50 }
 0x54c   : > { %v981_v51 = vpop.xlane.xlu1 %980 }
 0x54d   : > { %9750 = vrcp.f32 %v981_v51 }
 0x550   : > { %v820_v52 = vpop.permute.xlu1 %819 }
 0x551   : > { %8932 = vmatpush3.msra.mxu1 %v820_v52 }
 0x552   : > { %8941 = vmatprep.subr.mxu1 %v10130_v15 }
 0x553   : > { %v9749_v53 = vpop.eup %9748 }
 0x554   : > { %v818_v54 = vmul.f32 %v9749_v53, %v9745_v45  ;;  %v1209_v61 = vpop.permute.xlu1 %1208  ;;  %v8464_v45 = vld [vmem:[#allocation7] ss:$0 sm:$0xff] }
 0x556   : > { %8934 = vmatmul.mubr.msk.f32.vlgmr.msra.gmra.mrb[0].mxu1 %vm733_vm2, %v818_v54 }
 0x557   : > { %v9751_v56 = vpop.eup %9750  ;;  %8942 = vmatpush3.msra.mxu1 %v985_v55  ;;  %8943 = vmatprep.mubr.msk.f32.mxu1 %vm10129_vm1, %v10130_v15 }
 0x558   : > { %v983_v57 = vmul.f32 %v9751_v56, %v9747_v47  ;;  %8951 = vmatprep.subr.mxu1 %v10130_v15  ;;  %v1207_v0 = vpop.permute.xlu1 %1206  ;;  %v1724_v56 = vld [vmem:[#allocation8] sm:$0xff] }
 0x55a   : > { %8944 = vmatmul.mubr.msk.f32.vlgmr.msra.gmra.mrb[2].mxu1 %vm733_vm2, %v983_v57  ;;  %v1725_v57 = vld [vmem:[#allocation8 + $0x8] sm:$0xff] }
 0x55b   : > { %8953 = vmatprep.mubr.msk.f32.mxu1 %vm10129_vm1, %v10130_v15  ;;  %8952 = vmatpush3.msra.mxu1 %v726_v58  ;;  %v9490_v58 = vpack.c.bf16 %v1725_v57, %v1724_v56 }
 0x55c   : > { %8961 = vmatprep.subr.mxu1 %v10130_v15 }
 0x629   : > { %v891_v59 = vpop.f32.mrb[0].mxu1 }
 0x62a   : > { %v8935_v60 = vpop.f32.mrb[1].mxu1  ;;  %8954 = vmatmul.mubr.msk.f32.vlgmr.msra.gmra.mrb[4].mxu1 %vm733_vm2, %v891_v59  ;;  %v1726_v59 = vld [vmem:[#allocation8 + $0x10] sm:$0xff] }
 0x62b   : > { %8963 = vmatprep.mubr.msk.f32.mxu1 %vm10129_vm1, %v10130_v15  ;;  %v1727_v60 = vld [vmem:[#allocation8 + $0x18] sm:$0xff] }
 0x62d   : > { %v1056_v62 = vpop.f32.mrb[2].mxu1 }
 0x62e   : > { %v8945_v63 = vpop.f32.mrb[3].mxu1  ;;  %8949 = vmatmul.mubr.msk.f32.vlgmr.msra.gmra.mrb[6].mxu0 %vm733_vm2, %v1056_v62 }
 0x62f   : > { %8957 = vmatpush3.xpose.msk.msra.mxu0 %vm733_vm2, %v1209_v61  ;;  %8958 = vmatprep.mubr.msk.f32.mxu0 %vm10129_vm1, %v10130_v15  ;;  %v9493_v61 = vpack.c.bf16 %v1727_v60, %v1726_v59 }
 0x630   : > { %8966 = vmatprep.subr.mxu0 %v10130_v15 }
 0x632   : > { %8959 = vmatmul.mubr.msk.f32.vlgmr.msra.gmra.mrb[8].mxu0 %vm733_vm2, %v1207_v0 }
 0x633   : > { %8968 = vmatprep.mubr.msk.f32.mxu0 %vm10129_vm1, %v10130_v15  ;;  %8967 = vmatpush3.msra.mxu0 %v728_v22 }
 0x634   : > { %8976 = vmatprep.subr.mxu0 %v10130_v15 }
 0x6fd   : > { %v1202_v1 = vpop.f32.mrb[4].mxu1 }
 0x6fe   : > { %v8955_v2 = vpop.f32.mrb[5].mxu1 }
 0x701   : > { %v1129_v3 = vpop.f32.mrb[6].mxu0 }
 0x702   : > { %v1203_v4 = vadd.f32 %v1202_v1, %v1129_v3  ;;  %v8950_v5 = vpop.f32.mrb[7].mxu0  ;;  %v8465_v1 = vld [vmem:[#allocation2 + $0x2] ss:$0 sm:$0xff]  ;;  %v8466_v3 = vld [vmem:[#allocation5 + $0x2] ss:$0 sm:$0xff] }
 0x705   : > { %v1280_v6 = vpop.f32.mrb[8].mxu0 }
 0x706   : > { %v8960_v7 = vpop.f32.mrb[9].mxu0  ;;  %v1284_v8 = vsel %vm733_vm2, %v1280_v6, -inf }
 0x707   : > { %1285 = vmax.xlane.f32.xlu1 %v1284_v8  ;;  %v1839_v7 = vld [vmem:[%s11470_s12 + $0x8] sm:$0xff] }
 0x718   : > { %1295 = vrot.lane.b32.xlu1 %v10492_v28, %s11493_s18  ;;  %s11530_s18 = smov 104  }
 0x71c   : > { %1445 = vrot.lane.b32.xlu1 %v10492_v28, %s11495_s23  ;;  %s11531_s23 = smov 48  }
 0x794   : > { %v1286_v9 = vpop.xlane.xlu1 %1285 }
 0x795   : > { %v1287_v10 = vsub.f32 %v1280_v6, %v1286_v9  ;;  %v1838_v6 = vld [vmem:[%s11470_s12] sm:$0xff]  ;;  %v1840_v9 = vld [vmem:[%s11470_s12 + $0x10] sm:$0xff] }
 0x796   : > { %v9496_v8 = vpack.c.bf16 %v1839_v7, %v1838_v6 }
 0x797   : > { %v1288_v11 = vmul.f32 1.442695, %v1287_v10  ;;  %v1841_v10 = vld [vmem:[%s11470_s12 + $0x18] sm:$0xff] }
 0x798   : > { %v1296_v13 = vpop.permute.xlu1 %1295 }
 0x799   : > { %9752 = vpow2.f32 %v1288_v11  ;;  %8962 = vmatpush3.msra.mxu1 %v1296_v13  ;;  %v9499_v11 = vpack.c.bf16 %v1841_v10, %v1840_v9  ;;  %v1842_v13 = vld [vmem:[%s11470_s12 + $0x20] sm:$0xff] }
 0x79a   : > { %8971 = vmatprep.subr.mxu1 %v10130_v15  ;;  %v8472_v10 = vld [vmem:[#allocation2 + $0x3] ss:$0 sm:$0xff] }
 0x79c   : > { %v1446_v21 = vpop.permute.xlu1 %1445 }
 0x7a3   : > { %v9753_v14 = vpop.eup %9752 }
 0x7a4   : > { %v1290_v16 = vsel %vm733_vm2, %v9753_v14, 0.0 }
 0x7a5   : > { %1291 = vadd.xlane.f32.xlu0 %v1290_v16 }
 0x7bb   : > { %1447 = vrot.lane.b32.xlu0 %v10492_v28, %s11497_s30 }
 0x832   : > { %v1292_v17 = vpop.xlane.xlu0 %1291 }
 0x833   : > { %9754 = vrcp.f32 %v1292_v17  ;;  %v1844_v17 = vld [vmem:[%s11470_s12 + $0x30] sm:$0xff] }
 0x836   : > { %v1448_v20 = vpop.permute.xlu0 %1447 }
 0x83d   : > { %v9755_v18 = vpop.eup %9754 }
 0x83e   : > { %v1294_v19 = vmul.f32 %v9755_v18, %v9753_v14  ;;  %v1843_v14 = vld [vmem:[%s11470_s12 + $0x28] sm:$0xff]  ;;  %v1845_v18 = vld [vmem:[%s11470_s12 + $0x38] sm:$0xff] }
 0x83f   : > { %v9502_v16 = vpack.c.bf16 %v1843_v14, %v1842_v13  ;;  %v8473_v13 = vld [vmem:[#allocation5 + $0x3] ss:$0 sm:$0xff] }
 0x840   : > { %8964 = vmatmul.mubr.msk.f32.vlgmr.msra.gmra.mrb[6].mxu1 %vm733_vm2, %v1294_v19  ;;  %v9505_v19 = vpack.c.bf16 %v1845_v18, %v1844_v17  ;;  %v8479_v17 = vld [vmem:[%s11465_s7 + $0x1] ss:$0 sm:$0xff] }
 0x841   : > { %8972 = vmatpush3.xpose.msk.msra.mxu1 %vm733_vm2, %v1448_v20  ;;  %8973 = vmatprep.mubr.msk.f32.mxu1 %vm10129_vm1, %v10130_v15  ;;  %v8467_v20 = vld [vmem:[#allocation10] ss:$0 sm:$0xff] }
 0x842   : > { %8981 = vmatprep.subr.mxu1 %v10130_v15 }
 0x844   : > { %8974 = vmatmul.mubr.msk.f32.vlgmr.msra.gmra.mrb[8].mxu1 %vm733_vm2, %v1446_v21 }
 0x845   : > { %8983 = vmatprep.mubr.msk.f32.mxu1 %vm10129_vm1, %v10130_v15  ;;  %8982 = vmatpush3.msra.mxu1 %v729_v35 }
 0x846   : > { %9495 = vmatprep.subr.bf16.mxu1 %v10128_v12 }
 0x913   : > { %v1367_v23 = vpop.f32.mrb[6].mxu1 }
 0x914   : > { %v8965_v24 = vpop.f32.mrb[7].mxu1  ;;  %8969 = vmatmul.mubr.msk.f32.vlgmr.msra.gmra.mrb[10].mxu0 %vm733_vm2, %v1367_v23 }
 0x915   : > { %8978 = vmatprep.mubr.msk.f32.mxu0 %vm10129_vm1, %v10130_v15 }
 0x917   : > { %v1519_v26 = vpop.f32.mrb[8].mxu1 }
 0x918   : > { %v8975_v27 = vpop.f32.mrb[9].mxu1  ;;  %v1523_v29 = vsel %vm733_vm2, %v1519_v26, -inf }
 0x919   : > { %1524 = vmax.xlane.f32.xlu1 %v1523_v29 }
 0x9a6   : > { %v1525_v30 = vpop.xlane.xlu1 %1524 }
 0x9a7   : > { %v1526_v31 = vsub.f32 %v1519_v26, %v1525_v30 }
 0x9a9   : > { %v1527_v32 = vmul.f32 1.442695, %v1526_v31 }
 0x9ab   : > { %9756 = vpow2.f32 %v1527_v32 }
 0x9b5   : > { %v9757_v33 = vpop.eup %9756 }
 0x9b6   : > { %v1529_v34 = vsel %vm733_vm2, %v9757_v33, 0.0 }
 0x9b7   : > { %1530 = vadd.xlane.f32.xlu0 %v1529_v34 }
 0x9cd   : > { %1534 = vrot.lane.b32.xlu0 %v10492_v28, %s11491_s20  ;;  %s11533_s20 = sshll.u32 %s10450_s25, 3  ;;  %s11537_s25 = smov 64  }
 0x9ce   : > { %s567_s14 = scalar_lea.vmem %s11459_s1, %s11533_s20 }
 0x9e7   : > { %v1440_v36 = vpop.f32.mrb[10].mxu0 }
 0x9e8   : > { %v1444_v37 = vadd.f32 %v1440_v36, %v1203_v4  ;;  %v8970_v38 = vpop.f32.mrb[11].mxu0 }
 0xa44   : > { %v1531_v39 = vpop.xlane.xlu0 %1530 }
 0xa45   : > { %9758 = vrcp.f32 %v1531_v39 }
 0xa48   : > { %v1535_v40 = vpop.permute.xlu0 %1534 }
 0xa49   : > { %8977 = vmatpush3.msra.mxu0 %v1535_v40 }
 0xa4a   : > { %9489 = vmatprep.subr.bf16.mxu0 %v10128_v12 }
 0xa4f   : > { %v9759_v41 = vpop.eup %9758 }
 0xa50   : > { %v1533_v42 = vmul.f32 %v9759_v41, %v9757_v33 }
 0xa52   : > { %8979 = vmatmul.mubr.msk.f32.vlgmr.msra.gmra.mrb[12].mxu0 %vm733_vm2, %v1533_v42 }
 0xa53   : > { %8994 = vmatprep.mubr.msk.f32.mxu0 %vm10129_vm1, %v10130_v15  ;;  %9491 = vmatpush3.bf16.msra.mxu0 %v9490_v58 }
 0xa54   : > { %9492 = vmatprep.subr.bf16.mxu0 %v10128_v12 }
 0xa57   : > { %9494 = vmatpush3.bf16.msra.mxu0 %v9493_v61 }
 0xa58   : > { %9507 = vmatprep.subr.bf16.mxu0 %v10128_v12 }
 0xb25   : > { %v1606_v28 = vpop.f32.mrb[12].mxu0 }
 0xb26   : > { %v8980_v43 = vpop.f32.mrb[13].mxu0  ;;  %8984 = vmatmul.mubr.msk.f32.vlgmr.msra.gmra.mrb[10].mxu1 %vm733_vm2, %v1606_v28 }
 0xb27   : > { %9013 = vmatprep.mubr.msk.f32.mxu1 %vm10129_vm1, %v10130_v15  ;;  %9497 = vmatpush3.bf16.msra.mxu1 %v9496_v8 }
 0xb28   : > { %9498 = vmatprep.subr.bf16.mxu1 %v10128_v12 }
 0xb2b   : > { %9500 = vmatpush3.bf16.msra.mxu1 %v9499_v11 }
 0xb2c   : > { %9501 = vmatprep.subr.bf16.mxu1 %v10128_v12 }
 0xb2f   : > { %9503 = vmatpush3.bf16.msra.mxu1 %v9502_v16 }
 0xb30   : > { %9504 = vmatprep.subr.bf16.mxu1 %v10128_v12 }
 0xb33   : > { %9506 = vmatpush3.bf16.msra.mxu1 %v9505_v19 }
 0xb34   : > { %9032 = vmatprep.subr.mxu1 %v10130_v15 }
 0xbf9   : > { %v1679_v44 = vpop.f32.mrb[10].mxu1 }
 0xbfa   : > { %v1683_v46 = vadd.f32 %v1679_v44, %v1444_v37  ;;  %v8985_v47 = vpop.f32.mrb[11].mxu1 }
 0xbfc   : > { %v1691_v48 = vadd.f32 %v8464_v45, %v1683_v46 }
 0xbfe   : > { %v1692_v49 = vadd.f32 %v1691_v48, %v10483_v25 }
 0xc00   : > { %v1693_v50 = vsel %vm571_vm0, %v1692_v49, 0.0 }
 0xc01   : > { %1694 = vadd.xlane.f32.xlu1 %v1693_v50 }
 0xc8e   : > { %v1695_v51 = vpop.xlane.xlu1 %1694 }
 0xc8f   : > { %v1696_v52 = vmul.f32 0.03125, %v1695_v51 }
 0xc91   : > { %v1697_v53 = vsub.f32 %v1692_v49, %v1696_v52 }
 0xc93   : > { %v1698_v54 = vmul.f32 %v1697_v53, %v1697_v53 }
 0xc95   : > { %v1699_v55 = vsel %vm571_vm0, %v1698_v54, 0.0  ;;  %v8470_v54 = vld [vmem:[#allocation11] ss:$0 sm:$0xff] }
 0xc96   : > { %1700 = vadd.xlane.f32.xlu1 %v1699_v55 }
 0xd23   : > { %v1701_v25 = vpop.xlane.xlu1 %1700 }
 0xd24   : > { %v1702_v62 = vmul.f32 0.03125, %v1701_v25 }
 0xd26   : > { %v1703_v63 = vadd.f32 1e-05, %v1702_v62 }
 0xd28   : > { %9760 = vrsqrt.f32 %v1703_v63 }
 0xd32   : > { %v9761_v0 = vpop.eup %9760 }
 0xd33   : > { %v1705_v2 = vmul.f32 %v9761_v0, %v1697_v53  ;;  %v8474_v0 = vld [vmem:[%s11464_s6 + $0x20] sm:$0xff] }
 0xd35   : > { %v1714_v4 = vmul.f32 %v8465_v1, %v1705_v2  ;;  %v8475_v1 = vld [vmem:[%s11464_s6 + $0x28] sm:$0xff] }
 0xd36   : > { %v9508_v2 = vpack.c.bf16 %v8475_v1, %v8474_v0 }
 0xd37   : > { %v10594_v5 = vadd.f32 %v8466_v3, %v1714_v4  ;;  %v8476_v3 = vld [vmem:[%s11464_s6 + $0x30] sm:$0xff]  ;;  %v8477_v4 = vld [vmem:[%s11464_s6 + $0x38] sm:$0xff] }
 0xd39   : > { %8995 = vmatmul.mubr.msk.f32.vlgmr.msra.gmra.mrb[14].mxu0 %vm571_vm0, %v10594_v5 }
 0xd3a   : > { %9024 = vmatprep.mubr.msk.f32.mxu0 %vm10129_vm1, %v10130_v15  ;;  %9509 = vmatpush3.bf16.msra.mxu0 %v9508_v2 }
 0xd3b   : > { %9510 = vmatprep.subr.bf16.mxu0 %v10128_v12 }
 0xe0c   : > { %v1804_v21 = vpop.f32.mrb[14].mxu0 }
 0xe0d   : > { %v1805_v22 = vadd.f32 %v8467_v20, %v1804_v21  ;;  %v8996_v23 = vpop.f32.mrb[15].mxu0 }
 0xe0f   : > { %v1809_v24 = vmul.f32 0.70710677, %v1805_v22  ;;  %v1808_v51 = vmul.f32 0.5, %v1805_v22 }
 0xe11   : > { %v8469_v26 = vclamps-f32 %v1809_v24, 4.0 }
 0xe13   : > { %v1812_v27 = vmul.f32 %v8469_v26, %v8469_v26 }
 0xe15   : > { %v1813_v29 = vmul.f32 -2.7261424e-10, %v1812_v27  ;;  %v1826_v30 = vmul.f32 -1.45660715e-05, %v1812_v27 }
 0xe17   : > { %v1814_v31 = vadd.f32 2.7706815e-08, %v1813_v29  ;;  %v1827_v32 = vadd.f32 -0.00021337405, %v1826_v30 }
 0xe19   : > { %v1815_v33 = vmul.f32 %v1814_v31, %v1812_v27  ;;  %v1828_v34 = vmul.f32 %v1827_v32, %v1812_v27 }
 0xe1b   : > { %v1816_v35 = vadd.f32 -2.101024e-06, %v1815_v33  ;;  %v1829_v36 = vadd.f32 -0.001682827, %v1828_v34 }
 0xe1d   : > { %v1817_v37 = vmul.f32 %v1816_v35, %v1812_v27  ;;  %v1830_v38 = vmul.f32 %v1829_v36, %v1812_v27 }
 0xe1f   : > { %v1818_v39 = vadd.f32 -5.6925062e-05, %v1817_v37  ;;  %v1831_v40 = vadd.f32 -0.0073733293, %v1830_v38 }
 0xe21   : > { %v1819_v41 = vmul.f32 %v1818_v39, %v1812_v27  ;;  %v1832_v42 = vmul.f32 %v1831_v40, %v1812_v27 }
 0xe23   : > { %v1820_v28 = vadd.f32 -0.00073499064, %v1819_v41  ;;  %v1833_v43 = vadd.f32 -0.014264739, %v1832_v42  ;;  %v8482_v42 = vld [vmem:[%s11466_s8 + $0x28] sm:$0xff] }
 0xe25   : > { %v1821_v44 = vmul.f32 %v1820_v28, %v1812_v27  ;;  %9762 = vrcp.f32 %v1833_v43 }
 0xe27   : > { %v1822_v45 = vadd.f32 -0.0029546, %v1821_v44 }
 0xe29   : > { %v1823_v46 = vmul.f32 %v1822_v45, %v1812_v27 }
 0xe2b   : > { %v1824_v47 = vadd.f32 -0.016096033, %v1823_v46 }
 0xe2d   : > { %v1825_v48 = vmul.f32 %v8469_v26, %v1824_v47 }
 0xe2f   : > { %v9763_v49 = vpop.eup %9762 }
 0xe30   : > { %v1835_v50 = vmul.f32 %v9763_v49, %v1825_v48 }
 0xe32   : > { %v1836_v52 = vadd.f32 1.0, %v1835_v50  ;;  %v8481_v50 = vld [vmem:[%s11466_s8 + $0x20] sm:$0xff] }
 0xe34   : > { %v1837_v53 = vmul.f32 %v1836_v52, %v1808_v51 }
 0xe36   : > { %9014 = vmatmul.mubr.msk.f32.vlgmr.msra.gmra.mrb[12].mxu1 %vm1853_vm3, %v1837_v53 }
 0xe37   : > { %9034 = vmatprep.mubr.msk.f32.mxu1 %vm10129_vm1, %v10130_v15 }
 0xf09   : > { %v1923_v55 = vpop.f32.mrb[12].mxu1 }
 0xf0a   : > { %v1924_v56 = vadd.f32 %v8470_v54, %v1923_v55  ;;  %v9015_v57 = vpop.f32.mrb[13].mxu1 }
 0xf0c   : > { %v1927_v58 = vadd.f32 %v1924_v56, %v10594_v5  ;;  %v9511_v5 = vpack.c.bf16 %v8477_v4, %v8476_v3 }
 0xf0e   : > { %v1928_v59 = vsel %vm571_vm0, %v1927_v58, 0.0  ;;  %9512 = vmatpush3.bf16.msra.mxu0 %v9511_v5 }
 0xf0f   : > { %1929 = vadd.xlane.f32.xlu1 %v1928_v59  ;;  %9027 = vmatprep.subr.mxu0 %v10130_v15 }
 0xf9c   : > { %v1930_v60 = vpop.xlane.xlu1 %1929 }
 0xf9d   : > { %v1931_v61 = vmul.f32 0.03125, %v1930_v60 }
 0xf9f   : > { %v1932_v25 = vsub.f32 %v1927_v58, %v1931_v61 }
 0xfa1   : > { %v1933_v62 = vmul.f32 %v1932_v25, %v1932_v25 }
 0xfa3   : > { %v1934_v63 = vsel %vm571_vm0, %v1933_v62, 0.0 }
 0xfa4   : > { %1935 = vadd.xlane.f32.xlu1 %v1934_v63 }
0x1031   : > { %v1936_v6 = vpop.xlane.xlu1 %1935 }
0x1032   : > { %v1937_v7 = vmul.f32 0.03125, %v1936_v6 }
0x1034   : > { %v1938_v8 = vadd.f32 1e-05, %v1937_v7 }
0x1036   : > { %9764 = vrsqrt.f32 %v1938_v8 }
0x1040   : > { %v9765_v9 = vpop.eup %9764 }
0x1041   : > { %v1940_v11 = vmul.f32 %v9765_v9, %v1932_v25 }
0x1043   : > { %v1949_v14 = vmul.f32 %v8472_v10, %v1940_v11  ;;  %v8483_v11 = vld [vmem:[%s11466_s8 + $0x30] sm:$0xff] }
0x1045   : > { %v10648_v16 = vadd.f32 %v8473_v13, %v1949_v14 }
0x1047   : > { %9025 = vmatmul.mubr.msk.f32.vlgmr.msra.gmra.mrb[16].mxu0 %vm571_vm0, %v10648_v16 }
0x1048   : > { %9029 = vmatprep.mubr.msk.f32.mxu0 %vm10129_vm1, %v10130_v15 }
0x111a   : > { %v2041_v18 = vpop.f32.mrb[16].mxu0 }
0x111b   : > { %v10657_v19 = vadd.f32 %v8479_v17, %v2041_v18  ;;  %v9026_v20 = vpop.f32.mrb[17].mxu0 }
0x111d   : > { %2216 = vrot.lane.b32.xlu0 %v10657_v19, %s10133_s24  ;;  %2051 = vrot.lane.b32.xlu1 %v10657_v19, %s10132_s5 }
0x1121   : > { %2214 = vrot.lane.b32.xlu0 %v10657_v19, %s10131_s26 }
0x118f   : > { %v2052_v21 = vpop.permute.xlu1 %2051  ;;  %v2217_v22 = vpop.permute.xlu0 %2216 }
0x1190   : > { %9028 = vmatpush3.xpose.msk.msra.mxu0 %vm733_vm2, %v2052_v21 }
0x1191   : > { %9037 = vmatprep.subr.mxu0 %v10130_v15 }
0x1193   : > { %9030 = vmatmul.mubr.msk.f32.vlgmr.msra.gmra.mrb[18].mxu0 %vm733_vm2, %v10657_v19  ;;  %v2215_v23 = vpop.permute.xlu0 %2214 }
0x1194   : > { %9038 = vmatpush3.xpose.msk.msra.mxu0 %vm733_vm2, %v2217_v22  ;;  %9039 = vmatprep.mubr.msk.f32.mxu0 %vm10129_vm1, %v10130_v15 }
0x1195   : > { %9047 = vmatprep.subr.mxu0 %v10130_v15 }
0x1197   : > { %9040 = vmatmul.mubr.msk.f32.vlgmr.msra.gmra.mrb[20].mxu0 %vm733_vm2, %v2215_v23 }
0x1198   : > { %9049 = vmatprep.mubr.msk.f32.mxu0 %vm10129_vm1, %v10130_v15  ;;  %9048 = vmatpush3.msra.mxu0 %v8482_v42  ;;  %v603_v42 = vld [vmem:[%s11461_s3] sm:$0xff] }
0x1199   : > { %9057 = vmatprep.subr.mxu0 %v10130_v15 }
0x1266   : > { %v2123_v24 = vpop.f32.mrb[18].mxu0 }
0x1267   : > { %v9031_v26 = vpop.f32.mrb[19].mxu0  ;;  %v2127_v27 = vsel %vm733_vm2, %v2123_v24, -inf }
0x1268   : > { %2128 = vmax.xlane.f32.xlu0 %v2127_v27 }
0x126a   : > { %v2288_v29 = vpop.f32.mrb[20].mxu0 }
0x126b   : > { %v9041_v30 = vpop.f32.mrb[21].mxu0  ;;  %v2292_v31 = vsel %vm733_vm2, %v2288_v29, -inf }
0x126c   : > { %2293 = vmax.xlane.f32.xlu1 %v2292_v31 }
0x127d   : > { %2303 = vrot.lane.b32.xlu1 %v10657_v19, %s11502_s21 }
0x1281   : > { %2527 = vrot.lane.b32.xlu1 %v10657_v19, %s11499_s22  ;;  %s11536_s22 = smov 56  }
0x12f5   : > { %v2129_v32 = vpop.xlane.xlu0 %2128 }
0x12f6   : > { %v2130_v33 = vsub.f32 %v2123_v24, %v2129_v32 }
0x12f8   : > { %v2131_v34 = vmul.f32 1.442695, %v2130_v33 }
0x12f9   : > { %v2294_v35 = vpop.xlane.xlu1 %2293 }
0x12fa   : > { %9766 = vpow2.f32 %v2131_v34  ;;  %v2295_v36 = vsub.f32 %v2288_v29, %v2294_v35  ;;  %v8484_v29 = vld [vmem:[%s11466_s8 + $0x38] sm:$0xff] }
0x12fc   : > { %v2296_v37 = vmul.f32 1.442695, %v2295_v36 }
0x12fd   : > { %v2304_v47 = vpop.permute.xlu1 %2303 }
0x12fe   : > { %9768 = vpow2.f32 %v2296_v37 }
0x1301   : > { %v2528_v54 = vpop.permute.xlu1 %2527 }
0x1304   : > { %v9767_v38 = vpop.eup %9766 }
0x1305   : > { %v2133_v39 = vsel %vm733_vm2, %v9767_v38, 0.0 }
0x1306   : > { %2134 = vadd.xlane.f32.xlu0 %v2133_v39 }
0x1308   : > { %v9769_v40 = vpop.eup %9768 }
0x1309   : > { %v2298_v41 = vsel %vm733_vm2, %v9769_v40, 0.0 }
0x130a   : > { %2299 = vadd.xlane.f32.xlu0 %v2298_v41  ;;  %v602_v41 = vld [vmem:[%s567_s14] sm:$0xff] }
0x1320   : > { %2138 = vrot.lane.b32.xlu0 %v10657_v19, %s11501_s29 }
0x1324   : > { %2525 = vrot.lane.b32.xlu0 %v10657_v19, %s10137_s27 }
0x1393   : > { %v2135_v28 = vpop.xlane.xlu0 %2134 }
0x1394   : > { %9770 = vrcp.f32 %v2135_v28 }
0x1397   : > { %v2300_v43 = vpop.xlane.xlu0 %2299 }
0x1398   : > { %9772 = vrcp.f32 %v2300_v43 }
0x139b   : > { %v2139_v44 = vpop.permute.xlu0 %2138 }
0x139c   : > { %9033 = vmatpush3.msra.mxu1 %v2139_v44  ;;  %v604_v44 = vadd.f32 %v603_v42, %v602_v41 }
0x139d   : > { %9042 = vmatprep.subr.mxu1 %v10130_v15 }
0x139e   : > { %v9771_v45 = vpop.eup %9770 }
0x139f   : > { %v2137_v46 = vmul.f32 %v9771_v45, %v9767_v38  ;;  %v2526_v56 = vpop.permute.xlu0 %2525  ;;  %v8501_v38 = vld [vmem:[#allocation7 + $0x1] ss:$0 sm:$0xff] }
0x13a1   : > { %9035 = vmatmul.mubr.msk.f32.vlgmr.msra.gmra.mrb[14].mxu1 %vm733_vm2, %v2137_v46  ;;  %v605_v46 = vsel %vm571_vm0, %v604_v44, 0.0 }
0x13a2   : > { %v9773_v48 = vpop.eup %9772  ;;  %9043 = vmatpush3.msra.mxu1 %v2304_v47  ;;  %9044 = vmatprep.mubr.msk.f32.mxu1 %vm10129_vm1, %v10130_v15 }
0x13a3   : > { %v2302_v49 = vmul.f32 %v9773_v48, %v9769_v40  ;;  %9052 = vmatprep.subr.mxu1 %v10130_v15 }
0x13a5   : > { %9045 = vmatmul.mubr.msk.f32.vlgmr.msra.gmra.mrb[16].mxu1 %vm733_vm2, %v2302_v49 }
0x13a6   : > { %9054 = vmatprep.mubr.msk.f32.mxu1 %vm10129_vm1, %v10130_v15  ;;  %9053 = vmatpush3.msra.mxu1 %v8481_v50 }
0x13a7   : > { %9062 = vmatprep.subr.mxu1 %v10130_v15 }
0x1474   : > { %v2210_v51 = vpop.f32.mrb[14].mxu1 }
0x1475   : > { %v9036_v52 = vpop.f32.mrb[15].mxu1  ;;  %9055 = vmatmul.mubr.msk.f32.vlgmr.msra.gmra.mrb[18].mxu1 %vm733_vm2, %v2210_v51 }
0x1476   : > { %9064 = vmatprep.mubr.msk.f32.mxu1 %vm10129_vm1, %v10130_v15 }
0x1478   : > { %v2375_v53 = vpop.f32.mrb[16].mxu1 }
0x1479   : > { %v9046_v55 = vpop.f32.mrb[17].mxu1  ;;  %9050 = vmatmul.mubr.msk.f32.vlgmr.msra.gmra.mrb[22].mxu0 %vm733_vm2, %v2375_v53 }
0x147a   : > { %9058 = vmatpush3.xpose.msk.msra.mxu0 %vm733_vm2, %v2528_v54  ;;  %9059 = vmatprep.mubr.msk.f32.mxu0 %vm10129_vm1, %v10130_v15 }
0x147b   : > { %9067 = vmatprep.subr.mxu0 %v10130_v15 }
0x147d   : > { %9060 = vmatmul.mubr.msk.f32.vlgmr.msra.gmra.mrb[24].mxu0 %vm733_vm2, %v2526_v56  ;;  %v3045_v56 = vld [vmem:[#allocation8 + $0x20] sm:$0xff] }
0x147e   : > { %9069 = vmatprep.mubr.msk.f32.mxu0 %vm10129_vm1, %v10130_v15  ;;  %9068 = vmatpush3.msra.mxu0 %v8483_v11 }
0x147f   : > { %9077 = vmatprep.subr.mxu0 %v10130_v15 }
0x1548   : > { %v2521_v57 = vpop.f32.mrb[18].mxu1 }
0x1549   : > { %v9056_v58 = vpop.f32.mrb[19].mxu1 }
0x154c   : > { %v2448_v59 = vpop.f32.mrb[22].mxu0 }
0x154d   : > { %v2522_v60 = vadd.f32 %v2521_v57, %v2448_v59  ;;  %v9051_v61 = vpop.f32.mrb[23].mxu0  ;;  %v3046_v57 = vld [vmem:[#allocation8 + $0x28] sm:$0xff]  ;;  %v3047_v59 = vld [vmem:[#allocation8 + $0x30] sm:$0xff] }
0x154e   : > { %v9514_v58 = vpack.c.bf16 %v3046_v57, %v3045_v56 }
0x1550   : > { %v2599_v25 = vpop.f32.mrb[24].mxu0 }
0x1551   : > { %v9061_v62 = vpop.f32.mrb[25].mxu0  ;;  %v2603_v63 = vsel %vm733_vm2, %v2599_v25, -inf }
0x1552   : > { %2604 = vmax.xlane.f32.xlu1 %v2603_v63 }
0x1563   : > { %2766 = vrot.lane.b32.xlu1 %v10657_v19, %s11497_s30  ;;  %s11534_s30 = smov 80  }
0x1567   : > { %2764 = vrot.lane.b32.xlu1 %v10657_v19, %s11530_s18 }
0x15df   : > { %v2605_v0 = vpop.xlane.xlu1 %2604 }
0x15e0   : > { %v2606_v1 = vsub.f32 %v2599_v25, %v2605_v0 }
0x15e2   : > { %v2607_v2 = vmul.f32 1.442695, %v2606_v1 }
0x15e3   : > { %v2767_v8 = vpop.permute.xlu1 %2766 }
0x15e4   : > { %9774 = vpow2.f32 %v2607_v2 }
0x15e7   : > { %v2765_v10 = vpop.permute.xlu1 %2764 }
0x15ee   : > { %v9775_v3 = vpop.eup %9774 }
0x15ef   : > { %v2609_v4 = vsel %vm733_vm2, %v9775_v3, 0.0 }
0x15f0   : > { %2610 = vadd.xlane.f32.xlu0 %v2609_v4  ;;  %v8502_v4 = vld [vmem:[#allocation2 + $0x4] ss:$0 sm:$0xff] }
0x1606   : > { %2614 = vrot.lane.b32.xlu0 %v10657_v19, %s11531_s23 }
0x167d   : > { %v2611_v5 = vpop.xlane.xlu0 %2610 }
0x167e   : > { %9776 = vrcp.f32 %v2611_v5 }
0x1681   : > { %v2615_v6 = vpop.permute.xlu0 %2614 }
0x1682   : > { %9063 = vmatpush3.msra.mxu1 %v2615_v6  ;;  %v8519_v6 = vld [vmem:[%s11464_s6 + $0x40] sm:$0xff] }
0x1683   : > { %9072 = vmatprep.subr.mxu1 %v10130_v15 }
0x1688   : > { %v9777_v7 = vpop.eup %9776 }
0x1689   : > { %v2613_v9 = vmul.f32 %v9777_v7, %v9775_v3  ;;  %v8520_v7 = vld [vmem:[%s11464_s6 + $0x48] sm:$0xff] }
0x168a   : > { %v9532_v11 = vpack.c.bf16 %v8520_v7, %v8519_v6 }
0x168b   : > { %9065 = vmatmul.mubr.msk.f32.vlgmr.msra.gmra.mrb[20].mxu1 %vm733_vm2, %v2613_v9 }
0x168c   : > { %9073 = vmatpush3.xpose.msk.msra.mxu1 %vm733_vm2, %v2767_v8  ;;  %9074 = vmatprep.mubr.msk.f32.mxu1 %vm10129_vm1, %v10130_v15  ;;  %v8503_v8 = vld [vmem:[#allocation5 + $0x4] ss:$0 sm:$0xff] }
0x168d   : > { %9082 = vmatprep.subr.mxu1 %v10130_v15 }
0x168f   : > { %9075 = vmatmul.mubr.msk.f32.vlgmr.msra.gmra.mrb[22].mxu1 %vm733_vm2, %v2765_v10 }
0x1690   : > { %9084 = vmatprep.mubr.msk.f32.mxu1 %vm10129_vm1, %v10130_v15  ;;  %9083 = vmatpush3.msra.mxu1 %v8484_v29 }
0x1691   : > { %9519 = vmatprep.subr.bf16.mxu1 %v10128_v12 }
0x175e   : > { %v2686_v13 = vpop.f32.mrb[20].mxu1 }
0x175f   : > { %v9066_v14 = vpop.f32.mrb[21].mxu1  ;;  %9070 = vmatmul.mubr.msk.f32.vlgmr.msra.gmra.mrb[26].mxu0 %vm733_vm2, %v2686_v13 }
0x1760   : > { %9079 = vmatprep.mubr.msk.f32.mxu0 %vm10129_vm1, %v10130_v15 }
0x1762   : > { %v2838_v17 = vpop.f32.mrb[22].mxu1 }
0x1763   : > { %v9076_v18 = vpop.f32.mrb[23].mxu1  ;;  %v2842_v20 = vsel %vm733_vm2, %v2838_v17, -inf }
0x1764   : > { %2843 = vmax.xlane.f32.xlu0 %v2842_v20  ;;  %v8522_v18 = vld [vmem:[%s11464_s6 + $0x58] sm:$0xff]  ;;  %v8444_v20 = vld [vmem:[#allocation2 + $0x1] ss:$0 sm:$0xff] }
0x177a   : > { %2853 = vrot.lane.b32.xlu0 %v10657_v19, %s11532_s15 }
0x17f1   : > { %v2844_v21 = vpop.xlane.xlu0 %2843 }
0x17f2   : > { %v2845_v22 = vsub.f32 %v2838_v17, %v2844_v21  ;;  %v8521_v17 = vld [vmem:[%s11464_s6 + $0x50] sm:$0xff] }
0x17f3   : > { %v9535_v21 = vpack.c.bf16 %v8522_v18, %v8521_v17  ;;  %v636_v17 = vlaneseq }
0x17f4   : > { %v2846_v23 = vmul.f32 1.442695, %v2845_v22 }
0x17f5   : > { %v2854_v24 = vpop.permute.xlu0 %2853  ;;  %v637_v18 = vshrl.u32 %v636_v17, 7 }
0x17f6   : > { %9778 = vpow2.f32 %v2846_v23  ;;  %9078 = vmatpush3.msra.mxu0 %v2854_v24  ;;  %v8445_v23 = vld [vmem:[#allocation5 + $0x1] ss:$0 sm:$0xff] }
0x17f7   : > { %9513 = vmatprep.subr.bf16.mxu0 %v10128_v12 }
0x1800   : > { %v9779_v26 = vpop.eup %9778 }
0x1801   : > { %v2848_v27 = vsel %vm733_vm2, %v9779_v26, 0.0 }
0x1802   : > { %2849 = vadd.xlane.f32.xlu1 %v2848_v27  ;;  %v8508_v27 = vld [vmem:[%s11470_s12 + $0x48] sm:$0xff] }
0x1832   : > { %v2759_v19 = vpop.f32.mrb[26].mxu0 }
0x1833   : > { %v2763_v30 = vadd.f32 %v2759_v19, %v2522_v60  ;;  %v9071_v31 = vpop.f32.mrb[27].mxu0  ;;  %v3048_v60 = vld [vmem:[#allocation8 + $0x38] sm:$0xff] }
0x1834   : > { %v9517_v61 = vpack.c.bf16 %v3048_v60, %v3047_v59  ;;  %v8509_v19 = vld [vmem:[%s11470_s12 + $0x50] sm:$0xff] }
0x188f   : > { %v2850_v32 = vpop.xlane.xlu1 %2849 }
0x1890   : > { %9780 = vrcp.f32 %v2850_v32  ;;  %v8511_v32 = vld [vmem:[%s11470_s12 + $0x60] sm:$0xff] }
0x189a   : > { %v9781_v33 = vpop.eup %9780 }
0x189b   : > { %v2852_v34 = vmul.f32 %v9781_v33, %v9779_v26  ;;  %v8507_v26 = vld [vmem:[%s11470_s12 + $0x40] sm:$0xff]  ;;  %v8512_v33 = vld [vmem:[%s11470_s12 + $0x68] sm:$0xff] }
0x189c   : > { %v9520_v29 = vpack.c.bf16 %v8508_v27, %v8507_v26 }
0x189d   : > { %9080 = vmatmul.mubr.msk.f32.vlgmr.msra.gmra.mrb[28].mxu0 %vm733_vm2, %v2852_v34  ;;  %v9526_v34 = vpack.c.bf16 %v8512_v33, %v8511_v32 }
0x189e   : > { %9095 = vmatprep.mubr.msk.f32.mxu0 %vm10129_vm1, %v10130_v15  ;;  %9515 = vmatpush3.bf16.msra.mxu0 %v9514_v58 }
0x189f   : > { %9516 = vmatprep.subr.bf16.mxu0 %v10128_v12 }
0x18a2   : > { %9518 = vmatpush3.bf16.msra.mxu0 %v9517_v61 }
0x18a3   : > { %9531 = vmatprep.subr.bf16.mxu0 %v10128_v12 }
0x1970   : > { %v2925_v35 = vpop.f32.mrb[28].mxu0 }
0x1971   : > { %v9081_v36 = vpop.f32.mrb[29].mxu0  ;;  %9085 = vmatmul.mubr.msk.f32.vlgmr.msra.gmra.mrb[24].mxu1 %vm733_vm2, %v2925_v35  ;;  %v8513_v35 = vld [vmem:[%s11470_s12 + $0x70] sm:$0xff] }
0x1972   : > { %9114 = vmatprep.mubr.msk.f32.mxu1 %vm10129_vm1, %v10130_v15  ;;  %9521 = vmatpush3.bf16.msra.mxu1 %v9520_v29  ;;  %v8514_v36 = vld [vmem:[%s11470_s12 + $0x78] sm:$0xff] }
0x1973   : > { %9522 = vmatprep.subr.bf16.mxu1 %v10128_v12 }
0x1a44   : > { %v2998_v37 = vpop.f32.mrb[24].mxu1 }
0x1a45   : > { %v3002_v39 = vadd.f32 %v2998_v37, %v2763_v30  ;;  %v9086_v40 = vpop.f32.mrb[25].mxu1  ;;  %v8510_v30 = vld [vmem:[%s11470_s12 + $0x58] sm:$0xff]  ;;  %v9529_v37 = vpack.c.bf16 %v8514_v36, %v8513_v35 }
0x1a46   : > { %v9523_v31 = vpack.c.bf16 %v8510_v30, %v8509_v19 }
0x1a47   : > { %v3011_v28 = vadd.f32 %v8501_v38, %v3002_v39  ;;  %v8504_v38 = vld [vmem:[#allocation10 + $0x1] ss:$0 sm:$0xff] }
0x1a48   : > { %9524 = vmatpush3.bf16.msra.mxu1 %v9523_v31 }
0x1a49   : > { %v3012_v43 = vadd.f32 %v3011_v28, %v10648_v16  ;;  %9525 = vmatprep.subr.bf16.mxu1 %v10128_v12 }
0x1a4b   : > { %v3013_v45 = vsel %vm571_vm0, %v3012_v43, 0.0 }
0x1a4c   : > { %3014 = vadd.xlane.f32.xlu1 %v3013_v45  ;;  %9527 = vmatpush3.bf16.msra.mxu1 %v9526_v34 }
0x1a4d   : > { %9528 = vmatprep.subr.bf16.mxu1 %v10128_v12 }
0x1a50   : > { %606 = vadd.xlane.f32.xlu1 %v605_v46  ;;  %9530 = vmatpush3.bf16.msra.mxu1 %v9529_v37 }
0x1a51   : > { %9133 = vmatprep.subr.mxu1 %v10130_v15 }
0x1ad9   : > { %v3015_v47 = vpop.xlane.xlu1 %3014 }
0x1ada   : > { %v3016_v48 = vmul.f32 0.03125, %v3015_v47 }
0x1adc   : > { %v3017_v49 = vsub.f32 %v3012_v43, %v3016_v48  ;;  %v8524_v43 = vld [vmem:[%s11465_s7 + $0x2] ss:$0 sm:$0xff] }
0x1add   : > { %v607_v50 = vpop.xlane.xlu1 %606 }
0x1ade   : > { %v608_v51 = vmul.f32 0.03125, %v607_v50  ;;  %v3018_v52 = vmul.f32 %v3017_v49, %v3017_v49 }
0x1ae0   : > { %v609_v53 = vsub.f32 %v604_v44, %v608_v51  ;;  %v3019_v54 = vsel %vm571_vm0, %v3018_v52, 0.0 }
0x1ae1   : > { %3020 = vadd.xlane.f32.xlu1 %v3019_v54 }
0x1ae2   : > { %v610_v55 = vmul.f32 %v609_v53, %v609_v53 }
0x1ae4   : > { %v611_v16 = vsel %vm571_vm0, %v610_v55, 0.0 }
0x1ae5   : > { %612 = vadd.xlane.f32.xlu1 %v611_v16 }
0x1b6e   : > { %v3021_v25 = vpop.xlane.xlu1 %3020 }
0x1b6f   : > { %v3022_v62 = vmul.f32 0.03125, %v3021_v25 }
0x1b71   : > { %v3023_v63 = vadd.f32 1e-05, %v3022_v62 }
0x1b72   : > { %v613_v0 = vpop.xlane.xlu1 %612 }
0x1b73   : > { %9782 = vrsqrt.f32 %v3023_v63  ;;  %v614_v1 = vmul.f32 0.03125, %v613_v0 }
0x1b75   : > { %v615_v2 = vadd.f32 1e-05, %v614_v1 }
0x1b77   : > { %9784 = vrsqrt.f32 %v615_v2 }
0x1b7d   : > { %v9783_v3 = vpop.eup %9782 }
0x1b7e   : > { %v3025_v5 = vmul.f32 %v9783_v3, %v3017_v49 }
0x1b80   : > { %v3034_v9 = vmul.f32 %v8502_v4, %v3025_v5 }
0x1b81   : > { %v9785_v10 = vpop.eup %9784 }
0x1b82   : > { %v617_v13 = vmul.f32 %v9785_v10, %v609_v53  ;;  %v10775_v14 = vadd.f32 %v8503_v8, %v3034_v9 }
0x1b84   : > { %9096 = vmatmul.mubr.msk.f32.vlgmr.msra.gmra.mrb[30].mxu0 %vm571_vm0, %v10775_v14  ;;  %v626_v22 = vmul.f32 %v8444_v20, %v617_v13  ;;  %v639_v20 = vand.u32 127, %v636_v17 }
0x1b85   : > { %9533 = vmatpush3.bf16.msra.mxu0 %v9532_v11  ;;  %9125 = vmatprep.mubr.msk.f32.mxu0 %vm10129_vm1, %v10130_v15 }
0x1b86   : > { %9534 = vmatprep.subr.bf16.mxu0 %v10128_v12  ;;  %v10788_v24 = vadd.f32 %v8445_v23, %v626_v22  ;;  %vm640_vm4 = vcmp.ge.s32.totalorder %v637_v18, %v639_v20  ;;  %v8528_v18 = vld [vmem:[%s11466_s8 + $0x50] sm:$0xff]  ;;  %v8515_v20 = vld [vmem:[#allocation11 + $0x1] ss:$0 sm:$0xff] }
0x1b89   : > { %9536 = vmatpush3.bf16.msra.mxu0 %v9535_v21  ;;  %v10142_v21 = vmov -3.4028235e+38  }
0x1b8a   : > { %9128 = vmatprep.subr.mxu0 %v10130_v15  ;;  %v10850_v22 = vsel %vm640_vm4, 0.0, %v10142_v21 }
0x1b8c   : > { %9126 = vmatmul.mubr.msk.f32.vlgmr.msra.gmra.mrb[32].mxu0 %vm571_vm0, %v10788_v24 }
0x1b8d   : > { %9130 = vmatprep.mubr.msk.f32.mxu0 %vm10129_vm1, %v10130_v15 }
0x1c57   : > { %v3126_v39 = vpop.f32.mrb[30].mxu0 }
0x1c58   : > { %v3127_v40 = vadd.f32 %v8504_v38, %v3126_v39  ;;  %v9097_v41 = vpop.f32.mrb[31].mxu0 }
0x1c5a   : > { %v3131_v42 = vmul.f32 0.70710677, %v3127_v40  ;;  %v3130_v5 = vmul.f32 0.5, %v3127_v40 }
0x1c5c   : > { %v8506_v28 = vclamps-f32 %v3131_v42, 4.0 }
0x1c5e   : > { %v3134_v44 = vmul.f32 %v8506_v28, %v8506_v28 }
0x1c5f   : > { %v3364_v45 = vpop.f32.mrb[32].mxu0 }
0x1c60   : > { %v3135_v46 = vmul.f32 -2.7261424e-10, %v3134_v44  ;;  %v3148_v47 = vmul.f32 -1.45660715e-05, %v3134_v44  ;;  %v10826_v48 = vadd.f32 %v8524_v43, %v3364_v45  ;;  %v9127_v49 = vpop.f32.mrb[33].mxu0 }
0x1c62   : > { %v3136_v50 = vadd.f32 2.7706815e-08, %v3135_v46  ;;  %v3149_v51 = vadd.f32 -0.00021337405, %v3148_v47  ;;  %3539 = vrot.lane.b32.xlu1 %v10826_v48, %s10133_s24  ;;  %3374 = vrot.lane.b32.xlu0 %v10826_v48, %s10132_s5 }
0x1c64   : > { %v3137_v52 = vmul.f32 %v3136_v50, %v3134_v44  ;;  %v3150_v53 = vmul.f32 %v3149_v51, %v3134_v44 }
0x1c66   : > { %v3138_v54 = vadd.f32 -2.101024e-06, %v3137_v52  ;;  %v3151_v55 = vadd.f32 -0.001682827, %v3150_v53  ;;  %3537 = vrot.lane.b32.xlu0 %v10826_v48, %s10131_s26  ;;  %v8526_v52 = vld [vmem:[%s11466_s8 + $0x40] sm:$0xff] }
0x1c68   : > { %v3139_v16 = vmul.f32 %v3138_v54, %v3134_v44  ;;  %v3152_v56 = vmul.f32 %v3151_v55, %v3134_v44 }
0x1c6a   : > { %v3140_v57 = vadd.f32 -5.6925062e-05, %v3139_v16  ;;  %v3153_v58 = vadd.f32 -0.0073733293, %v3152_v56 }
0x1c6c   : > { %v3141_v59 = vmul.f32 %v3140_v57, %v3134_v44  ;;  %v3154_v60 = vmul.f32 %v3153_v58, %v3134_v44 }
0x1c6e   : > { %v3142_v61 = vadd.f32 -0.00073499064, %v3141_v59  ;;  %v3155_v25 = vadd.f32 -0.014264739, %v3154_v60 }
0x1c70   : > { %v3143_v62 = vmul.f32 %v3142_v61, %v3134_v44  ;;  %9786 = vrcp.f32 %v3155_v25 }
0x1c72   : > { %v3144_v63 = vadd.f32 -0.0029546, %v3143_v62 }
0x1c74   : > { %v3145_v0 = vmul.f32 %v3144_v63, %v3134_v44 }
0x1c76   : > { %v3146_v1 = vadd.f32 -0.016096033, %v3145_v0 }
0x1c78   : > { %v3147_v2 = vmul.f32 %v8506_v28, %v3146_v1  ;;  %v8527_v28 = vld [vmem:[%s11466_s8 + $0x48] sm:$0xff] }
0x1c7a   : > { %v9787_v3 = vpop.eup %9786 }
0x1c7b   : > { %v3157_v4 = vmul.f32 %v9787_v3, %v3147_v2 }
0x1c7d   : > { %v3158_v6 = vadd.f32 1.0, %v3157_v4 }
0x1c7f   : > { %v3159_v7 = vmul.f32 %v3158_v6, %v3130_v5 }
0x1c81   : > { %9115 = vmatmul.mubr.msk.f32.vlgmr.msra.gmra.mrb[26].mxu1 %vm1853_vm3, %v3159_v7 }
0x1c82   : > { %9135 = vmatprep.mubr.msk.f32.mxu1 %vm10129_vm1, %v10130_v15 }
0x1cd4   : > { %v3375_v8 = vpop.permute.xlu0 %3374  ;;  %v3540_v9 = vpop.permute.xlu1 %3539 }
0x1cd5   : > { %9129 = vmatpush3.xpose.msk.msra.mxu0 %vm733_vm2, %v3375_v8 }
0x1cd6   : > { %9138 = vmatprep.subr.mxu0 %v10130_v15 }
0x1cd8   : > { %9131 = vmatmul.mubr.msk.f32.vlgmr.msra.gmra.mrb[34].mxu0 %vm733_vm2, %v10826_v48  ;;  %v3538_v10 = vpop.permute.xlu0 %3537 }
0x1cd9   : > { %9139 = vmatpush3.xpose.msk.msra.mxu0 %vm733_vm2, %v3540_v9  ;;  %9140 = vmatprep.mubr.msk.f32.mxu0 %vm10129_vm1, %v10130_v15 }
0x1cda   : > { %9148 = vmatprep.subr.mxu0 %v10130_v15 }
0x1cdc   : > { %9141 = vmatmul.mubr.msk.f32.vlgmr.msra.gmra.mrb[36].mxu0 %vm733_vm2, %v3538_v10 }
0x1cdd   : > { %9150 = vmatprep.mubr.msk.f32.mxu0 %vm10129_vm1, %v10130_v15  ;;  %9149 = vmatpush3.msra.mxu0 %v8527_v28 }
0x1cde   : > { %9158 = vmatprep.subr.mxu0 %v10130_v15 }
0x1d54   : > { %v10848_v11 = vpop.f32.mrb[26].mxu1 }
0x1d55   : > { %v9116_v13 = vpop.f32.mrb[27].mxu1 }
0x1dab   : > { %v3446_v23 = vpop.f32.mrb[34].mxu0 }
0x1dac   : > { %v3447_v26 = vadd.f32 %v3446_v23, %v10850_v22  ;;  %v9132_v27 = vpop.f32.mrb[35].mxu0 }
0x1dae   : > { %v3450_v29 = vsel %vm733_vm2, %v3447_v26, -inf }
0x1daf   : > { %3451 = vmax.xlane.f32.xlu0 %v3450_v29  ;;  %v3611_v19 = vpop.f32.mrb[36].mxu0 }
0x1db0   : > { %v3612_v30 = vadd.f32 %v3611_v19, %v10850_v22  ;;  %v9142_v31 = vpop.f32.mrb[37].mxu0 }
0x1db2   : > { %v3615_v32 = vsel %vm733_vm2, %v3612_v30, -inf }
0x1db3   : > { %3616 = vmax.xlane.f32.xlu1 %v3615_v32 }
0x1dc4   : > { %3626 = vrot.lane.b32.xlu1 %v10826_v48, %s11502_s21 }
0x1dc8   : > { %3848 = vrot.lane.b32.xlu1 %v10826_v48, %s10137_s27 }
0x1e3c   : > { %v3452_v33 = vpop.xlane.xlu0 %3451 }
0x1e3d   : > { %v3453_v34 = vsub.f32 %v3447_v26, %v3452_v33  ;;  %v3247_v26 = vadd.f32 %v8515_v20, %v10848_v11  ;;  %v8529_v11 = vld [vmem:[%s11466_s8 + $0x58] sm:$0xff] }
0x1e3f   : > { %v3454_v35 = vmul.f32 1.442695, %v3453_v34  ;;  %v3250_v31 = vadd.f32 %v3247_v26, %v10775_v14 }
0x1e40   : > { %v3617_v36 = vpop.xlane.xlu1 %3616 }
0x1e41   : > { %9788 = vpow2.f32 %v3454_v35  ;;  %v3618_v37 = vsub.f32 %v3612_v30, %v3617_v36  ;;  %v3251_v32 = vsel %vm571_vm0, %v3250_v31, 0.0 }
0x1e43   : > { %v3619_v38 = vmul.f32 1.442695, %v3618_v37 }
0x1e44   : > { %v3627_v49 = vpop.permute.xlu1 %3626 }
0x1e45   : > { %9790 = vpow2.f32 %v3619_v38 }
0x1e48   : > { %v3849_v57 = vpop.permute.xlu1 %3848 }
0x1e4b   : > { %v9789_v39 = vpop.eup %9788 }
0x1e4c   : > { %v3456_v40 = vsel %vm733_vm2, %v9789_v39, 0.0 }
0x1e4d   : > { %3457 = vadd.xlane.f32.xlu0 %v3456_v40 }
0x1e4f   : > { %v9791_v41 = vpop.eup %9790 }
0x1e50   : > { %v3621_v42 = vsel %vm733_vm2, %v9791_v41, 0.0 }
0x1e51   : > { %3622 = vadd.xlane.f32.xlu0 %v3621_v42 }
0x1e67   : > { %3461 = vrot.lane.b32.xlu0 %v10826_v48, %s11501_s29 }
0x1e6b   : > { %3850 = vrot.lane.b32.xlu0 %v10826_v48, %s11534_s30 }
0x1eda   : > { %v3458_v43 = vpop.xlane.xlu0 %3457 }
0x1edb   : > { %9792 = vrcp.f32 %v3458_v43 }
0x1ede   : > { %v3623_v44 = vpop.xlane.xlu0 %3622 }
0x1edf   : > { %9794 = vrcp.f32 %v3623_v44 }
0x1ee2   : > { %v3462_v45 = vpop.permute.xlu0 %3461 }
0x1ee3   : > { %9134 = vmatpush3.msra.mxu1 %v3462_v45 }
0x1ee4   : > { %9143 = vmatprep.subr.mxu1 %v10130_v15 }
0x1ee5   : > { %v9793_v46 = vpop.eup %9792 }
0x1ee6   : > { %v3460_v47 = vmul.f32 %v9793_v46, %v9789_v39  ;;  %v3851_v16 = vpop.permute.xlu0 %3850 }
0x1ee8   : > { %9136 = vmatmul.mubr.msk.f32.vlgmr.msra.gmra.mrb[28].mxu1 %vm733_vm2, %v3460_v47  ;;  %v8546_v47 = vld [vmem:[#allocation7 + $0x2] ss:$0 sm:$0xff] }
0x1ee9   : > { %v9795_v50 = vpop.eup %9794  ;;  %9144 = vmatpush3.msra.mxu1 %v3627_v49  ;;  %9145 = vmatprep.mubr.msk.f32.mxu1 %vm10129_vm1, %v10130_v15 }
0x1eea   : > { %v3625_v51 = vmul.f32 %v9795_v50, %v9791_v41  ;;  %9153 = vmatprep.subr.mxu1 %v10130_v15 }
0x1eec   : > { %9146 = vmatmul.mubr.msk.f32.vlgmr.msra.gmra.mrb[30].mxu1 %vm733_vm2, %v3625_v51 }
0x1eed   : > { %9155 = vmatprep.mubr.msk.f32.mxu1 %vm10129_vm1, %v10130_v15  ;;  %9154 = vmatpush3.msra.mxu1 %v8526_v52 }
0x1eee   : > { %9163 = vmatprep.subr.mxu1 %v10130_v15 }
0x1fbb   : > { %v3533_v53 = vpop.f32.mrb[28].mxu1 }
0x1fbc   : > { %v9137_v54 = vpop.f32.mrb[29].mxu1  ;;  %9156 = vmatmul.mubr.msk.f32.vlgmr.msra.gmra.mrb[32].mxu1 %vm733_vm2, %v3533_v53 }
0x1fbd   : > { %9165 = vmatprep.mubr.msk.f32.mxu1 %vm10129_vm1, %v10130_v15 }
0x1fbf   : > { %v3698_v55 = vpop.f32.mrb[30].mxu1 }
0x1fc0   : > { %v9147_v56 = vpop.f32.mrb[31].mxu1  ;;  %9151 = vmatmul.mubr.msk.f32.vlgmr.msra.gmra.mrb[38].mxu0 %vm733_vm2, %v3698_v55 }
0x1fc1   : > { %9159 = vmatpush3.xpose.msk.msra.mxu0 %vm733_vm2, %v3851_v16  ;;  %9160 = vmatprep.mubr.msk.f32.mxu0 %vm10129_vm1, %v10130_v15  ;;  %v8549_v56 = vld [vmem:[%s11464_s6 + $0x80] sm:$0xff] }
0x1fc2   : > { %9168 = vmatprep.subr.mxu0 %v10130_v15 }
0x1fc4   : > { %9161 = vmatmul.mubr.msk.f32.vlgmr.msra.gmra.mrb[40].mxu0 %vm733_vm2, %v3849_v57  ;;  %v8550_v57 = vld [vmem:[%s11464_s6 + $0x88] sm:$0xff] }
0x1fc5   : > { %9170 = vmatprep.mubr.msk.f32.mxu0 %vm10129_vm1, %v10130_v15  ;;  %9169 = vmatpush3.msra.mxu0 %v8528_v18 }
0x1fc6   : > { %9178 = vmatprep.subr.mxu0 %v10130_v15 }
0x208f   : > { %v3844_v58 = vpop.f32.mrb[32].mxu1 }
0x2090   : > { %v9157_v59 = vpop.f32.mrb[33].mxu1 }
0x2091   : > { %v9538_v59 = vpack.c.bf16 %v8550_v57, %v8549_v56 }
0x2093   : > { %v3771_v60 = vpop.f32.mrb[38].mxu0 }
0x2094   : > { %v3845_v61 = vadd.f32 %v3844_v58, %v3771_v60  ;;  %v9152_v25 = vpop.f32.mrb[39].mxu0  ;;  %v9722_v58 = vpack.i.bf16 %v8550_v57, %v8549_v56  ;;  %v8552_v60 = vld [vmem:[%s11464_s6 + $0x98] sm:$0xff] }
0x2097   : > { %v3922_v62 = vpop.f32.mrb[40].mxu0 }
0x2098   : > { %v3923_v63 = vadd.f32 %v3922_v62, %v10850_v22  ;;  %v9162_v0 = vpop.f32.mrb[41].mxu0 }
0x209a   : > { %v3926_v1 = vsel %vm733_vm2, %v3923_v63, -inf }
0x209b   : > { %3927 = vmax.xlane.f32.xlu0 %v3926_v1 }
0x20b1   : > { %3937 = vrot.lane.b32.xlu0 %v10826_v48, %s11531_s23 }
0x20b5   : > { %4087 = vrot.lane.b32.xlu0 %v10826_v48, %s11530_s18 }
0x2128   : > { %v3928_v2 = vpop.xlane.xlu0 %3927 }
0x2129   : > { %v3929_v3 = vsub.f32 %v3923_v63, %v3928_v2 }
0x212b   : > { %v3930_v4 = vmul.f32 1.442695, %v3929_v3  ;;  %v8554_v3 = vld [vmem:[%s11465_s7 + $0x4] ss:$0 sm:$0xff] }
0x212c   : > { %v3938_v5 = vpop.permute.xlu0 %3937 }
0x212d   : > { %9796 = vpow2.f32 %v3930_v4  ;;  %9164 = vmatpush3.msra.mxu1 %v3938_v5 }
0x212e   : > { %9173 = vmatprep.subr.mxu1 %v10130_v15 }
0x2130   : > { %v4088_v17 = vpop.permute.xlu0 %4087 }
0x2137   : > { %v9797_v6 = vpop.eup %9796 }
0x2138   : > { %v3932_v7 = vsel %vm733_vm2, %v9797_v6, 0.0 }
0x2139   : > { %3933 = vadd.xlane.f32.xlu1 %v3932_v7 }
0x214a   : > { %4089 = vrot.lane.b32.xlu1 %v10826_v48, %s11535_s28 }
0x21c6   : > { %v3934_v8 = vpop.xlane.xlu1 %3933 }
0x21c7   : > { %9798 = vrcp.f32 %v3934_v8 }
0x21ca   : > { %v4090_v13 = vpop.permute.xlu1 %4089 }
0x21d1   : > { %v9799_v9 = vpop.eup %9798 }
0x21d2   : > { %v3936_v10 = vmul.f32 %v9799_v9, %v9797_v6 }
0x21d4   : > { %9166 = vmatmul.mubr.msk.f32.vlgmr.msra.gmra.mrb[34].mxu1 %vm733_vm2, %v3936_v10 }
0x21d5   : > { %9174 = vmatpush3.xpose.msk.msra.mxu1 %vm733_vm2, %v4090_v13  ;;  %9175 = vmatprep.mubr.msk.f32.mxu1 %vm10129_vm1, %v10130_v15 }
0x21d6   : > { %9183 = vmatprep.subr.mxu1 %v10130_v15 }
0x21d8   : > { %9176 = vmatmul.mubr.msk.f32.vlgmr.msra.gmra.mrb[36].mxu1 %vm733_vm2, %v4088_v17 }
0x21d9   : > { %9185 = vmatprep.mubr.msk.f32.mxu1 %vm10129_vm1, %v10130_v15  ;;  %9184 = vmatpush3.msra.mxu1 %v8529_v11 }
0x21da   : > { %9543 = vmatprep.subr.bf16.mxu1 %v10128_v12 }
0x22a7   : > { %v4009_v21 = vpop.f32.mrb[34].mxu1 }
0x22a8   : > { %v9167_v23 = vpop.f32.mrb[35].mxu1  ;;  %9171 = vmatmul.mubr.msk.f32.vlgmr.msra.gmra.mrb[42].mxu0 %vm733_vm2, %v4009_v21 }
0x22a9   : > { %9180 = vmatprep.mubr.msk.f32.mxu0 %vm10129_vm1, %v10130_v15 }
0x22ab   : > { %v4161_v27 = vpop.f32.mrb[36].mxu1 }
0x22ac   : > { %v4162_v29 = vadd.f32 %v4161_v27, %v10850_v22  ;;  %v9177_v19 = vpop.f32.mrb[37].mxu1 }
0x22ae   : > { %v4165_v30 = vsel %vm733_vm2, %v4162_v29, -inf }
0x22af   : > { %4166 = vmax.xlane.f32.xlu1 %v4165_v30 }
0x22b3   : > { %3252 = vadd.xlane.f32.xlu1 %v3251_v32 }
0x233c   : > { %v4167_v33 = vpop.xlane.xlu1 %4166 }
0x233d   : > { %v4168_v34 = vsub.f32 %v4162_v29, %v4167_v33  ;;  %v8517_v29 = vld [vmem:[#allocation2 + $0x5] ss:$0 sm:$0xff] }
0x233f   : > { %v4169_v35 = vmul.f32 1.442695, %v4168_v34  ;;  %v8547_v34 = vld [vmem:[#allocation2 + $0x6] ss:$0 sm:$0xff] }
0x2340   : > { %v3253_v44 = vpop.xlane.xlu1 %3252 }
0x2341   : > { %9800 = vpow2.f32 %v4169_v35  ;;  %v3254_v45 = vmul.f32 0.03125, %v3253_v44 }
0x2343   : > { %v3255_v51 = vsub.f32 %v3250_v31, %v3254_v45  ;;  %v8518_v31 = vld [vmem:[#allocation5 + $0x5] ss:$0 sm:$0xff] }
0x2345   : > { %v3256_v55 = vmul.f32 %v3255_v51, %v3255_v51 }
0x2347   : > { %v3257_v16 = vsel %vm571_vm0, %v3256_v55, 0.0 }
0x234b   : > { %v9801_v36 = vpop.eup %9800 }
0x234c   : > { %v4171_v37 = vsel %vm733_vm2, %v9801_v36, 0.0 }
0x234d   : > { %4172 = vadd.xlane.f32.xlu0 %v4171_v37 }
0x2363   : > { %4176 = vrot.lane.b32.xlu0 %v10826_v48, %s11532_s15 }
0x237b   : > { %v4082_v14 = vpop.f32.mrb[42].mxu0 }
0x237c   : > { %v4086_v38 = vadd.f32 %v4082_v14, %v3845_v61  ;;  %v9172_v39 = vpop.f32.mrb[43].mxu0 }
0x23da   : > { %v4173_v40 = vpop.xlane.xlu0 %4172 }
0x23db   : > { %9802 = vrcp.f32 %v4173_v40 }
0x23de   : > { %v4177_v41 = vpop.permute.xlu0 %4176 }
0x23df   : > { %9179 = vmatpush3.msra.mxu0 %v4177_v41 }
0x23e0   : > { %9537 = vmatprep.subr.bf16.mxu0 %v10128_v12 }
0x23e5   : > { %v9803_v42 = vpop.eup %9802 }
0x23e6   : > { %v4175_v28 = vmul.f32 %v9803_v42, %v9801_v36  ;;  %v8548_v36 = vld [vmem:[#allocation5 + $0x6] ss:$0 sm:$0xff] }
0x23e8   : > { %9181 = vmatmul.mubr.msk.f32.vlgmr.msra.gmra.mrb[44].mxu0 %vm733_vm2, %v4175_v28 }
0x23e9   : > { %9196 = vmatprep.mubr.msk.f32.mxu0 %vm10129_vm1, %v10130_v15  ;;  %9539 = vmatpush3.bf16.msra.mxu0 %v9538_v59 }
0x23ea   : > { %9540 = vmatprep.subr.bf16.mxu0 %v10128_v12 }
0x24bb   : > { %v4248_v48 = vpop.f32.mrb[44].mxu0 }
0x24bc   : > { %v9182_v43 = vpop.f32.mrb[45].mxu0  ;;  %9186 = vmatmul.mubr.msk.f32.vlgmr.msra.gmra.mrb[38].mxu1 %vm733_vm2, %v4248_v48 }
0x24bd   : > { %9207 = vmatprep.mubr.msk.f32.mxu1 %vm10129_vm1, %v10130_v15 }
0x258f   : > { %v4321_v46 = vpop.f32.mrb[38].mxu1 }
0x2590   : > { %v4325_v49 = vadd.f32 %v4321_v46, %v4086_v38  ;;  %v9187_v50 = vpop.f32.mrb[39].mxu1 }
0x2592   : > { %v4334_v52 = vadd.f32 %v8546_v47, %v4325_v49 }
0x2594   : > { %v4335_v53 = vadd.f32 %v4334_v52, %v10788_v24  ;;  %v8551_v24 = vld [vmem:[%s11464_s6 + $0x90] sm:$0xff] }
0x2595   : > { %v9727_v61 = vpack.i.bf16 %v8552_v60, %v8551_v24  ;;  %v9541_v25 = vpack.c.bf16 %v8552_v60, %v8551_v24 }
0x2596   : > { %v4336_v54 = vsel %vm571_vm0, %v4335_v53, 0.0 }
0x2597   : > { %4337 = vadd.xlane.f32.xlu1 %v4336_v54  ;;  %9728 = vrot.lane.b32.xlu0 %v9727_v61, %s10132_s5 }
0x2598   : > { %9542 = vmatpush3.bf16.msra.mxu0 %v9541_v25 }
0x2599   : > { %9210 = vmatprep.subr.mxu0 %v10130_v15 }
0x259b   : > { %3258 = vadd.xlane.f32.xlu1 %v3257_v16  ;;  %4469 = vrot.lane.b32.xlu0 %v8554_v3, %s10132_s5 }
0x2609   : > { %v9729_v9 = vpop.permute.xlu0 %9728 }
0x260a   : > { %v9731_v18 = vunpack.i.h.bf16 %v9729_v9  ;;  %v9730_v23 = vunpack.i.l.bf16 %v9729_v9 }
0x260c   : > { %v9547_v19 = vpack.c.bf16 %v9731_v18, %v9730_v23 }
0x260d   : > { %v4470_v14 = vpop.permute.xlu0 %4469 }
0x2624   : > { %v4338_v62 = vpop.xlane.xlu1 %4337 }
0x2625   : > { %v4339_v63 = vmul.f32 0.03125, %v4338_v62  ;;  %v8558_v62 = vld [vmem:[%s11466_s8 + $0x88] sm:$0xff] }
0x2627   : > { %v4340_v0 = vsub.f32 %v4335_v53, %v4339_v63 }
0x2628   : > { %v3259_v4 = vpop.xlane.xlu1 %3258 }
0x2629   : > { %v4341_v1 = vmul.f32 %v4340_v0, %v4340_v0  ;;  %v3260_v5 = vmul.f32 0.03125, %v3259_v4 }
0x262b   : > { %v4342_v2 = vsel %vm571_vm0, %v4341_v1, 0.0  ;;  %v3261_v6 = vadd.f32 1e-05, %v3260_v5 }
0x262c   : > { %4343 = vadd.xlane.f32.xlu1 %v4342_v2 }
0x262d   : > { %9804 = vrsqrt.f32 %v3261_v6 }
0x2637   : > { %v9805_v10 = vpop.eup %9804 }
0x2638   : > { %v3263_v26 = vmul.f32 %v9805_v10, %v3255_v51 }
0x263a   : > { %v3272_v30 = vmul.f32 %v8517_v29, %v3263_v26 }
0x263c   : > { %v10962_v32 = vadd.f32 %v8518_v31, %v3272_v30 }
0x263d   : > { %9723 = vrot.lane.b32.xlu1 %v9722_v58, %s10132_s5 }
0x26b9   : > { %v4344_v7 = vpop.xlane.xlu1 %4343 }
0x26ba   : > { %v4345_v8 = vmul.f32 0.03125, %v4344_v7 }
0x26bc   : > { %v4346_v13 = vadd.f32 1e-05, %v4345_v8 }
0x26bd   : > { %v9724_v17 = vpop.permute.xlu1 %9723 }
0x26be   : > { %9806 = vrsqrt.f32 %v4346_v13  ;;  %v9726_v20 = vunpack.i.h.bf16 %v9724_v17  ;;  %v9725_v21 = vunpack.i.l.bf16 %v9724_v17 }
0x26c0   : > { %v9544_v27 = vpack.c.bf16 %v9726_v20, %v9725_v21 }
0x26c2   : > { %9545 = vmatpush3.bf16.msra.mxu1 %v9544_v27 }
0x26c3   : > { %9546 = vmatprep.subr.bf16.mxu1 %v10128_v12 }
0x26c6   : > { %9548 = vmatpush3.bf16.msra.mxu1 %v9547_v19 }
0x26c7   : > { %9215 = vmatprep.subr.mxu1 %v10130_v15 }
0x26c8   : > { %v9807_v33 = vpop.eup %9806 }
0x26c9   : > { %v4348_v35 = vmul.f32 %v9807_v33, %v4340_v0  ;;  %9208 = vmatmul.mubr.msk.f32.vlgmr.msra.gmra.mrb[40].mxu1 %vm571_vm0, %v10962_v32 }
0x26ca   : > { %9217 = vmatprep.mubr.msk.f32.mxu1 %vm10129_vm1, %v10130_v15 }
0x26cb   : > { %v4357_v37 = vmul.f32 %v8547_v34, %v4348_v35 }
0x26cd   : > { %v10969_v11 = vadd.f32 %v8548_v36, %v4357_v37 }
0x26cf   : > { %9197 = vmatmul.mubr.msk.f32.vlgmr.msra.gmra.mrb[46].mxu0 %vm571_vm0, %v10969_v11 }
0x26d0   : > { %9212 = vmatprep.mubr.msk.f32.mxu0 %vm10129_vm1, %v10130_v15 }
0x279c   : > { %v4541_v38 = vpop.f32.mrb[40].mxu1 }
0x279d   : > { %v10975_v39 = vadd.f32 %v4541_v38, %v4470_v14  ;;  %v9209_v40 = vpop.f32.mrb[41].mxu1  ;;  %v8559_v38 = vld [vmem:[%s11466_s8 + $0x90] sm:$0xff] }
0x279f   : > { %4715 = vrot.lane.b32.xlu0 %v10975_v39, %s10131_s26  ;;  %9211 = vmatpush3.xpose.msk.msra.mxu0 %vm733_vm2, %v10975_v39 }
0x27a0   : > { %9220 = vmatprep.subr.mxu0 %v10130_v15 }
0x27a2   : > { %v4449_v41 = vpop.f32.mrb[46].mxu0 }
0x27a3   : > { %v10982_v42 = vadd.f32 %v8554_v3, %v4449_v41  ;;  %v9198_v28 = vpop.f32.mrb[47].mxu0  ;;  %v8557_v3 = vld [vmem:[%s11466_s8 + $0x80] sm:$0xff] }
0x27a5   : > { %4713 = vrot.lane.b32.xlu0 %v10982_v42, %s10131_s26  ;;  %9213 = vmatmul.mubr.msk.f32.vlgmr.msra.gmra.mrb[48].mxu0 %vm733_vm2, %v10982_v42 }
0x27a6   : > { %9222 = vmatprep.mubr.msk.f32.mxu0 %vm10129_vm1, %v10130_v15 }
0x2811   : > { %v4716_v48 = vpop.permute.xlu0 %4715 }
0x2812   : > { %9221 = vmatpush3.xpose.msk.msra.mxu0 %vm733_vm2, %v4716_v48 }
0x2813   : > { %9230 = vmatprep.subr.mxu0 %v10130_v15 }
0x2817   : > { %v4714_v43 = vpop.permute.xlu0 %4713 }
0x2818   : > { %9223 = vmatmul.mubr.msk.f32.vlgmr.msra.gmra.mrb[50].mxu0 %vm733_vm2, %v4714_v43 }
0x2819   : > { %9232 = vmatprep.mubr.msk.f32.mxu0 %vm10129_vm1, %v10130_v15  ;;  %9231 = vmatpush3.msra.mxu0 %v8558_v62 }
0x281a   : > { %9240 = vmatprep.subr.mxu0 %v10130_v15 }
0x2878   : > { %v4622_v44 = vpop.f32.mrb[48].mxu0 }
0x2879   : > { %v9214_v45 = vpop.f32.mrb[49].mxu0  ;;  %v4626_v46 = vsel %vm733_vm2, %v4622_v44, -inf }
0x287a   : > { %4627 = vmax.xlane.f32.xlu1 %v4626_v46 }
0x28eb   : > { %v4787_v47 = vpop.f32.mrb[50].mxu0 }
0x28ec   : > { %v9224_v49 = vpop.f32.mrb[51].mxu0  ;;  %v4791_v50 = vsel %vm733_vm2, %v4787_v47, -inf }
0x28ed   : > { %4792 = vmax.xlane.f32.xlu0 %v4791_v50  ;;  %v8560_v50 = vld [vmem:[%s11466_s8 + $0x98] sm:$0xff] }
0x2907   : > { %v4628_v51 = vpop.xlane.xlu1 %4627 }
0x2908   : > { %v4629_v52 = vsub.f32 %v4622_v44, %v4628_v51 }
0x290a   : > { %v4630_v53 = vmul.f32 1.442695, %v4629_v52 }
0x290c   : > { %9808 = vpow2.f32 %v4630_v53 }
0x2916   : > { %v9809_v54 = vpop.eup %9808 }
0x2917   : > { %v4632_v55 = vsel %vm733_vm2, %v9809_v54, 0.0 }
0x2918   : > { %4633 = vadd.xlane.f32.xlu0 %v4632_v55 }
0x292e   : > { %4637 = vrot.lane.b32.xlu0 %v10975_v39, %s10132_s5 }
0x2932   : > { %5024 = vrot.lane.b32.xlu0 %v10982_v42, %s10137_s27 }
0x297a   : > { %v4793_v16 = vpop.xlane.xlu0 %4792 }
0x297b   : > { %v4794_v56 = vsub.f32 %v4787_v47, %v4793_v16 }
0x297d   : > { %v4795_v57 = vmul.f32 1.442695, %v4794_v56 }
0x297f   : > { %9810 = vpow2.f32 %v4795_v57 }
0x2989   : > { %v9811_v58 = vpop.eup %9810 }
0x298a   : > { %v4797_v59 = vsel %vm733_vm2, %v9811_v58, 0.0 }
0x298b   : > { %4798 = vadd.xlane.f32.xlu1 %v4797_v59 }
0x299c   : > { %4802 = vrot.lane.b32.xlu1 %v10975_v39, %s10133_s24 }
0x29a0   : > { %5026 = vrot.lane.b32.xlu1 %v10975_v39, %s10137_s27 }
0x29a5   : > { %v4634_v24 = vpop.xlane.xlu0 %4633 }
0x29a6   : > { %9812 = vrcp.f32 %v4634_v24 }
0x29a9   : > { %v4638_v60 = vpop.permute.xlu0 %4637 }
0x29aa   : > { %9216 = vmatpush3.msra.mxu1 %v4638_v60 }
0x29ab   : > { %9225 = vmatprep.subr.mxu1 %v10130_v15 }
0x29ad   : > { %v5025_v9 = vpop.permute.xlu0 %5024 }
0x29b0   : > { %v9813_v61 = vpop.eup %9812 }
0x29b1   : > { %v4636_v25 = vmul.f32 %v9813_v61, %v9809_v54 }
0x29b3   : > { %9218 = vmatmul.mubr.msk.f32.vlgmr.msra.gmra.mrb[42].mxu1 %vm733_vm2, %v4636_v25 }
0x29b4   : > { %9227 = vmatprep.mubr.msk.f32.mxu1 %vm10129_vm1, %v10130_v15 }
0x2a18   : > { %v4799_v63 = vpop.xlane.xlu1 %4798 }
0x2a19   : > { %9814 = vrcp.f32 %v4799_v63 }
0x2a1c   : > { %v4803_v0 = vpop.permute.xlu1 %4802 }
0x2a1d   : > { %9226 = vmatpush3.msra.mxu1 %v4803_v0 }
0x2a1e   : > { %9235 = vmatprep.subr.mxu1 %v10130_v15 }
0x2a20   : > { %v5027_v7 = vpop.permute.xlu1 %5026 }
0x2a23   : > { %v9815_v1 = vpop.eup %9814 }
0x2a24   : > { %v4801_v2 = vmul.f32 %v9815_v1, %v9811_v58  ;;  %v8577_v58 = vld [vmem:[#allocation7 + $0x4] ss:$0 sm:$0xff] }
0x2a26   : > { %9228 = vmatmul.mubr.msk.f32.vlgmr.msra.gmra.mrb[44].mxu1 %vm733_vm2, %v4801_v2 }
0x2a27   : > { %9236 = vmatpush3.msra.mxu1 %v8557_v3  ;;  %9237 = vmatprep.mubr.msk.f32.mxu1 %vm10129_vm1, %v10130_v15  ;;  %v5544_v3 = vld [vmem:[#allocation8 + $0x40] sm:$0xff] }
0x2a28   : > { %9245 = vmatprep.subr.mxu1 %v10130_v15 }
0x2a86   : > { %v4709_v4 = vpop.f32.mrb[42].mxu1 }
0x2a87   : > { %v9219_v5 = vpop.f32.mrb[43].mxu1  ;;  %9238 = vmatmul.mubr.msk.f32.vlgmr.msra.gmra.mrb[46].mxu1 %vm733_vm2, %v4709_v4  ;;  %v5545_v4 = vld [vmem:[#allocation8 + $0x48] sm:$0xff] }
0x2a88   : > { %9247 = vmatprep.mubr.msk.f32.mxu1 %vm10129_vm1, %v10130_v15  ;;  %v9550_v5 = vpack.c.bf16 %v5545_v4, %v5544_v3  ;;  %v8591_v3 = vld [vmem:[#allocation11 + $0x2] ss:$0 sm:$0xff] }
0x2af9   : > { %v4874_v6 = vpop.f32.mrb[44].mxu1 }
0x2afa   : > { %v9229_v8 = vpop.f32.mrb[45].mxu1  ;;  %9233 = vmatmul.mubr.msk.f32.vlgmr.msra.gmra.mrb[52].mxu0 %vm733_vm2, %v4874_v6  ;;  %v5546_v6 = vld [vmem:[#allocation8 + $0x50] sm:$0xff] }
0x2afb   : > { %9241 = vmatpush3.xpose.msk.msra.mxu0 %vm733_vm2, %v5027_v7  ;;  %9242 = vmatprep.mubr.msk.f32.mxu0 %vm10129_vm1, %v10130_v15  ;;  %v5547_v7 = vld [vmem:[#allocation8 + $0x58] sm:$0xff] }
0x2afc   : > { %9250 = vmatprep.subr.mxu0 %v10130_v15  ;;  %v9553_v8 = vpack.c.bf16 %v5547_v7, %v5546_v6 }
0x2afe   : > { %9243 = vmatmul.mubr.msk.f32.vlgmr.msra.gmra.mrb[54].mxu0 %vm733_vm2, %v5025_v9 }
0x2aff   : > { %9252 = vmatprep.mubr.msk.f32.mxu0 %vm10129_vm1, %v10130_v15  ;;  %9251 = vmatpush3.msra.mxu0 %v8559_v38  ;;  %v8580_v38 = vld [vmem:[#allocation10 + $0x2] ss:$0 sm:$0xff] }
0x2b00   : > { %9260 = vmatprep.subr.mxu0 %v10130_v15 }
0x2b5a   : > { %v5020_v10 = vpop.f32.mrb[46].mxu1 }
0x2b5b   : > { %v9239_v13 = vpop.f32.mrb[47].mxu1 }
0x2bcd   : > { %v4947_v17 = vpop.f32.mrb[52].mxu0 }
0x2bce   : > { %v5021_v18 = vadd.f32 %v5020_v10, %v4947_v17  ;;  %v9234_v20 = vpop.f32.mrb[53].mxu0  ;;  %v8578_v17 = vld [vmem:[#allocation2 + $0x8] ss:$0 sm:$0xff] }
0x2bcf   : > { %v8579_v20 = vld [vmem:[#allocation5 + $0x8] ss:$0 sm:$0xff] }
0x2bd1   : > { %v5098_v21 = vpop.f32.mrb[54].mxu0 }
0x2bd2   : > { %v9244_v23 = vpop.f32.mrb[55].mxu0  ;;  %v5102_v26 = vsel %vm733_vm2, %v5098_v21, -inf }
0x2bd3   : > { %5103 = vmax.xlane.f32.xlu1 %v5102_v26  ;;  %v8583_v26 = vld [vmem:[%s11470_s12 + $0x80] sm:$0xff] }
0x2be4   : > { %5265 = vrot.lane.b32.xlu1 %v10975_v39, %s11530_s18 }
0x2be8   : > { %5263 = vrot.lane.b32.xlu1 %v10982_v42, %s11530_s18 }
0x2c60   : > { %v5104_v27 = vpop.xlane.xlu1 %5103 }
0x2c61   : > { %v5105_v29 = vsub.f32 %v5098_v21, %v5104_v27  ;;  %v8584_v27 = vld [vmem:[%s11470_s12 + $0x88] sm:$0xff] }
0x2c63   : > { %v5106_v19 = vmul.f32 1.442695, %v5105_v29  ;;  %v9556_v29 = vpack.c.bf16 %v8584_v27, %v8583_v26  ;;  %v8598_v26 = vld [vmem:[%s11464_s6 + $0x78] sm:$0xff] }
0x2c64   : > { %v5266_v36 = vpop.permute.xlu1 %5265 }
0x2c65   : > { %9816 = vpow2.f32 %v5106_v19  ;;  %v8585_v19 = vld [vmem:[%s11470_s12 + $0x90] sm:$0xff] }
0x2c68   : > { %v5264_v14 = vpop.permute.xlu1 %5263 }
0x2c6f   : > { %v9817_v30 = vpop.eup %9816 }
0x2c70   : > { %v5108_v31 = vsel %vm733_vm2, %v9817_v30, 0.0 }
0x2c71   : > { %5109 = vadd.xlane.f32.xlu0 %v5108_v31 }
0x2c87   : > { %5113 = vrot.lane.b32.xlu0 %v10975_v39, %s11534_s30 }
0x2cfe   : > { %v5110_v33 = vpop.xlane.xlu0 %5109 }
0x2cff   : > { %9818 = vrcp.f32 %v5110_v33  ;;  %v8587_v33 = vld [vmem:[%s11470_s12 + $0xa0] sm:$0xff] }
0x2d02   : > { %v5114_v34 = vpop.permute.xlu0 %5113 }
0x2d03   : > { %9246 = vmatpush3.msra.mxu1 %v5114_v34  ;;  %v8588_v34 = vld [vmem:[%s11470_s12 + $0xa8] sm:$0xff] }
0x2d04   : > { %9255 = vmatprep.subr.mxu1 %v10130_v15 }
0x2d09   : > { %v9819_v35 = vpop.eup %9818 }
0x2d0a   : > { %v5112_v37 = vmul.f32 %v9819_v35, %v9817_v30  ;;  %v8586_v30 = vld [vmem:[%s11470_s12 + $0x98] sm:$0xff]  ;;  %v9562_v35 = vpack.c.bf16 %v8588_v34, %v8587_v33  ;;  %v8593_v33 = vld [vmem:[#allocation2 + $0x9] ss:$0 sm:$0xff] }
0x2d0b   : > { %v9559_v31 = vpack.c.bf16 %v8586_v30, %v8585_v19 }
0x2d0c   : > { %9248 = vmatmul.mubr.msk.f32.vlgmr.msra.gmra.mrb[48].mxu1 %vm733_vm2, %v5112_v37  ;;  %v8590_v37 = vld [vmem:[%s11470_s12 + $0xb8] sm:$0xff] }
0x2d0d   : > { %9256 = vmatpush3.xpose.msk.msra.mxu1 %vm733_vm2, %v5266_v36  ;;  %9257 = vmatprep.mubr.msk.f32.mxu1 %vm10129_vm1, %v10130_v15  ;;  %v8589_v36 = vld [vmem:[%s11470_s12 + $0xb0] sm:$0xff] }
0x2d0e   : > { %9265 = vmatprep.subr.mxu1 %v10130_v15 }
0x2d10   : > { %9258 = vmatmul.mubr.msk.f32.vlgmr.msra.gmra.mrb[50].mxu1 %vm733_vm2, %v5264_v14  ;;  %v9565_v14 = vpack.c.bf16 %v8590_v37, %v8589_v36 }
0x2d11   : > { %9267 = vmatprep.mubr.msk.f32.mxu1 %vm10129_vm1, %v10130_v15  ;;  %9266 = vmatpush3.msra.mxu1 %v8560_v50 }
0x2d12   : > { %9555 = vmatprep.subr.bf16.mxu1 %v10128_v12 }
0x2ddf   : > { %v5185_v40 = vpop.f32.mrb[48].mxu1 }
0x2de0   : > { %v9249_v41 = vpop.f32.mrb[49].mxu1  ;;  %9253 = vmatmul.mubr.msk.f32.vlgmr.msra.gmra.mrb[56].mxu0 %vm733_vm2, %v5185_v40 }
0x2de1   : > { %9262 = vmatprep.mubr.msk.f32.mxu0 %vm10129_vm1, %v10130_v15 }
0x2de3   : > { %v5337_v42 = vpop.f32.mrb[50].mxu1 }
0x2de4   : > { %v9259_v28 = vpop.f32.mrb[51].mxu1  ;;  %v5341_v48 = vsel %vm733_vm2, %v5337_v42, -inf }
0x2de5   : > { %5342 = vmax.xlane.f32.xlu0 %v5341_v48 }
0x2dfb   : > { %5352 = vrot.lane.b32.xlu0 %v10975_v39, %s11535_s28 }
0x2e72   : > { %v5343_v43 = vpop.xlane.xlu0 %5342 }
0x2e73   : > { %v5344_v44 = vsub.f32 %v5337_v42, %v5343_v43 }
0x2e75   : > { %v5345_v45 = vmul.f32 1.442695, %v5344_v44 }
0x2e76   : > { %v5353_v46 = vpop.permute.xlu0 %5352 }
0x2e77   : > { %9820 = vpow2.f32 %v5345_v45  ;;  %9261 = vmatpush3.msra.mxu0 %v5353_v46 }
0x2e78   : > { %9549 = vmatprep.subr.bf16.mxu0 %v10128_v12 }
0x2e81   : > { %v9821_v47 = vpop.eup %9820 }
0x2e82   : > { %v5347_v49 = vsel %vm733_vm2, %v9821_v47, 0.0 }
0x2e83   : > { %5348 = vadd.xlane.f32.xlu1 %v5347_v49 }
0x2eb3   : > { %v5258_v39 = vpop.f32.mrb[56].mxu0 }
0x2eb4   : > { %v5262_v51 = vadd.f32 %v5258_v39, %v5021_v18  ;;  %v9254_v52 = vpop.f32.mrb[57].mxu0 }
0x2f10   : > { %v5349_v53 = vpop.xlane.xlu1 %5348 }
0x2f11   : > { %9822 = vrcp.f32 %v5349_v53 }
0x2f1b   : > { %v9823_v54 = vpop.eup %9822 }
0x2f1c   : > { %v5351_v55 = vmul.f32 %v9823_v54, %v9821_v47 }
0x2f1e   : > { %9263 = vmatmul.mubr.msk.f32.vlgmr.msra.gmra.mrb[58].mxu0 %vm733_vm2, %v5351_v55 }
0x2f1f   : > { %9278 = vmatprep.mubr.msk.f32.mxu0 %vm10129_vm1, %v10130_v15  ;;  %9551 = vmatpush3.bf16.msra.mxu0 %v9550_v5 }
0x2f20   : > { %9552 = vmatprep.subr.bf16.mxu0 %v10128_v12 }
0x2f23   : > { %9554 = vmatpush3.bf16.msra.mxu0 %v9553_v8 }
0x2f24   : > { %9567 = vmatprep.subr.bf16.mxu0 %v10128_v12 }
0x2ff1   : > { %v5424_v16 = vpop.f32.mrb[58].mxu0 }
0x2ff2   : > { %v9264_v56 = vpop.f32.mrb[59].mxu0  ;;  %9268 = vmatmul.mubr.msk.f32.vlgmr.msra.gmra.mrb[52].mxu1 %vm733_vm2, %v5424_v16 }
0x2ff3   : > { %9297 = vmatprep.mubr.msk.f32.mxu1 %vm10129_vm1, %v10130_v15  ;;  %9557 = vmatpush3.bf16.msra.mxu1 %v9556_v29 }
0x2ff4   : > { %9558 = vmatprep.subr.bf16.mxu1 %v10128_v12 }
0x2ff7   : > { %9560 = vmatpush3.bf16.msra.mxu1 %v9559_v31 }
0x2ff8   : > { %9561 = vmatprep.subr.bf16.mxu1 %v10128_v12 }
0x2ffb   : > { %9563 = vmatpush3.bf16.msra.mxu1 %v9562_v35  ;;  %v8594_v35 = vld [vmem:[#allocation5 + $0x9] ss:$0 sm:$0xff] }
0x2ffc   : > { %9564 = vmatprep.subr.bf16.mxu1 %v10128_v12 }
0x2fff   : > { %9566 = vmatpush3.bf16.msra.mxu1 %v9565_v14  ;;  %v8600_v14 = vld [vmem:[%s11465_s7 + $0x3] ss:$0 sm:$0xff] }
0x3000   : > { %9316 = vmatprep.subr.mxu1 %v10130_v15 }
0x30c5   : > { %v5497_v57 = vpop.f32.mrb[52].mxu1 }
0x30c6   : > { %v5501_v59 = vadd.f32 %v5497_v57, %v5262_v51  ;;  %v9269_v24 = vpop.f32.mrb[53].mxu1 }
0x30c8   : > { %v5510_v60 = vadd.f32 %v8577_v58, %v5501_v59 }
0x30ca   : > { %v5511_v61 = vadd.f32 %v5510_v60, %v10969_v11 }
0x30cc   : > { %v5512_v25 = vsel %vm571_vm0, %v5511_v61, 0.0 }
0x30cd   : > { %5513 = vadd.xlane.f32.xlu1 %v5512_v25 }
0x315a   : > { %v5514_v62 = vpop.xlane.xlu1 %5513 }
0x315b   : > { %v5515_v63 = vmul.f32 0.03125, %v5514_v62 }
0x315d   : > { %v5516_v0 = vsub.f32 %v5511_v61, %v5515_v63 }
0x315f   : > { %v5517_v1 = vmul.f32 %v5516_v0, %v5516_v0 }
0x3161   : > { %v5518_v2 = vsel %vm571_vm0, %v5517_v1, 0.0 }
0x3162   : > { %5519 = vadd.xlane.f32.xlu1 %v5518_v2 }
0x31ef   : > { %v5520_v11 = vpop.xlane.xlu1 %5519 }
0x31f0   : > { %v5521_v9 = vmul.f32 0.03125, %v5520_v11 }
0x31f2   : > { %v5522_v10 = vadd.f32 1e-05, %v5521_v9 }
0x31f4   : > { %9824 = vrsqrt.f32 %v5522_v10 }
0x31fe   : > { %v9825_v13 = vpop.eup %9824 }
0x31ff   : > { %v5524_v18 = vmul.f32 %v9825_v13, %v5516_v0 }
0x3201   : > { %v5533_v21 = vmul.f32 %v8578_v17, %v5524_v18  ;;  %v8595_v18 = vld [vmem:[%s11464_s6 + $0x60] sm:$0xff] }
0x3203   : > { %v11078_v23 = vadd.f32 %v8579_v20, %v5533_v21  ;;  %v8596_v20 = vld [vmem:[%s11464_s6 + $0x68] sm:$0xff] }
0x3204   : > { %v9568_v21 = vpack.c.bf16 %v8596_v20, %v8595_v18 }
0x3205   : > { %9279 = vmatmul.mubr.msk.f32.vlgmr.msra.gmra.mrb[60].mxu0 %vm571_vm0, %v11078_v23 }
0x3206   : > { %9308 = vmatprep.mubr.msk.f32.mxu0 %vm10129_vm1, %v10130_v15  ;;  %9569 = vmatpush3.bf16.msra.mxu0 %v9568_v21 }
0x3207   : > { %9570 = vmatprep.subr.bf16.mxu0 %v10128_v12 }
0x32d8   : > { %v5625_v40 = vpop.f32.mrb[60].mxu0 }
0x32d9   : > { %v5626_v41 = vadd.f32 %v8580_v38, %v5625_v40  ;;  %v9280_v42 = vpop.f32.mrb[61].mxu0 }
0x32db   : > { %v5630_v28 = vmul.f32 0.70710677, %v5626_v41  ;;  %v5629_v0 = vmul.f32 0.5, %v5626_v41 }
0x32dd   : > { %v8582_v48 = vclamps-f32 %v5630_v28, 4.0 }
0x32df   : > { %v5633_v43 = vmul.f32 %v8582_v48, %v8582_v48 }
0x32e1   : > { %v5634_v44 = vmul.f32 -2.7261424e-10, %v5633_v43  ;;  %v5647_v45 = vmul.f32 -1.45660715e-05, %v5633_v43 }
0x32e3   : > { %v5635_v46 = vadd.f32 2.7706815e-08, %v5634_v44  ;;  %v5648_v47 = vadd.f32 -0.00021337405, %v5647_v45 }
0x32e5   : > { %v5636_v49 = vmul.f32 %v5635_v46, %v5633_v43  ;;  %v5649_v50 = vmul.f32 %v5648_v47, %v5633_v43 }
0x32e7   : > { %v5637_v39 = vadd.f32 -2.101024e-06, %v5636_v49  ;;  %v5650_v51 = vadd.f32 -0.001682827, %v5649_v50 }
0x32e9   : > { %v5638_v52 = vmul.f32 %v5637_v39, %v5633_v43  ;;  %v5651_v53 = vmul.f32 %v5650_v51, %v5633_v43 }
0x32eb   : > { %v5639_v54 = vadd.f32 -5.6925062e-05, %v5638_v52  ;;  %v5652_v55 = vadd.f32 -0.0073733293, %v5651_v53 }
0x32ed   : > { %v5640_v16 = vmul.f32 %v5639_v54, %v5633_v43  ;;  %v5653_v56 = vmul.f32 %v5652_v55, %v5633_v43 }
0x32ef   : > { %v5641_v57 = vadd.f32 -0.00073499064, %v5640_v16  ;;  %v5654_v58 = vadd.f32 -0.014264739, %v5653_v56 }
0x32f1   : > { %v5642_v59 = vmul.f32 %v5641_v57, %v5633_v43  ;;  %9826 = vrcp.f32 %v5654_v58 }
0x32f3   : > { %v5643_v24 = vadd.f32 -0.0029546, %v5642_v59 }
0x32f5   : > { %v5644_v60 = vmul.f32 %v5643_v24, %v5633_v43  ;;  %v8603_v24 = vld [vmem:[%s11466_s8 + $0x68] sm:$0xff] }
0x32f7   : > { %v5645_v61 = vadd.f32 -0.016096033, %v5644_v60 }
0x32f9   : > { %v5646_v25 = vmul.f32 %v8582_v48, %v5645_v61 }
0x32fb   : > { %v9827_v62 = vpop.eup %9826 }
0x32fc   : > { %v5656_v63 = vmul.f32 %v9827_v62, %v5646_v25 }
0x32fe   : > { %v5657_v1 = vadd.f32 1.0, %v5656_v63 }
0x3300   : > { %v5658_v2 = vmul.f32 %v5657_v1, %v5629_v0 }
0x3302   : > { %9298 = vmatmul.mubr.msk.f32.vlgmr.msra.gmra.mrb[54].mxu1 %vm1853_vm3, %v5658_v2 }
0x3303   : > { %9318 = vmatprep.mubr.msk.f32.mxu1 %vm10129_vm1, %v10130_v15 }
0x33d5   : > { %v5745_v4 = vpop.f32.mrb[54].mxu1 }
0x33d6   : > { %v5746_v5 = vadd.f32 %v8591_v3, %v5745_v4  ;;  %v9299_v6 = vpop.f32.mrb[55].mxu1  ;;  %v8602_v3 = vld [vmem:[%s11466_s8 + $0x60] sm:$0xff] }
0x33d8   : > { %v5749_v7 = vadd.f32 %v5746_v5, %v11078_v23  ;;  %v8597_v23 = vld [vmem:[%s11464_s6 + $0x70] sm:$0xff] }
0x33d9   : > { %v9571_v27 = vpack.c.bf16 %v8598_v26, %v8597_v23 }
0x33da   : > { %v5750_v8 = vsel %vm571_vm0, %v5749_v7, 0.0 }
0x33db   : > { %5751 = vadd.xlane.f32.xlu1 %v5750_v8  ;;  %9572 = vmatpush3.bf16.msra.mxu0 %v9571_v27 }
0x33dc   : > { %9311 = vmatprep.subr.mxu0 %v10130_v15 }
0x3468   : > { %v5752_v11 = vpop.xlane.xlu1 %5751 }
0x3469   : > { %v5753_v9 = vmul.f32 0.03125, %v5752_v11 }
0x346b   : > { %v5754_v10 = vsub.f32 %v5749_v7, %v5753_v9 }
0x346d   : > { %v5755_v13 = vmul.f32 %v5754_v10, %v5754_v10 }
0x346f   : > { %v5756_v17 = vsel %vm571_vm0, %v5755_v13, 0.0 }
0x3470   : > { %5757 = vadd.xlane.f32.xlu1 %v5756_v17 }
0x34fd   : > { %v5758_v29 = vpop.xlane.xlu1 %5757 }
0x34fe   : > { %v5759_v19 = vmul.f32 0.03125, %v5758_v29 }
0x3500   : > { %v5760_v30 = vadd.f32 1e-05, %v5759_v19 }
0x3502   : > { %9828 = vrsqrt.f32 %v5760_v30 }
0x350c   : > { %v9829_v31 = vpop.eup %9828 }
0x350d   : > { %v5762_v34 = vmul.f32 %v9829_v31, %v5754_v10 }
0x350f   : > { %v5771_v36 = vmul.f32 %v8593_v33, %v5762_v34 }
0x3511   : > { %v11132_v37 = vadd.f32 %v8594_v35, %v5771_v36 }
0x3513   : > { %9309 = vmatmul.mubr.msk.f32.vlgmr.msra.gmra.mrb[62].mxu0 %vm571_vm0, %v11132_v37 }
0x3514   : > { %9313 = vmatprep.mubr.msk.f32.mxu0 %vm10129_vm1, %v10130_v15 }
0x35e6   : > { %v5863_v38 = vpop.f32.mrb[62].mxu0 }
0x35e7   : > { %v11141_v40 = vadd.f32 %v8600_v14, %v5863_v38  ;;  %v9310_v41 = vpop.f32.mrb[63].mxu0 }
0x35e8   : > { %v8604_v41 = vld [vmem:[%s11466_s8 + $0x70] sm:$0xff] }
0x35e9   : > { %6038 = vrot.lane.b32.xlu1 %v11141_v40, %s10133_s24  ;;  %5873 = vrot.lane.b32.xlu0 %v11141_v40, %s10132_s5 }
0x35ed   : > { %6036 = vrot.lane.b32.xlu0 %v11141_v40, %s10131_s26 }
0x365b   : > { %v5874_v42 = vpop.permute.xlu0 %5873  ;;  %v6039_v28 = vpop.permute.xlu1 %6038 }
0x365c   : > { %9312 = vmatpush3.xpose.msk.msra.mxu0 %vm733_vm2, %v5874_v42 }
0x365d   : > { %9321 = vmatprep.subr.mxu0 %v10130_v15 }
0x365f   : > { %9314 = vmatmul.mubr.msk.f32.vlgmr.msra.gmra.mrb[64].mxu0 %vm733_vm2, %v11141_v40  ;;  %v6037_v48 = vpop.permute.xlu0 %6036 }
0x3660   : > { %9322 = vmatpush3.xpose.msk.msra.mxu0 %vm733_vm2, %v6039_v28  ;;  %9323 = vmatprep.mubr.msk.f32.mxu0 %vm10129_vm1, %v10130_v15 }
0x3661   : > { %9331 = vmatprep.subr.mxu0 %v10130_v15 }
0x3663   : > { %9324 = vmatmul.mubr.msk.f32.vlgmr.msra.gmra.mrb[66].mxu0 %vm733_vm2, %v6037_v48 }
0x3664   : > { %9333 = vmatprep.mubr.msk.f32.mxu0 %vm10129_vm1, %v10130_v15  ;;  %9332 = vmatpush3.msra.mxu0 %v8603_v24 }
0x3665   : > { %9341 = vmatprep.subr.mxu0 %v10130_v15 }
0x3732   : > { %v5945_v43 = vpop.f32.mrb[64].mxu0 }
0x3733   : > { %v5946_v44 = vadd.f32 %v5945_v43, %v10850_v22  ;;  %v9315_v45 = vpop.f32.mrb[65].mxu0 }
0x3735   : > { %v5949_v46 = vsel %vm733_vm2, %v5946_v44, -inf }
0x3736   : > { %5950 = vmax.xlane.f32.xlu0 %v5949_v46  ;;  %v6110_v47 = vpop.f32.mrb[66].mxu0 }
0x3737   : > { %v6111_v49 = vadd.f32 %v6110_v47, %v10850_v22  ;;  %v9325_v50 = vpop.f32.mrb[67].mxu0 }
0x3739   : > { %v6114_v39 = vsel %vm733_vm2, %v6111_v49, -inf }
0x373a   : > { %6115 = vmax.xlane.f32.xlu1 %v6114_v39 }
0x374b   : > { %6125 = vrot.lane.b32.xlu1 %v11141_v40, %s11536_s22  ;;  %s11540_s22 = sld [smem:[#allocation28_spill]] }
0x374f   : > { %6347 = vrot.lane.b32.xlu1 %v11141_v40, %s10137_s27 }
0x37c3   : > { %v5951_v51 = vpop.xlane.xlu0 %5950 }
0x37c4   : > { %v5952_v52 = vsub.f32 %v5946_v44, %v5951_v51  ;;  %v8605_v51 = vld [vmem:[%s11466_s8 + $0x78] sm:$0xff] }
0x37c6   : > { %v5953_v53 = vmul.f32 1.442695, %v5952_v52 }
0x37c7   : > { %v6116_v54 = vpop.xlane.xlu1 %6115 }
0x37c8   : > { %9830 = vpow2.f32 %v5953_v53  ;;  %v6117_v55 = vsub.f32 %v6111_v49, %v6116_v54 }
0x37ca   : > { %v6118_v16 = vmul.f32 1.442695, %v6117_v55 }
0x37cb   : > { %v6126_v0 = vpop.permute.xlu1 %6125 }
0x37cc   : > { %9832 = vpow2.f32 %v6118_v16 }
0x37cf   : > { %v6348_v11 = vpop.permute.xlu1 %6347 }
0x37d2   : > { %v9831_v56 = vpop.eup %9830 }
0x37d3   : > { %v5955_v57 = vsel %vm733_vm2, %v9831_v56, 0.0 }
0x37d4   : > { %5956 = vadd.xlane.f32.xlu0 %v5955_v57 }
0x37d6   : > { %v9833_v58 = vpop.eup %9832 }
0x37d7   : > { %v6120_v59 = vsel %vm733_vm2, %v9833_v58, 0.0 }
0x37d8   : > { %6121 = vadd.xlane.f32.xlu0 %v6120_v59  ;;  %v8622_v59 = vld [vmem:[#allocation7 + $0x3] ss:$0 sm:$0xff] }
0x37ee   : > { %5960 = vrot.lane.b32.xlu0 %v11141_v40, %s11537_s25  ;;  %s11538_s25 = sld [smem:[#allocation20_spill]] }
0x37f2   : > { %6349 = vrot.lane.b32.xlu0 %v11141_v40, %s11534_s30 }
0x3861   : > { %v5957_v60 = vpop.xlane.xlu0 %5956 }
0x3862   : > { %9834 = vrcp.f32 %v5957_v60 }
0x3865   : > { %v6122_v61 = vpop.xlane.xlu0 %6121 }
0x3866   : > { %9836 = vrcp.f32 %v6122_v61 }
0x3869   : > { %v5961_v25 = vpop.permute.xlu0 %5960 }
0x386a   : > { %9317 = vmatpush3.msra.mxu1 %v5961_v25 }
0x386b   : > { %9326 = vmatprep.subr.mxu1 %v10130_v15 }
0x386c   : > { %v9835_v62 = vpop.eup %9834 }
0x386d   : > { %v5959_v63 = vmul.f32 %v9835_v62, %v9831_v56  ;;  %v6350_v7 = vpop.permute.xlu0 %6349 }
0x386f   : > { %9319 = vmatmul.mubr.msk.f32.vlgmr.msra.gmra.mrb[56].mxu1 %vm733_vm2, %v5959_v63  ;;  %v8627_v63 = vld [vmem:[%s11464_s6 + $0xb0] sm:$0xff] }
0x3870   : > { %v9837_v1 = vpop.eup %9836  ;;  %9327 = vmatpush3.msra.mxu1 %v6126_v0  ;;  %9328 = vmatprep.mubr.msk.f32.mxu1 %vm10129_vm1, %v10130_v15  ;;  %v8628_v0 = vld [vmem:[%s11464_s6 + $0xb8] sm:$0xff] }
0x3871   : > { %v6124_v2 = vmul.f32 %v9837_v1, %v9833_v58  ;;  %9336 = vmatprep.subr.mxu1 %v10130_v15  ;;  %v9737_v1 = vpack.i.bf16 %v8628_v0, %v8627_v63 }
0x3873   : > { %9329 = vmatmul.mubr.msk.f32.vlgmr.msra.gmra.mrb[58].mxu1 %vm733_vm2, %v6124_v2 }
0x3874   : > { %9338 = vmatprep.mubr.msk.f32.mxu1 %vm10129_vm1, %v10130_v15  ;;  %9337 = vmatpush3.msra.mxu1 %v8602_v3 }
0x3875   : > { %9346 = vmatprep.subr.mxu1 %v10130_v15 }
0x3942   : > { %v6032_v4 = vpop.f32.mrb[56].mxu1 }
0x3943   : > { %v9320_v5 = vpop.f32.mrb[57].mxu1  ;;  %9339 = vmatmul.mubr.msk.f32.vlgmr.msra.gmra.mrb[60].mxu1 %vm733_vm2, %v6032_v4 }
0x3944   : > { %9348 = vmatprep.mubr.msk.f32.mxu1 %vm10129_vm1, %v10130_v15 }
0x3946   : > { %v6197_v6 = vpop.f32.mrb[58].mxu1 }
0x3947   : > { %v9330_v8 = vpop.f32.mrb[59].mxu1  ;;  %9334 = vmatmul.mubr.msk.f32.vlgmr.msra.gmra.mrb[68].mxu0 %vm733_vm2, %v6197_v6  ;;  %v8625_v6 = vld [vmem:[%s11464_s6 + $0xa0] sm:$0xff] }
0x3948   : > { %9342 = vmatpush3.xpose.msk.msra.mxu0 %vm733_vm2, %v6350_v7  ;;  %9343 = vmatprep.mubr.msk.f32.mxu0 %vm10129_vm1, %v10130_v15  ;;  %v8626_v7 = vld [vmem:[%s11464_s6 + $0xa8] sm:$0xff] }
0x3949   : > { %9351 = vmatprep.subr.mxu0 %v10130_v15  ;;  %v9732_v8 = vpack.i.bf16 %v8626_v7, %v8625_v6 }
0x394b   : > { %9344 = vmatmul.mubr.msk.f32.vlgmr.msra.gmra.mrb[70].mxu0 %vm733_vm2, %v6348_v11  ;;  %v9574_v11 = vpack.c.bf16 %v8626_v7, %v8625_v6 }
0x394c   : > { %9353 = vmatprep.mubr.msk.f32.mxu0 %vm10129_vm1, %v10130_v15  ;;  %9352 = vmatpush3.msra.mxu0 %v8604_v41 }
0x394d   : > { %9361 = vmatprep.subr.mxu0 %v10130_v15 }
0x3a16   : > { %v6343_v9 = vpop.f32.mrb[60].mxu1 }
0x3a17   : > { %v9340_v10 = vpop.f32.mrb[61].mxu1 }
0x3a18   : > { %v8630_v10 = vld [vmem:[%s11465_s7 + $0x5] ss:$0 sm:$0xff] }
0x3a1a   : > { %v6270_v13 = vpop.f32.mrb[68].mxu0 }
0x3a1b   : > { %v6344_v17 = vadd.f32 %v6343_v9, %v6270_v13  ;;  %v9335_v18 = vpop.f32.mrb[69].mxu0  ;;  %v9577_v9 = vpack.c.bf16 %v8628_v0, %v8627_v63 }
0x3a1e   : > { %v6421_v20 = vpop.f32.mrb[70].mxu0 }
0x3a1f   : > { %v6422_v21 = vadd.f32 %v6421_v20, %v10850_v22  ;;  %v9345_v23 = vpop.f32.mrb[71].mxu0 }
0x3a21   : > { %v6425_v26 = vsel %vm733_vm2, %v6422_v21, -inf }
0x3a22   : > { %6426 = vmax.xlane.f32.xlu0 %v6425_v26 }
0x3a38   : > { %6436 = vrot.lane.b32.xlu0 %v11141_v40, %s11531_s23 }
0x3a3c   : > { %6586 = vrot.lane.b32.xlu0 %v11141_v40, %s11530_s18 }
0x3aaf   : > { %v6427_v27 = vpop.xlane.xlu0 %6426 }
0x3ab0   : > { %v6428_v29 = vsub.f32 %v6422_v21, %v6427_v27 }
0x3ab2   : > { %v6429_v19 = vmul.f32 1.442695, %v6428_v29 }
0x3ab3   : > { %v6437_v30 = vpop.permute.xlu0 %6436 }
0x3ab4   : > { %9838 = vpow2.f32 %v6429_v19  ;;  %9347 = vmatpush3.msra.mxu1 %v6437_v30 }
0x3ab5   : > { %9356 = vmatprep.subr.mxu1 %v10130_v15 }
0x3ab7   : > { %v6587_v38 = vpop.permute.xlu0 %6586 }
0x3abe   : > { %v9839_v31 = vpop.eup %9838 }
0x3abf   : > { %v6431_v33 = vsel %vm733_vm2, %v9839_v31, 0.0 }
0x3ac0   : > { %6432 = vadd.xlane.f32.xlu1 %v6431_v33  ;;  %v8623_v33 = vld [vmem:[#allocation2 + $0x7] ss:$0 sm:$0xff] }
0x3ad1   : > { %6588 = vrot.lane.b32.xlu1 %v11141_v40, %s11535_s28 }
0x3b4d   : > { %v6433_v34 = vpop.xlane.xlu1 %6432 }
0x3b4e   : > { %9840 = vrcp.f32 %v6433_v34 }
0x3b51   : > { %v6589_v14 = vpop.permute.xlu1 %6588 }
0x3b58   : > { %v9841_v35 = vpop.eup %9840 }
0x3b59   : > { %v6435_v36 = vmul.f32 %v9841_v35, %v9839_v31  ;;  %v8624_v35 = vld [vmem:[#allocation5 + $0x7] ss:$0 sm:$0xff] }
0x3b5b   : > { %9349 = vmatmul.mubr.msk.f32.vlgmr.msra.gmra.mrb[62].mxu1 %vm733_vm2, %v6435_v36 }
0x3b5c   : > { %9357 = vmatpush3.xpose.msk.msra.mxu1 %vm733_vm2, %v6589_v14  ;;  %9358 = vmatprep.mubr.msk.f32.mxu1 %vm10129_vm1, %v10130_v15 }
0x3b5d   : > { %9366 = vmatprep.subr.mxu1 %v10130_v15 }
0x3b5f   : > { %9359 = vmatmul.mubr.msk.f32.vlgmr.msra.gmra.mrb[64].mxu1 %vm733_vm2, %v6587_v38 }
0x3b60   : > { %9368 = vmatprep.mubr.msk.f32.mxu1 %vm10129_vm1, %v10130_v15  ;;  %9367 = vmatpush3.msra.mxu1 %v8605_v51 }
0x3b61   : > { %9579 = vmatprep.subr.bf16.mxu1 %v10128_v12 }
0x3c2e   : > { %v6508_v42 = vpop.f32.mrb[62].mxu1 }
0x3c2f   : > { %v9350_v28 = vpop.f32.mrb[63].mxu1  ;;  %9354 = vmatmul.mubr.msk.f32.vlgmr.msra.gmra.mrb[72].mxu0 %vm733_vm2, %v6508_v42 }
0x3c30   : > { %9363 = vmatprep.mubr.msk.f32.mxu0 %vm10129_vm1, %v10130_v15 }
0x3c32   : > { %v6660_v48 = vpop.f32.mrb[64].mxu1 }
0x3c33   : > { %v6661_v43 = vadd.f32 %v6660_v48, %v10850_v22  ;;  %v9360_v44 = vpop.f32.mrb[65].mxu1 }
0x3c35   : > { %v6664_v45 = vsel %vm733_vm2, %v6661_v43, -inf }
0x3c36   : > { %6665 = vmax.xlane.f32.xlu1 %v6664_v45 }
0x3cc3   : > { %v6666_v46 = vpop.xlane.xlu1 %6665 }
0x3cc4   : > { %v6667_v47 = vsub.f32 %v6661_v43, %v6666_v46 }
0x3cc6   : > { %v6668_v49 = vmul.f32 1.442695, %v6667_v47 }
0x3cc8   : > { %9842 = vpow2.f32 %v6668_v49 }
0x3cd2   : > { %v9843_v50 = vpop.eup %9842 }
0x3cd3   : > { %v6670_v39 = vsel %vm733_vm2, %v9843_v50, 0.0 }
0x3cd4   : > { %6671 = vadd.xlane.f32.xlu0 %v6670_v39 }
0x3cea   : > { %6675 = vrot.lane.b32.xlu0 %v11141_v40, %s11532_s15 }
0x3cee   : > { %9738 = vrot.lane.b32.xlu0 %v9737_v1, %s10132_s5 }
0x3cf2   : > { %6968 = vrot.lane.b32.xlu0 %v8630_v10, %s10132_s5 }
0x3d02   : > { %v6581_v22 = vpop.f32.mrb[72].mxu0 }
0x3d03   : > { %v6585_v52 = vadd.f32 %v6581_v22, %v6344_v17  ;;  %v9355_v53 = vpop.f32.mrb[73].mxu0 }
0x3d61   : > { %v6672_v54 = vpop.xlane.xlu0 %6671 }
0x3d62   : > { %9844 = vrcp.f32 %v6672_v54 }
0x3d65   : > { %v6676_v55 = vpop.permute.xlu0 %6675 }
0x3d66   : > { %9362 = vmatpush3.msra.mxu0 %v6676_v55 }
0x3d67   : > { %9573 = vmatprep.subr.bf16.mxu0 %v10128_v12 }
0x3d69   : > { %v9739_v18 = vpop.permute.xlu0 %9738 }
0x3d6a   : > { %v9741_v23 = vunpack.i.h.bf16 %v9739_v18  ;;  %v9740_v29 = vunpack.i.l.bf16 %v9739_v18 }
0x3d6c   : > { %v9845_v16 = vpop.eup %9844  ;;  %v9583_v30 = vpack.c.bf16 %v9741_v23, %v9740_v29 }
0x3d6d   : > { %v6674_v56 = vmul.f32 %v9845_v16, %v9843_v50  ;;  %v6969_v38 = vpop.permute.xlu0 %6968 }
0x3d6f   : > { %9364 = vmatmul.mubr.msk.f32.vlgmr.msra.gmra.mrb[74].mxu0 %vm733_vm2, %v6674_v56 }
0x3d70   : > { %9379 = vmatprep.mubr.msk.f32.mxu0 %vm10129_vm1, %v10130_v15  ;;  %9575 = vmatpush3.bf16.msra.mxu0 %v9574_v11 }
0x3d71   : > { %9576 = vmatprep.subr.bf16.mxu0 %v10128_v12 }
0x3d74   : > { %9578 = vmatpush3.bf16.msra.mxu0 %v9577_v9 }
0x3d75   : > { %9393 = vmatprep.subr.mxu0 %v10130_v15 }
0x3e42   : > { %v6747_v40 = vpop.f32.mrb[74].mxu0 }
0x3e43   : > { %v9365_v57 = vpop.f32.mrb[75].mxu0  ;;  %9369 = vmatmul.mubr.msk.f32.vlgmr.msra.gmra.mrb[66].mxu1 %vm733_vm2, %v6747_v40 }
0x3e44   : > { %9390 = vmatprep.mubr.msk.f32.mxu1 %vm10129_vm1, %v10130_v15 }
0x3f16   : > { %v6820_v58 = vpop.f32.mrb[66].mxu1 }
0x3f17   : > { %v6824_v24 = vadd.f32 %v6820_v58, %v6585_v52  ;;  %v9370_v60 = vpop.f32.mrb[67].mxu1 }
0x3f19   : > { %v6833_v61 = vadd.f32 %v8622_v59, %v6824_v24 }
0x3f1b   : > { %v6834_v25 = vadd.f32 %v6833_v61, %v11132_v37 }
0x3f1d   : > { %v6835_v62 = vsel %vm571_vm0, %v6834_v25, 0.0 }
0x3f1e   : > { %6836 = vadd.xlane.f32.xlu1 %v6835_v62 }
0x3fab   : > { %v6837_v2 = vpop.xlane.xlu1 %6836 }
0x3fac   : > { %v6838_v3 = vmul.f32 0.03125, %v6837_v2  ;;  %v8633_v2 = vld [vmem:[%s11466_s8 + $0xa0] sm:$0xff] }
0x3fae   : > { %v6839_v4 = vsub.f32 %v6834_v25, %v6838_v3  ;;  %v8634_v25 = vld [vmem:[%s11466_s8 + $0xa8] sm:$0xff] }
0x3fb0   : > { %v6840_v5 = vmul.f32 %v6839_v4, %v6839_v4 }
0x3fb2   : > { %v6841_v37 = vsel %vm571_vm0, %v6840_v5, 0.0 }
0x3fb3   : > { %6842 = vadd.xlane.f32.xlu1 %v6841_v37 }
0x3fc4   : > { %9733 = vrot.lane.b32.xlu1 %v9732_v8, %s10132_s5 }
0x4040   : > { %v6843_v13 = vpop.xlane.xlu1 %6842 }
0x4041   : > { %v6844_v17 = vmul.f32 0.03125, %v6843_v13 }
0x4043   : > { %v6845_v20 = vadd.f32 1e-05, %v6844_v17 }
0x4044   : > { %v9734_v21 = vpop.permute.xlu1 %9733 }
0x4045   : > { %9846 = vrsqrt.f32 %v6845_v20  ;;  %v9736_v26 = vunpack.i.h.bf16 %v9734_v21  ;;  %v9735_v27 = vunpack.i.l.bf16 %v9734_v21 }
0x4047   : > { %v9580_v19 = vpack.c.bf16 %v9736_v26, %v9735_v27 }
0x4049   : > { %9581 = vmatpush3.bf16.msra.mxu1 %v9580_v19 }
0x404a   : > { %9582 = vmatprep.subr.bf16.mxu1 %v10128_v12 }
0x404d   : > { %9584 = vmatpush3.bf16.msra.mxu1 %v9583_v30 }
0x404e   : > { %9398 = vmatprep.subr.mxu1 %v10130_v15 }
0x404f   : > { %v9847_v31 = vpop.eup %9846 }
0x4050   : > { %v6847_v34 = vmul.f32 %v9847_v31, %v6839_v4  ;;  %9391 = vmatmul.mubr.msk.f32.vlgmr.msra.gmra.mrb[68].mxu1 %vm571_vm0, %v10962_v32 }
0x4051   : > { %9400 = vmatprep.mubr.msk.f32.mxu1 %vm10129_vm1, %v10130_v15 }
0x4052   : > { %v6856_v36 = vmul.f32 %v8623_v33, %v6847_v34 }
0x4054   : > { %v11271_v14 = vadd.f32 %v8624_v35, %v6856_v36  ;;  %v8635_v36 = vld [vmem:[%s11466_s8 + $0xb0] sm:$0xff] }
0x4056   : > { %9380 = vmatmul.mubr.msk.f32.vlgmr.msra.gmra.mrb[76].mxu0 %vm571_vm0, %v11271_v14 }
0x4057   : > { %9395 = vmatprep.mubr.msk.f32.mxu0 %vm10129_vm1, %v10130_v15 }
0x4123   : > { %v7037_v41 = vpop.f32.mrb[68].mxu1 }
0x4124   : > { %v11277_v42 = vadd.f32 %v7037_v41, %v6969_v38  ;;  %v9392_v28 = vpop.f32.mrb[69].mxu1 }
0x4126   : > { %7211 = vrot.lane.b32.xlu1 %v11277_v42, %s10131_s26  ;;  %9394 = vmatpush3.xpose.msk.msra.mxu0 %vm733_vm2, %v11277_v42 }
0x4127   : > { %9403 = vmatprep.subr.mxu0 %v10130_v15 }
0x4129   : > { %v6948_v32 = vpop.f32.mrb[76].mxu0 }
0x412a   : > { %v11284_v48 = vadd.f32 %v8630_v10, %v6948_v32  ;;  %v9381_v43 = vpop.f32.mrb[77].mxu0 }
0x412c   : > { %7209 = vrot.lane.b32.xlu0 %v11284_v48, %s10131_s26  ;;  %9396 = vmatmul.mubr.msk.f32.vlgmr.msra.gmra.mrb[78].mxu0 %vm733_vm2, %v11284_v48  ;;  %s11415_s26 = scalar_lea.hbm %s11540_s22, %s8672_s16 }
0x412d   : > { %9405 = vmatprep.mubr.msk.f32.mxu0 %vm10129_vm1, %v10130_v15 }
0x4198   : > { %v7212_v44 = vpop.permute.xlu1 %7211 }
0x4199   : > { %9404 = vmatpush3.xpose.msk.msra.mxu0 %vm733_vm2, %v7212_v44 }
0x419a   : > { %9413 = vmatprep.subr.mxu0 %v10130_v15 }
0x419e   : > { %v7210_v45 = vpop.permute.xlu0 %7209 }
0x419f   : > { %9406 = vmatmul.mubr.msk.f32.vlgmr.msra.gmra.mrb[80].mxu0 %vm733_vm2, %v7210_v45 }
0x41a0   : > { %9415 = vmatprep.mubr.msk.f32.mxu0 %vm10129_vm1, %v10130_v15  ;;  %9414 = vmatpush3.msra.mxu0 %v8634_v25 }
0x41a1   : > { %9423 = vmatprep.subr.mxu0 %v10130_v15 }
0x41ff   : > { %v7118_v46 = vpop.f32.mrb[78].mxu0 }
0x4200   : > { %v9397_v47 = vpop.f32.mrb[79].mxu0  ;;  %v7122_v49 = vsel %vm733_vm2, %v7118_v46, -inf }
0x4201   : > { %7123 = vmax.xlane.f32.xlu1 %v7122_v49 }
0x4272   : > { %v7283_v50 = vpop.f32.mrb[80].mxu0 }
0x4273   : > { %v9407_v39 = vpop.f32.mrb[81].mxu0  ;;  %v7287_v51 = vsel %vm733_vm2, %v7283_v50, -inf }
0x4274   : > { %7288 = vmax.xlane.f32.xlu0 %v7287_v51 }
0x428e   : > { %v7124_v22 = vpop.xlane.xlu1 %7123 }
0x428f   : > { %v7125_v52 = vsub.f32 %v7118_v46, %v7124_v22 }
0x4291   : > { %v7126_v53 = vmul.f32 1.442695, %v7125_v52 }
0x4293   : > { %9848 = vpow2.f32 %v7126_v53 }
0x429d   : > { %v9849_v54 = vpop.eup %9848 }
0x429e   : > { %v7128_v55 = vsel %vm733_vm2, %v9849_v54, 0.0 }
0x429f   : > { %7129 = vadd.xlane.f32.xlu0 %v7128_v55 }
0x42b5   : > { %7133 = vrot.lane.b32.xlu0 %v11277_v42, %s10132_s5 }
0x42b9   : > { %7520 = vrot.lane.b32.xlu0 %v11284_v48, %s10137_s27 }
0x4301   : > { %v7289_v16 = vpop.xlane.xlu0 %7288 }
0x4302   : > { %v7290_v56 = vsub.f32 %v7283_v50, %v7289_v16  ;;  %v8636_v50 = vld [vmem:[%s11466_s8 + $0xb8] sm:$0xff] }
0x4304   : > { %v7291_v40 = vmul.f32 1.442695, %v7290_v56  ;;  %v8653_v56 = vld [vmem:[#allocation7 + $0x5] ss:$0 sm:$0xff] }
0x4306   : > { %9850 = vpow2.f32 %v7291_v40 }
0x4310   : > { %v9851_v57 = vpop.eup %9850 }
0x4311   : > { %v7293_v58 = vsel %vm733_vm2, %v9851_v57, 0.0 }
0x4312   : > { %7294 = vadd.xlane.f32.xlu1 %v7293_v58 }
0x4323   : > { %7298 = vrot.lane.b32.xlu1 %v11277_v42, %s10133_s24 }
0x4327   : > { %7522 = vrot.lane.b32.xlu1 %v11277_v42, %s10137_s27  ;;  %s10042_s27 = sshll.u32 %s10143_s17, 4  ;;  %s10043_s27 = int_to_ptr.vmem [resolvable:$false] %s10042_s27 }
0x432c   : > { %v7130_v59 = vpop.xlane.xlu0 %7129 }
0x432d   : > { %9852 = vrcp.f32 %v7130_v59 }
0x4330   : > { %v7134_v24 = vpop.permute.xlu0 %7133 }
0x4331   : > { %9399 = vmatpush3.msra.mxu1 %v7134_v24 }
0x4332   : > { %9408 = vmatprep.subr.mxu1 %v10130_v15 }
0x4334   : > { %v7521_v7 = vpop.permute.xlu0 %7520 }
0x4337   : > { %v9853_v60 = vpop.eup %9852 }
0x4338   : > { %v7132_v61 = vmul.f32 %v9853_v60, %v9849_v54 }
0x433a   : > { %9401 = vmatmul.mubr.msk.f32.vlgmr.msra.gmra.mrb[70].mxu1 %vm733_vm2, %v7132_v61 }
0x433b   : > { %9410 = vmatprep.mubr.msk.f32.mxu1 %vm10129_vm1, %v10130_v15 }
0x439f   : > { %v7295_v62 = vpop.xlane.xlu1 %7294 }
0x43a0   : > { %9854 = vrcp.f32 %v7295_v62 }
0x43a3   : > { %v7299_v63 = vpop.permute.xlu1 %7298 }
0x43a4   : > { %9409 = vmatpush3.msra.mxu1 %v7299_v63 }
0x43a5   : > { %9418 = vmatprep.subr.mxu1 %v10130_v15 }
0x43a7   : > { %v7523_v37 = vpop.permute.xlu1 %7522 }
0x43aa   : > { %v9855_v0 = vpop.eup %9854 }
0x43ab   : > { %v7297_v1 = vmul.f32 %v9855_v0, %v9851_v57  ;;  %v8040_v0 = vld [vmem:[#allocation8 + $0x60] sm:$0xff] }
0x43ad   : > { %9411 = vmatmul.mubr.msk.f32.vlgmr.msra.gmra.mrb[72].mxu1 %vm733_vm2, %v7297_v1  ;;  %v8041_v1 = vld [vmem:[#allocation8 + $0x68] sm:$0xff] }
0x43ae   : > { %9419 = vmatpush3.msra.mxu1 %v8633_v2  ;;  %9420 = vmatprep.mubr.msk.f32.mxu1 %vm10129_vm1, %v10130_v15  ;;  %v8042_v2 = vld [vmem:[#allocation8 + $0x70] sm:$0xff] }
0x43af   : > { %9428 = vmatprep.subr.mxu1 %v10130_v15 }
0x440d   : > { %v7205_v3 = vpop.f32.mrb[70].mxu1 }
0x440e   : > { %v9402_v4 = vpop.f32.mrb[71].mxu1  ;;  %9421 = vmatmul.mubr.msk.f32.vlgmr.msra.gmra.mrb[74].mxu1 %vm733_vm2, %v7205_v3  ;;  %v8043_v3 = vld [vmem:[#allocation8 + $0x78] sm:$0xff] }
0x440f   : > { %9430 = vmatprep.mubr.msk.f32.mxu1 %vm10129_vm1, %v10130_v15  ;;  %v9589_v4 = vpack.c.bf16 %v8043_v3, %v8042_v2 }
0x4480   : > { %v7370_v5 = vpop.f32.mrb[72].mxu1 }
0x4481   : > { %v9412_v6 = vpop.f32.mrb[73].mxu1  ;;  %9416 = vmatmul.mubr.msk.f32.vlgmr.msra.gmra.mrb[82].mxu0 %vm733_vm2, %v7370_v5 }
0x4482   : > { %9424 = vmatpush3.xpose.msk.msra.mxu0 %vm733_vm2, %v7523_v37  ;;  %9425 = vmatprep.mubr.msk.f32.mxu0 %vm10129_vm1, %v10130_v15 }
0x4483   : > { %9433 = vmatprep.subr.mxu0 %v10130_v15 }
0x4485   : > { %9426 = vmatmul.mubr.msk.f32.vlgmr.msra.gmra.mrb[84].mxu0 %vm733_vm2, %v7521_v7  ;;  %v8654_v7 = vld [vmem:[#allocation2 + $0xa] ss:$0 sm:$0xff] }
0x4486   : > { %9435 = vmatprep.mubr.msk.f32.mxu0 %vm10129_vm1, %v10130_v15  ;;  %9434 = vmatpush3.msra.mxu0 %v8635_v36 }
0x4487   : > { %9443 = vmatprep.subr.mxu0 %v10130_v15 }
0x44e1   : > { %v7516_v8 = vpop.f32.mrb[74].mxu1 }
0x44e2   : > { %v9422_v11 = vpop.f32.mrb[75].mxu1 }
0x44e3   : > { %v8655_v11 = vld [vmem:[#allocation5 + $0xa] ss:$0 sm:$0xff] }
0x4554   : > { %v7443_v9 = vpop.f32.mrb[82].mxu0 }
0x4555   : > { %v7517_v10 = vadd.f32 %v7516_v8, %v7443_v9  ;;  %v9417_v13 = vpop.f32.mrb[83].mxu0 }
0x4556   : > { %v8659_v13 = vld [vmem:[%s11470_s12 + $0xc0] sm:$0xff] }
0x4558   : > { %v7594_v17 = vpop.f32.mrb[84].mxu0 }
0x4559   : > { %v9427_v18 = vpop.f32.mrb[85].mxu0  ;;  %v7598_v20 = vsel %vm733_vm2, %v7594_v17, -inf }
0x455a   : > { %7599 = vmax.xlane.f32.xlu1 %v7598_v20  ;;  %v8661_v20 = vld [vmem:[%s11470_s12 + $0xd0] sm:$0xff] }
0x456b   : > { %7761 = vrot.lane.b32.xlu1 %v11277_v42, %s11530_s18 }
0x456f   : > { %7759 = vrot.lane.b32.xlu1 %v11284_v48, %s11530_s18  ;;  %s10044_s18 = scalar_lea.vmem %s10043_s27, 256 }
0x45e7   : > { %v7600_v21 = vpop.xlane.xlu1 %7599 }
0x45e8   : > { %v7601_v23 = vsub.f32 %v7594_v17, %v7600_v21  ;;  %v8660_v17 = vld [vmem:[%s11470_s12 + $0xc8] sm:$0xff]  ;;  %v8662_v21 = vld [vmem:[%s11470_s12 + $0xd8] sm:$0xff] }
0x45e9   : > { %v9592_v18 = vpack.c.bf16 %v8660_v17, %v8659_v13 }
0x45ea   : > { %v7602_v26 = vmul.f32 1.442695, %v7601_v23  ;;  %v9595_v23 = vpack.c.bf16 %v8662_v21, %v8661_v20 }
0x45eb   : > { %v7762_v33 = vpop.permute.xlu1 %7761 }
0x45ec   : > { %9856 = vpow2.f32 %v7602_v26  ;;  %v8663_v26 = vld [vmem:[%s11470_s12 + $0xe0] sm:$0xff] }
0x45ef   : > { %v7760_v35 = vpop.permute.xlu1 %7759 }
0x45f6   : > { %v9857_v27 = vpop.eup %9856 }
0x45f7   : > { %v7604_v29 = vsel %vm733_vm2, %v9857_v27, 0.0 }
0x45f8   : > { %7605 = vadd.xlane.f32.xlu0 %v7604_v29 }
0x460e   : > { %7609 = vrot.lane.b32.xlu0 %v11277_v42, %s11534_s30 }
0x4685   : > { %v7606_v19 = vpop.xlane.xlu0 %7605 }
0x4686   : > { %9858 = vrcp.f32 %v7606_v19  ;;  %v8665_v19 = vld [vmem:[%s11470_s12 + $0xf0] sm:$0xff] }
0x4689   : > { %v7610_v30 = vpop.permute.xlu0 %7609 }
0x468a   : > { %9429 = vmatpush3.msra.mxu1 %v7610_v30  ;;  %v8666_v30 = vld [vmem:[%s11470_s12 + $0xf8] sm:$0xff] }
0x468b   : > { %9438 = vmatprep.subr.mxu1 %v10130_v15 }
0x4690   : > { %v9859_v31 = vpop.eup %9858 }
0x4691   : > { %v7608_v34 = vmul.f32 %v9859_v31, %v9857_v27  ;;  %v8664_v27 = vld [vmem:[%s11470_s12 + $0xe8] sm:$0xff]  ;;  %v9601_v31 = vpack.c.bf16 %v8666_v30, %v8665_v19 }
0x4692   : > { %v9598_v29 = vpack.c.bf16 %v8664_v27, %v8663_v26 }
0x4693   : > { %9431 = vmatmul.mubr.msk.f32.vlgmr.msra.gmra.mrb[76].mxu1 %vm733_vm2, %v7608_v34 }
0x4694   : > { %9439 = vmatpush3.xpose.msk.msra.mxu1 %vm733_vm2, %v7762_v33  ;;  %9440 = vmatprep.mubr.msk.f32.mxu1 %vm10129_vm1, %v10130_v15  ;;  %v8656_v33 = vld [vmem:[#allocation10 + $0x3] ss:$0 sm:$0xff] }
0x4695   : > { %9448 = vmatprep.subr.mxu1 %v10130_v15 }
0x4697   : > { %9441 = vmatmul.mubr.msk.f32.vlgmr.msra.gmra.mrb[78].mxu1 %vm733_vm2, %v7760_v35 }
0x4698   : > { %9450 = vmatprep.mubr.msk.f32.mxu1 %vm10129_vm1, %v10130_v15  ;;  %9449 = vmatpush3.msra.mxu1 %v8636_v50 }
0x4699   : > { %9591 = vmatprep.subr.bf16.mxu1 %v10128_v12 }
0x4766   : > { %v7681_v38 = vpop.f32.mrb[76].mxu1 }
0x4767   : > { %v9432_v41 = vpop.f32.mrb[77].mxu1  ;;  %9436 = vmatmul.mubr.msk.f32.vlgmr.msra.gmra.mrb[86].mxu0 %vm733_vm2, %v7681_v38 }
0x4768   : > { %9445 = vmatprep.mubr.msk.f32.mxu0 %vm10129_vm1, %v10130_v15 }
0x476a   : > { %v7833_v28 = vpop.f32.mrb[78].mxu1 }
0x476b   : > { %v9442_v32 = vpop.f32.mrb[79].mxu1  ;;  %v7837_v48 = vsel %vm733_vm2, %v7833_v28, -inf }
0x476c   : > { %7838 = vmax.xlane.f32.xlu0 %v7837_v48 }
0x4782   : > { %7848 = vrot.lane.b32.xlu0 %v11277_v42, %s11535_s28  ;;  %s557_s28 = sand.u32 1, %s11538_s25  }
0x4783   : > { %s8439_s20 = sshll.u32 %s557_s28, 3  ;;  %s8279_s5 = scalar_lea.sflag [#allocation4], %s557_s28 }
0x4784   : > { %s559_s14 = scalar_lea.vmem [#allocation13], %s8439_s20 }
0x4785   : > { %s8292_s23 = sshll.u32 %s559_s14, 4  ;;  %s11417_s23 = int_to_ptr.vmem [resolvable:$true] %s8292_s23 }
0x4786   : > { %s10038_s24 = scalar_lea.vmem %s11417_s23, 128  ;;  %p10045_p5 = scmp.lt.s32.totalorder %s11417_s23, %s10043_s27 }
0x4787   : > { %p10039_p4 = scmp.ne.s32.totalorder %s11417_s23, %s10038_s24  ;;  %p10046_p0 = scmp.lt.s32.totalorder %s10044_s18, %s10038_s24 }
0x4789   : > { %p10040_p8 = pnand %p10039_p4, %p11541_p7  ;;  %p10047_p6 = por %p10046_p0, %p10045_p5 }
0x478b   : > { %p10041_p11 = pneg %p10040_p8 }
0x478d   : > { %p10048_p9 = pnand %p10047_p6, %p10041_p11 }
0x47f9   : > { %v7839_v43 = vpop.xlane.xlu0 %7838 }
0x47fa   : > { %v7840_v44 = vsub.f32 %v7833_v28, %v7839_v43 }
0x47fc   : > { %v7841_v45 = vmul.f32 1.442695, %v7840_v44 }
0x47fd   : > { %v7849_v46 = vpop.permute.xlu0 %7848 }
0x47fe   : > { %9860 = vpow2.f32 %v7841_v45  ;;  %9444 = vmatpush3.msra.mxu0 %v7849_v46 }
0x47ff   : > { %9585 = vmatprep.subr.bf16.mxu0 %v10128_v12 }
0x4808   : > { %v9861_v47 = vpop.eup %9860 }
0x4809   : > { %v7843_v49 = vsel %vm733_vm2, %v9861_v47, 0.0 }
0x480a   : > { %7844 = vadd.xlane.f32.xlu1 %v7843_v49 }
0x483a   : > { %v7754_v42 = vpop.f32.mrb[86].mxu0 }
0x483b   : > { %v7758_v39 = vadd.f32 %v7754_v42, %v7517_v10  ;;  %v9437_v51 = vpop.f32.mrb[87].mxu0 }
0x4897   : > { %v7845_v22 = vpop.xlane.xlu1 %7844 }
0x4898   : > { %9862 = vrcp.f32 %v7845_v22 }
0x48a2   : > { %v9863_v52 = vpop.eup %9862 }
0x48a3   : > { %v7847_v53 = vmul.f32 %v9863_v52, %v9861_v47 }
0x48a5   : > { %9446 = vmatmul.mubr.msk.f32.vlgmr.msra.gmra.mrb[88].mxu0 %vm733_vm2, %v7847_v53 }
0x48a6   : > { %9461 = vmatprep.mubr.msk.f32.mxu0 %vm10129_vm1, %v10130_v15 }
0x4978   : > { %v7920_v54 = vpop.f32.mrb[88].mxu0 }
0x4979   : > { %v9447_v55 = vpop.f32.mrb[89].mxu0  ;;  %9451 = vmatmul.mubr.msk.f32.vlgmr.msra.gmra.mrb[80].mxu1 %vm733_vm2, %v7920_v54 }
0x497a   : > { %9480 = vmatprep.mubr.msk.f32.mxu1 %vm10129_vm1, %v10130_v15  ;;  %v9586_v15 = vpack.c.bf16 %v8041_v1, %v8040_v0  ;;  %9593 = vmatpush3.bf16.msra.mxu1 %v9592_v18 }
0x497b   : > { %9594 = vmatprep.subr.bf16.mxu1 %v10128_v12 }
0x497c   : > { %9587 = vmatpush3.bf16.msra.mxu0 %v9586_v15 }
0x497d   : > { %9588 = vmatprep.subr.bf16.mxu0 %v10128_v12 }
0x497e   : > { %9596 = vmatpush3.bf16.msra.mxu1 %v9595_v23 }
0x497f   : > { %9597 = vmatprep.subr.bf16.mxu1 %v10128_v12 }
0x4980   : > { %9590 = vmatpush3.bf16.msra.mxu0 %v9589_v4 }
0x4982   : > { %9599 = vmatpush3.bf16.msra.mxu1 %v9598_v29 }
0x4983   : > { %9600 = vmatprep.subr.bf16.mxu1 %v10128_v12 }
0x4986   : > { %9602 = vmatpush3.bf16.msra.mxu1 %v9601_v31 }
0x4a4c   : > { %v7993_v16 = vpop.f32.mrb[80].mxu1 }
0x4a4d   : > { %v7997_v40 = vadd.f32 %v7993_v16, %v7758_v39  ;;  %v9452_v57 = vpop.f32.mrb[81].mxu1 }
0x4a4f   : > { %v8006_v58 = vadd.f32 %v8653_v56, %v7997_v40 }
0x4a51   : > { %v8007_v59 = vadd.f32 %v8006_v58, %v11271_v14 }
0x4a53   : > { %v8008_v24 = vsel %vm571_vm0, %v8007_v59, 0.0 }
0x4a54   : > { %8009 = vadd.xlane.f32.xlu1 %v8008_v24 }
0x4ae1   : > { %v8010_v60 = vpop.xlane.xlu1 %8009 }
0x4ae2   : > { %v8011_v61 = vmul.f32 0.03125, %v8010_v60 }
0x4ae4   : > { %v8012_v25 = vsub.f32 %v8007_v59, %v8011_v61  ;;  %v8667_v61 = vld [vmem:[#allocation11 + $0x3] ss:$0 sm:$0xff] }
0x4ae6   : > { %v8013_v62 = vmul.f32 %v8012_v25, %v8012_v25 }
0x4ae8   : > { %v8014_v63 = vsel %vm571_vm0, %v8013_v62, 0.0 }
0x4ae9   : > { %8015 = vadd.xlane.f32.xlu1 %v8014_v63 }
0x4b76   : > { %v8016_v14 = vpop.xlane.xlu1 %8015 }
0x4b77   : > { %v8017_v5 = vmul.f32 0.03125, %v8016_v14 }
0x4b79   : > { %v8018_v37 = vadd.f32 1e-05, %v8017_v5 }
0x4b7b   : > { %9864 = vrsqrt.f32 %v8018_v37 }
0x4b85   : > { %v9865_v6 = vpop.eup %9864 }
0x4b86   : > { %v8020_v8 = vmul.f32 %v9865_v6, %v8012_v25 }
0x4b88   : > { %v8029_v9 = vmul.f32 %v8654_v7, %v8020_v8  ;;  %v8669_v8 = vld [vmem:[#allocation2 + $0xb] ss:$0 sm:$0xff] }
0x4b8a   : > { %v8038_v10 = vadd.f32 %v8655_v11, %v8029_v9  ;;  %v8670_v9 = vld [vmem:[#allocation5 + $0xb] ss:$0 sm:$0xff] }
0x4b8c   : > { %9462 = vmatmul.mubr.msk.f32.vlgmr.msra.gmra.mrb[90].mxu0 %vm571_vm0, %v8038_v10 }
0x4c5f   : > { %v8121_v34 = vpop.f32.mrb[90].mxu0 }
0x4c60   : > { %v8122_v35 = vadd.f32 %v8656_v33, %v8121_v34  ;;  %v9463_v36 = vpop.f32.mrb[91].mxu0 }
0x4c62   : > { %v8126_v38 = vmul.f32 0.70710677, %v8122_v35  ;;  %v8125_v59 = vmul.f32 0.5, %v8122_v35 }
0x4c64   : > { %v8658_v41 = vclamps-f32 %v8126_v38, 4.0 }
0x4c66   : > { %v8129_v28 = vmul.f32 %v8658_v41, %v8658_v41 }
0x4c68   : > { %v8130_v32 = vmul.f32 -2.7261424e-10, %v8129_v28  ;;  %v8143_v48 = vmul.f32 -1.45660715e-05, %v8129_v28 }
0x4c6a   : > { %v8131_v12 = vadd.f32 2.7706815e-08, %v8130_v32  ;;  %v8144_v43 = vadd.f32 -0.00021337405, %v8143_v48 }
0x4c6c   : > { %v8132_v44 = vmul.f32 %v8131_v12, %v8129_v28  ;;  %v8145_v45 = vmul.f32 %v8144_v43, %v8129_v28 }
0x4c6e   : > { %v8133_v46 = vadd.f32 -2.101024e-06, %v8132_v44  ;;  %v8146_v47 = vadd.f32 -0.001682827, %v8145_v45 }
0x4c70   : > { %v8134_v49 = vmul.f32 %v8133_v46, %v8129_v28  ;;  %v8147_v50 = vmul.f32 %v8146_v47, %v8129_v28 }
0x4c72   : > { %v8135_v42 = vadd.f32 -5.6925062e-05, %v8134_v49  ;;  %v8148_v39 = vadd.f32 -0.0073733293, %v8147_v50 }
0x4c74   : > { %v8136_v51 = vmul.f32 %v8135_v42, %v8129_v28  ;;  %v8149_v22 = vmul.f32 %v8148_v39, %v8129_v28 }
0x4c76   : > { %v8137_v52 = vadd.f32 -0.00073499064, %v8136_v51  ;;  %v8150_v53 = vadd.f32 -0.014264739, %v8149_v22 }
0x4c78   : > { %v8138_v54 = vmul.f32 %v8137_v52, %v8129_v28  ;;  %9866 = vrcp.f32 %v8150_v53 }
0x4c7a   : > { %v8139_v55 = vadd.f32 -0.0029546, %v8138_v54 }
0x4c7c   : > { %v8140_v16 = vmul.f32 %v8139_v55, %v8129_v28 }
0x4c7e   : > { %v8141_v56 = vadd.f32 -0.016096033, %v8140_v16 }
0x4c80   : > { %v8142_v40 = vmul.f32 %v8658_v41, %v8141_v56 }
0x4c82   : > { %v9867_v57 = vpop.eup %9866 }
0x4c83   : > { %v8152_v58 = vmul.f32 %v9867_v57, %v8142_v40 }
0x4c85   : > { %v8153_v24 = vadd.f32 1.0, %v8152_v58 }
0x4c87   : > { %v8154_v60 = vmul.f32 %v8153_v24, %v8125_v59 }
0x4c89   : > { %9481 = vmatmul.mubr.msk.f32.vlgmr.msra.gmra.mrb[82].mxu1 %vm1853_vm3, %v8154_v60 }
0x4d5c   : > { %v8241_v25 = vpop.f32.mrb[82].mxu1 }
0x4d5d   : > { %v8242_v62 = vadd.f32 %v8667_v61, %v8241_v25  ;;  %v9482_v63 = vpop.f32.mrb[83].mxu1 }
0x4d5f   : > { %v8245_v0 = vadd.f32 %v8242_v62, %v8038_v10 }
0x4d61   : > { %v8246_v1 = vsel %vm571_vm0, %v8245_v0, 0.0 }
0x4d62   : > { %8247 = vadd.xlane.f32.xlu1 %v8246_v1 }
0x4def   : > { %v8248_v15 = vpop.xlane.xlu1 %8247 }
0x4df0   : > { %v8249_v2 = vmul.f32 0.03125, %v8248_v15 }
0x4df2   : > { %v8250_v3 = vsub.f32 %v8245_v0, %v8249_v2 }
0x4df4   : > { %v8251_v4 = vmul.f32 %v8250_v3, %v8250_v3 }
0x4df6   : > { %v8252_v14 = vsel %vm571_vm0, %v8251_v4, 0.0 }
0x4df7   : > { %8253 = vadd.xlane.f32.xlu1 %v8252_v14 }
0x4e84   : > { %v8254_v5 = vpop.xlane.xlu1 %8253 }
0x4e85   : > { %v8255_v37 = vmul.f32 0.03125, %v8254_v5 }
0x4e87   : > { %v8256_v6 = vadd.f32 1e-05, %v8255_v37 }
0x4e89   : > { %9868 = vrsqrt.f32 %v8256_v6 }
0x4e93   : > { %v9869_v7 = vpop.eup %9868 }
0x4e94   : > { %v8258_v11 = vmul.f32 %v9869_v7, %v8250_v3 }
0x4e96   : > { %v8267_v10 = vmul.f32 %v8669_v8, %v8258_v11 }
0x4e98   : > { %v8276_v13 = vadd.f32 %v8670_v9, %v8267_v10 }
0x4e9a   : > { %8277 = vst.msk [vmem:[%s559_s14] sm:$0xff] %vm571_vm0, %v8276_v13 }
0x4e9b   : > { %10051 = shalt.err (!%p10048_p9)
}
0x4e9c   : > { %s10052_s30 = scalar_lea.hbm %s11415_s26, 128  ;;  %s10056_s28 = scalar_lea.hbm %s11540_s22, 256 }
0x4e9d   : > { %p10053_p10 = scmp.ne.s32.totalorder %s11415_s26, %s10052_s30  ;;  %p10057_p1 = scmp.lt.u32.totalorder %s11415_s26, %s11540_s22 }
0x4e9e   : > { %p10058_p2 = scmp.lt.u32.totalorder %s10056_s28, %s10052_s30  ;;  %p10060_p4 = scmp.lt.u32.totalorder %s10052_s30, %s11415_s26 }
0x4e9f   : > { %p10054_p13 = pnand %p10053_p10, %p11541_p7 }
0x4ea0   : > { %p10059_p3 = por %p10058_p2, %p10057_p1 }
0x4ea1   : > { %p10055_p12 = pneg %p10054_p13 }
0x4ea2   : > { %p10061_p8 = por %p10060_p4, %p10059_p3 }
0x4ea4   : > { %p10062_p11 = pnand %p10061_p8, %p10055_p12 }
0x4ea6   : > { %10065 = shalt.err (!%p10062_p11)
}
0x4ea7   : > { %9627 = dma.vmem_to_hbm [thread:$0]  (%p11541_p7), %s11417_s23, 128, %s11415_s26, %s8279_s5  }
0x4ea8 PF: > { %s11542_s14 = sld [smem:[#allocation22_spill]]  ;;  %s11543_s21 = sld [smem:[#allocation19_spill]] }
0x4ea9   : > { %s11544_s29 = sld [smem:[#allocation26_spill]] }
0x4eae   : > { %p9664_p5 = scmp.ge.s32.totalorder %s11542_s14, 2  ;;  %s8304_s24 = sand.u32 1, %s11543_s21  }
0x4eaf   : > { %p11545_p0 = scmp.ne.s32.totalorder %s11544_s29, 0  ;;  %s8305_s17 = scalar_lea.sflag [#allocation4], %s8304_s24 }
0x4eb1   : > { %p9649_p6 = pnand %p9664_p5, %p11545_p0 }
0x4eb3   : > { %10099 = dma.done.wait (!%p9649_p6), %s8305_s17, 128  }
0x4eb4   : > { %10101 = vsyncadd (!%p9649_p6), %s8305_s17, 4294967168  ;;  %s11546_s16 = sld [smem:[#allocation23_spill]]  ;;  %s11547_s29 = sld [smem:[#allocation20_spill]] }
0x4eb5   : > { %s11548_s30 = sld [smem:[#allocation21_spill]]  ;;  %s11549_s15 = sld [smem:[#allocation24_spill]] }
0x4eba   : > { %p28_p9 = scmp.ge.s32.totalorder %s11546_s16, 4  }
0x4ebc   :  { %30 = sbr.rel (!%p28_p9) target bundleno = 10 (0xa), region = 193 }
0x4ec3   :  { %8310 = vsyncpa [#allocation3], 1 }
0x4ec4   :  { %8312 = vsyncpa [#allocation3 + $0x1], 1 }
0x4ec5   :  { %8313 = vsyncpa [#allocation6], 1 }
0x4ec6   :  { %8314 = vsyncpa [#allocation9], 1 }
0x4ec7   :  { %8315 = vsyncpa [#allocation12], 1 }
0x4ec8   :  { %8316 = vsyncpa [#allocation4], 1 }
0x4ec9   :  { %8318 = vsyncpa [#allocation4 + $0x1], 1 }

</bundles_post_ra>
